<compile_context>
chip_gen: v7x
topology: tpu7x:2x2x1
jax: 0.10.0
libtpu: 0.0.40
codegen_flags: <defaults>
</compile_context>

<pallas_src>
import jax
import jax.numpy as jnp
import numpy as np
from jax.experimental import pallas as pl
from jax.experimental.pallas import tpu as pltpu

EPS = 1e-5


def _halo_masks(D, H, W):
    """(27, D*H*W) float32 0/1 masks.

    mask[k, flat(d,h,w)] = 1 iff the tap (d+kd-1, h+kh-1, w+kw-1) lies inside
    the unpadded volume, with k = kd*9 + kh*3 + kw.  Precomputed once on host.
    """
    d = np.arange(D)[:, None, None]
    h = np.arange(H)[None, :, None]
    w = np.arange(W)[None, None, :]
    masks = np.empty((27, D * H * W), np.float32)
    k = 0
    for kd in range(3):
        for kh in range(3):
            for kw in range(3):
                m = ((d + kd - 1 >= 0) & (d + kd - 1 < D)
                     & (h + kh - 1 >= 0) & (h + kh - 1 < H)
                     & (w + kw - 1 >= 0) & (w + kw - 1 < W))
                masks[k] = np.broadcast_to(m, (D, H, W)).reshape(-1)
                k += 1
    return masks


def double_conv3d(x_ncdhw, w1, b1, w2, b2):
    """DoubleConv3D forward.

    x_ncdhw: (N, Cin, D, H, W); w1: (Cout, Cin, 3,3,3); b1: (Cout,)
    w2: (Cout, Cout, 3,3,3); b2: (Cout,).  Returns (N, Cout, D, H, W).
    """
    N, Cin, D, H, W = x_ncdhw.shape
    Cout = w1.shape[0]
    HW = H * W
    DHW = D * HW
    Cmax = max(Cin, Cout)
    # Zero extension on each side of the flat spatial axis; rounded to a lane
    # tile so the in-kernel concat is lane-aligned.  Must cover the max shift.
    PAD = pl.cdiv(HW + W + 1, 128) * 128

    def kernel(masks_ref, x_ref, w1_ref, b1_ref, w2_ref, b2_ref, o_ref,
               patches_ref):
        def conv_in_relu(a, c_in, w_ref, b_ref):
            # a: (c_in, DHW) f32 activation of this stage (lane-dense).
            zpad = jnp.zeros((c_in, PAD), jnp.float32)
            ext = jnp.concatenate([zpad, a, zpad], axis=1)  # (c_in, DHW+2*PAD)
            # Build (27*c_in, DHW) im2col patches directly in the VMEM scratch:
            # one static lane shift + halo mask per tap.  No padded 3-D volume,
            # no cross-sublane shuffles, no concat of 27 live temporaries.
            for kd in range(3):
                for kh in range(3):
                    for kw in range(3):
                        k = kd * 9 + kh * 3 + kw
                        off = (kd - 1) * HW + (kh - 1) * W + (kw - 1)
                        sh = ext[:, PAD + off:PAD + off + DHW]   # (c_in, DHW)
                        tap = sh * masks_ref[k:k + 1, :]         # zero halo
                        patches_ref[k * c_in:(k + 1) * c_in, :] = (
                            tap.astype(jnp.bfloat16))
            patches = patches_ref[0:27 * c_in, :]               # (27*c_in, DHW)
            # Single MXU matmul per conv, DHW on the lane/column axis,
            # bf16 operands, f32 accumulation.
            acc = jnp.dot(w_ref[...], patches,
                          preferred_element_type=jnp.float32)   # (Cout, DHW)
            acc = acc + b_ref[...]                               # (Cout, 1)
            # InstanceNorm3d (affine=False, biased var) + ReLU; two-pass var.
            mean = jnp.mean(acc, axis=1, keepdims=True)
            cen = acc - mean
            var = jnp.mean(cen * cen, axis=1, keepdims=True)
            return jnp.maximum(cen * jax.lax.rsqrt(var + EPS), 0.0)

        a0 = x_ref[0].astype(jnp.float32)                 # (Cin, DHW)
        h1 = conv_in_relu(a0, Cin, w1_ref, b1_ref)        # stays on-chip, f32
        y = conv_in_relu(h1, Cout, w2_ref, b2_ref)        # (Cout, DHW)
        o_ref[0] = y.astype(o_ref.dtype)                  # lane-dense store,
        # no transpose: already NC(DHW) order.

    # ---- wrapper-side layout plumbing (free reshapes, one-off casts) ----
    x = x_ncdhw.reshape(N, Cin, DHW).astype(jnp.bfloat16)   # lane-dense bf16
    # Flipped im2col weights: (Cout, 27*C), column = k*C + c, k = kd*9+kh*3+kw.
    w1m = jnp.transpose(w1.reshape(Cout, Cin, 27), (0, 2, 1)).reshape(
        Cout, 27 * Cin).astype(jnp.bfloat16)
    w2m = jnp.transpose(w2.reshape(Cout, Cout, 27), (0, 2, 1)).reshape(
        Cout, 27 * Cout).astype(jnp.bfloat16)
    b1m = b1.reshape(Cout, 1).astype(jnp.float32)
    b2m = b2.reshape(Cout, 1).astype(jnp.float32)
    masks = jnp.asarray(_halo_masks(D, H, W))                # (27, DHW) f32

    # VMEM limit sized from the actual chip: ~96 MiB on v5e/v6e (128 MiB
    # physical), ~48 MiB on v7x (64 MiB physical).
    try:
        vmem_cap = int(pltpu.get_tpu_info().vmem_capacity_bytes)
    except Exception:
        vmem_cap = 64 * 1024 * 1024
    vmem_limit = min(vmem_cap * 3 // 4, 96 * 1024 * 1024)

    flops = 2 * N * DHW * 27 * Cout * (Cin + Cout)
    bytes_accessed = (x.size * 2 + N * Cout * DHW * 4 + N * masks.size * 4
                      + (w1m.size + w2m.size) * 2
                      + (b1m.size + b2m.size) * 4)

    out = pl.pallas_call(
        kernel,
        out_shape=jax.ShapeDtypeStruct((N, Cout, DHW), x_ncdhw.dtype),
        grid=(N,),
        in_specs=[
            pl.BlockSpec((27, DHW), lambda n: (0, 0)),           # halo masks
            pl.BlockSpec((1, Cin, DHW), lambda n: (n, 0, 0)),    # x (bf16)
            pl.BlockSpec((Cout, 27 * Cin), lambda n: (0, 0)),    # w1 (bf16)
            pl.BlockSpec((Cout, 1), lambda n: (0, 0)),           # b1
            pl.BlockSpec((Cout, 27 * Cout), lambda n: (0, 0)),   # w2 (bf16)
            pl.BlockSpec((Cout, 1), lambda n: (0, 0)),           # b2
        ],
        out_specs=pl.BlockSpec((1, Cout, DHW), lambda n: (n, 0, 0)),
        scratch_shapes=[
            # single im2col patch buffer, reused by both conv stages
            pltpu.VMEM((27 * Cmax, DHW), jnp.bfloat16),
        ],
        compiler_params=pltpu.CompilerParams(
            dimension_semantics=("parallel",),
            vmem_limit_bytes=vmem_limit,
        ),
        cost_estimate=pl.CostEstimate(
            flops=flops, transcendentals=2 * N * Cout,
            bytes_accessed=bytes_accessed),
    )(masks, x, w1m, b1m, w2m, b2m)

    # (N, Cout, D*H*W) -> NCDHW: pure (free) reshape, no transpose needed.
    return out.reshape(N, Cout, D, H, W)


# ---------------- pure-JAX reference (for correctness check) ----------------
def _reference(x, w1, b1, w2, b2):
    def conv(x, w, b):
        y = jax.lax.conv_general_dilated(
            x, w, window_strides=(1, 1, 1), padding=((1, 1),) * 3,
            dimension_numbers=("NCDHW", "OIDHW", "NCDHW"),
            precision=jax.lax.Precision.HIGHEST)
        return y + b.reshape(1, -1, 1, 1, 1)

    def inorm_relu(y):
        mean = jnp.mean(y, axis=(2, 3, 4), keepdims=True)
        var = jnp.mean((y - mean) ** 2, axis=(2, 3, 4), keepdims=True)
        return jnp.maximum((y - mean) * jax.lax.rsqrt(var + EPS), 0.0)

    return inorm_relu(conv(inorm_relu(conv(x, w1, b1)), w2, b2))


if __name__ == "__main__":
    N, Cin, Cout, D, H, W = 2, 4, 8, 8, 8, 8

    key = jax.random.PRNGKey(0)
    k0, k1, k2, k3, k4 = jax.random.split(key, 5)
    x = jax.random.normal(k0, (N, Cin, D, H, W), jnp.float32)
    w1 = 0.1 * jax.random.normal(k1, (Cout, Cin, 3, 3, 3), jnp.float32)
    b1 = 0.1 * jax.random.normal(k2, (Cout,), jnp.float32)
    w2 = 0.1 * jax.random.normal(k3, (Cout, Cout, 3, 3, 3), jnp.float32)
    b2 = 0.1 * jax.random.normal(k4, (Cout,), jnp.float32)

    out = double_conv3d(x, w1, b1, w2, b2)
    out = jax.block_until_ready(out)

    assert out.shape == (N, Cout, D, H, W), out.shape

    # MXU operands are bf16 (f32 accumulation / stats); reference is f32
    # HIGHEST, so tolerances are loosened accordingly (outputs are O(1)).
    ref = _reference(x, w1, b1, w2, b2)
    np.testing.assert_allclose(np.asarray(out), np.asarray(ref),
                               atol=5e-2, rtol=5e-2)

    print("KERNEL_OK")
</pallas_src>

<mosaic_0001>
module attributes {stable_mosaic.version = 11 : i64} {
  func.func @kernel(%arg0: i32, %arg1: memref<27x512xf32, #tpu.memory_space<vmem>>, %arg2: memref<1x4x512xbf16, #tpu.memory_space<vmem>>, %arg3: memref<8x108xbf16, #tpu.memory_space<vmem>>, %arg4: memref<8x1xf32, #tpu.memory_space<vmem>>, %arg5: memref<8x216xbf16, #tpu.memory_space<vmem>>, %arg6: memref<8x1xf32, #tpu.memory_space<vmem>>, %arg7: memref<1x8x512xf32, #tpu.memory_space<vmem>>, %arg8: memref<216x512xbf16, #tpu.memory_space<vmem>>) attributes {dimension_semantics = [#tpu.dimension_semantics<parallel>], iteration_bounds = array<i64: 2>, scalar_prefetch = 0 : i64, scratch_operands = 1 : i64, tpu.core_type = #tpu.core_type<tc>, window_params = [{pipeline_mode = #tpu.pipeline_mode<synchronous>, transform_indices = @transform_0, window_bounds = array<i64: 27, 512>}, {transform_indices = @transform_1, window_bounds = array<i64: 1, 4, 512>}, {pipeline_mode = #tpu.pipeline_mode<synchronous>, transform_indices = @transform_2, window_bounds = array<i64: 8, 108>}, {pipeline_mode = #tpu.pipeline_mode<synchronous>, transform_indices = @transform_3, window_bounds = array<i64: 8, 1>}, {pipeline_mode = #tpu.pipeline_mode<synchronous>, transform_indices = @transform_4, window_bounds = array<i64: 8, 216>}, {pipeline_mode = #tpu.pipeline_mode<synchronous>, transform_indices = @transform_5, window_bounds = array<i64: 8, 1>}, {transform_indices = @transform_6, window_bounds = array<i64: 1, 8, 512>}]} {
    %c0 = arith.constant 0 : index
    %c0_0 = arith.constant 0 : index
    %c0_1 = arith.constant 0 : index
    %0 = vector.load %arg2[%c0, %c0_0, %c0_1] : memref<1x4x512xbf16, #tpu.memory_space<vmem>>, vector<1x4x512xbf16>
    %1 = vector.shape_cast %0 : vector<1x4x512xbf16> to vector<4x512xbf16>
    %2 = arith.extf %1 : vector<4x512xbf16> to vector<4x512xf32>
    %cst = arith.constant 0.000000e+00 : f32
    %3 = vector.broadcast %cst : f32 to vector<4x128xf32>
    %4 = tpu.concatenate %3, %2, %3 in 1 : vector<4x128xf32>, vector<4x512xf32>, vector<4x128xf32> -> vector<4x768xf32>
    %5 = vector.extract_strided_slice %4 {offsets = [0, 55], sizes = [4, 512], strides = [1, 1]} : vector<4x768xf32> to vector<4x512xf32>
    %c0_2 = arith.constant 0 : index
    %c0_3 = arith.constant 0 : index
    %6 = vector.load %arg1[%c0_2, %c0_3] : memref<27x512xf32, #tpu.memory_space<vmem>>, vector<1x512xf32>
    %7 = vector.broadcast %6 : vector<1x512xf32> to vector<4x512xf32>
    %8 = arith.mulf %5, %7 : vector<4x512xf32>
    %9 = arith.truncf %8 : vector<4x512xf32> to vector<4x512xbf16>
    %c0_4 = arith.constant 0 : index
    %c0_5 = arith.constant 0 : index
    %10 = vector.load %arg8[%c0_4, %c0_5] : memref<216x512xbf16, #tpu.memory_space<vmem>>, vector<4x512xbf16>
    tpu.vector_store %arg8[%c0_4, %c0_5], %9 {strides = array<i32>} : memref<216x512xbf16, #tpu.memory_space<vmem>>, vector<4x512xbf16>,
    %11 = vector.extract_strided_slice %4 {offsets = [0, 56], sizes = [4, 512], strides = [1, 1]} : vector<4x768xf32> to vector<4x512xf32>
    %c1 = arith.constant 1 : index
    %c0_6 = arith.constant 0 : index
    %12 = vector.load %arg1[%c1, %c0_6] : memref<27x512xf32, #tpu.memory_space<vmem>>, vector<1x512xf32>
    %13 = vector.broadcast %12 : vector<1x512xf32> to vector<4x512xf32>
    %14 = arith.mulf %11, %13 : vector<4x512xf32>
    %15 = arith.truncf %14 : vector<4x512xf32> to vector<4x512xbf16>
    %c4 = arith.constant 4 : index
    %c0_7 = arith.constant 0 : index
    %16 = vector.load %arg8[%c4, %c0_7] : memref<216x512xbf16, #tpu.memory_space<vmem>>, vector<4x512xbf16>
    tpu.vector_store %arg8[%c4, %c0_7], %15 {strides = array<i32>} : memref<216x512xbf16, #tpu.memory_space<vmem>>, vector<4x512xbf16>,
    %17 = vector.extract_strided_slice %4 {offsets = [0, 57], sizes = [4, 512], strides = [1, 1]} : vector<4x768xf32> to vector<4x512xf32>
    %c2 = arith.constant 2 : index
    %c0_8 = arith.constant 0 : index
    %18 = vector.load %arg1[%c2, %c0_8] : memref<27x512xf32, #tpu.memory_space<vmem>>, vector<1x512xf32>
    %19 = vector.broadcast %18 : vector<1x512xf32> to vector<4x512xf32>
    %20 = arith.mulf %17, %19 : vector<4x512xf32>
    %21 = arith.truncf %20 : vector<4x512xf32> to vector<4x512xbf16>
    %c8 = arith.constant 8 : index
    %c0_9 = arith.constant 0 : index
    %22 = vector.load %arg8[%c8, %c0_9] : memref<216x512xbf16, #tpu.memory_space<vmem>>, vector<4x512xbf16>
    tpu.vector_store %arg8[%c8, %c0_9], %21 {strides = array<i32>} : memref<216x512xbf16, #tpu.memory_space<vmem>>, vector<4x512xbf16>,
    %23 = vector.extract_strided_slice %4 {offsets = [0, 63], sizes = [4, 512], strides = [1, 1]} : vector<4x768xf32> to vector<4x512xf32>
    %c3 = arith.constant 3 : index
    %c0_10 = arith.constant 0 : index
    %24 = vector.load %arg1[%c3, %c0_10] : memref<27x512xf32, #tpu.memory_space<vmem>>, vector<1x512xf32>
    %25 = vector.broadcast %24 : vector<1x512xf32> to vector<4x512xf32>
    %26 = arith.mulf %23, %25 : vector<4x512xf32>
    %27 = arith.truncf %26 : vector<4x512xf32> to vector<4x512xbf16>
    %c12 = arith.constant 12 : index
    %c0_11 = arith.constant 0 : index
    %28 = vector.load %arg8[%c12, %c0_11] : memref<216x512xbf16, #tpu.memory_space<vmem>>, vector<4x512xbf16>
    tpu.vector_store %arg8[%c12, %c0_11], %27 {strides = array<i32>} : memref<216x512xbf16, #tpu.memory_space<vmem>>, vector<4x512xbf16>,
    %29 = vector.extract_strided_slice %4 {offsets = [0, 64], sizes = [4, 512], strides = [1, 1]} : vector<4x768xf32> to vector<4x512xf32>
    %c4_12 = arith.constant 4 : index
    %c0_13 = arith.constant 0 : index
    %30 = vector.load %arg1[%c4_12, %c0_13] : memref<27x512xf32, #tpu.memory_space<vmem>>, vector<1x512xf32>
    %31 = vector.broadcast %30 : vector<1x512xf32> to vector<4x512xf32>
    %32 = arith.mulf %29, %31 : vector<4x512xf32>
    %33 = arith.truncf %32 : vector<4x512xf32> to vector<4x512xbf16>
    %c16 = arith.constant 16 : index
    %c0_14 = arith.constant 0 : index
    %34 = vector.load %arg8[%c16, %c0_14] : memref<216x512xbf16, #tpu.memory_space<vmem>>, vector<4x512xbf16>
    tpu.vector_store %arg8[%c16, %c0_14], %33 {strides = array<i32>} : memref<216x512xbf16, #tpu.memory_space<vmem>>, vector<4x512xbf16>,
    %35 = vector.extract_strided_slice %4 {offsets = [0, 65], sizes = [4, 512], strides = [1, 1]} : vector<4x768xf32> to vector<4x512xf32>
    %c5 = arith.constant 5 : index
    %c0_15 = arith.constant 0 : index
    %36 = vector.load %arg1[%c5, %c0_15] : memref<27x512xf32, #tpu.memory_space<vmem>>, vector<1x512xf32>
    %37 = vector.broadcast %36 : vector<1x512xf32> to vector<4x512xf32>
    %38 = arith.mulf %35, %37 : vector<4x512xf32>
    %39 = arith.truncf %38 : vector<4x512xf32> to vector<4x512xbf16>
    %c20 = arith.constant 20 : index
    %c0_16 = arith.constant 0 : index
    %40 = vector.load %arg8[%c20, %c0_16] : memref<216x512xbf16, #tpu.memory_space<vmem>>, vector<4x512xbf16>
    tpu.vector_store %arg8[%c20, %c0_16], %39 {strides = array<i32>} : memref<216x512xbf16, #tpu.memory_space<vmem>>, vector<4x512xbf16>,
    %41 = vector.extract_strided_slice %4 {offsets = [0, 71], sizes = [4, 512], strides = [1, 1]} : vector<4x768xf32> to vector<4x512xf32>
    %c6 = arith.constant 6 : index
    %c0_17 = arith.constant 0 : index
    %42 = vector.load %arg1[%c6, %c0_17] : memref<27x512xf32, #tpu.memory_space<vmem>>, vector<1x512xf32>
    %43 = vector.broadcast %42 : vector<1x512xf32> to vector<4x512xf32>
    %44 = arith.mulf %41, %43 : vector<4x512xf32>
    %45 = arith.truncf %44 : vector<4x512xf32> to vector<4x512xbf16>
    %c24 = arith.constant 24 : index
    %c0_18 = arith.constant 0 : index
    %46 = vector.load %arg8[%c24, %c0_18] : memref<216x512xbf16, #tpu.memory_space<vmem>>, vector<4x512xbf16>
    tpu.vector_store %arg8[%c24, %c0_18], %45 {strides = array<i32>} : memref<216x512xbf16, #tpu.memory_space<vmem>>, vector<4x512xbf16>,
    %47 = vector.extract_strided_slice %4 {offsets = [0, 72], sizes = [4, 512], strides = [1, 1]} : vector<4x768xf32> to vector<4x512xf32>
    %c7 = arith.constant 7 : index
    %c0_19 = arith.constant 0 : index
    %48 = vector.load %arg1[%c7, %c0_19] : memref<27x512xf32, #tpu.memory_space<vmem>>, vector<1x512xf32>
    %49 = vector.broadcast %48 : vector<1x512xf32> to vector<4x512xf32>
    %50 = arith.mulf %47, %49 : vector<4x512xf32>
    %51 = arith.truncf %50 : vector<4x512xf32> to vector<4x512xbf16>
    %c28 = arith.constant 28 : index
    %c0_20 = arith.constant 0 : index
    %52 = vector.load %arg8[%c28, %c0_20] : memref<216x512xbf16, #tpu.memory_space<vmem>>, vector<4x512xbf16>
    tpu.vector_store %arg8[%c28, %c0_20], %51 {strides = array<i32>} : memref<216x512xbf16, #tpu.memory_space<vmem>>, vector<4x512xbf16>,
    %53 = vector.extract_strided_slice %4 {offsets = [0, 73], sizes = [4, 512], strides = [1, 1]} : vector<4x768xf32> to vector<4x512xf32>
    %c8_21 = arith.constant 8 : index
    %c0_22 = arith.constant 0 : index
    %54 = vector.load %arg1[%c8_21, %c0_22] : memref<27x512xf32, #tpu.memory_space<vmem>>, vector<1x512xf32>
    %55 = vector.broadcast %54 : vector<1x512xf32> to vector<4x512xf32>
    %56 = arith.mulf %53, %55 : vector<4x512xf32>
    %57 = arith.truncf %56 : vector<4x512xf32> to vector<4x512xbf16>
    %c32 = arith.constant 32 : index
    %c0_23 = arith.constant 0 : index
    %58 = vector.load %arg8[%c32, %c0_23] : memref<216x512xbf16, #tpu.memory_space<vmem>>, vector<4x512xbf16>
    tpu.vector_store %arg8[%c32, %c0_23], %57 {strides = array<i32>} : memref<216x512xbf16, #tpu.memory_space<vmem>>, vector<4x512xbf16>,
    %59 = vector.extract_strided_slice %4 {offsets = [0, 119], sizes = [4, 512], strides = [1, 1]} : vector<4x768xf32> to vector<4x512xf32>
    %c9 = arith.constant 9 : index
    %c0_24 = arith.constant 0 : index
    %60 = vector.load %arg1[%c9, %c0_24] : memref<27x512xf32, #tpu.memory_space<vmem>>, vector<1x512xf32>
    %61 = vector.broadcast %60 : vector<1x512xf32> to vector<4x512xf32>
    %62 = arith.mulf %59, %61 : vector<4x512xf32>
    %63 = arith.truncf %62 : vector<4x512xf32> to vector<4x512xbf16>
    %c36 = arith.constant 36 : index
    %c0_25 = arith.constant 0 : index
    %64 = vector.load %arg8[%c36, %c0_25] : memref<216x512xbf16, #tpu.memory_space<vmem>>, vector<4x512xbf16>
    tpu.vector_store %arg8[%c36, %c0_25], %63 {strides = array<i32>} : memref<216x512xbf16, #tpu.memory_space<vmem>>, vector<4x512xbf16>,
    %65 = vector.extract_strided_slice %4 {offsets = [0, 120], sizes = [4, 512], strides = [1, 1]} : vector<4x768xf32> to vector<4x512xf32>
    %c10 = arith.constant 10 : index
    %c0_26 = arith.constant 0 : index
    %66 = vector.load %arg1[%c10, %c0_26] : memref<27x512xf32, #tpu.memory_space<vmem>>, vector<1x512xf32>
    %67 = vector.broadcast %66 : vector<1x512xf32> to vector<4x512xf32>
    %68 = arith.mulf %65, %67 : vector<4x512xf32>
    %69 = arith.truncf %68 : vector<4x512xf32> to vector<4x512xbf16>
    %c40 = arith.constant 40 : index
    %c0_27 = arith.constant 0 : index
    %70 = vector.load %arg8[%c40, %c0_27] : memref<216x512xbf16, #tpu.memory_space<vmem>>, vector<4x512xbf16>
    tpu.vector_store %arg8[%c40, %c0_27], %69 {strides = array<i32>} : memref<216x512xbf16, #tpu.memory_space<vmem>>, vector<4x512xbf16>,
    %71 = vector.extract_strided_slice %4 {offsets = [0, 121], sizes = [4, 512], strides = [1, 1]} : vector<4x768xf32> to vector<4x512xf32>
    %c11 = arith.constant 11 : index
    %c0_28 = arith.constant 0 : index
    %72 = vector.load %arg1[%c11, %c0_28] : memref<27x512xf32, #tpu.memory_space<vmem>>, vector<1x512xf32>
    %73 = vector.broadcast %72 : vector<1x512xf32> to vector<4x512xf32>
    %74 = arith.mulf %71, %73 : vector<4x512xf32>
    %75 = arith.truncf %74 : vector<4x512xf32> to vector<4x512xbf16>
    %c44 = arith.constant 44 : index
    %c0_29 = arith.constant 0 : index
    %76 = vector.load %arg8[%c44, %c0_29] : memref<216x512xbf16, #tpu.memory_space<vmem>>, vector<4x512xbf16>
    tpu.vector_store %arg8[%c44, %c0_29], %75 {strides = array<i32>} : memref<216x512xbf16, #tpu.memory_space<vmem>>, vector<4x512xbf16>,
    %77 = vector.extract_strided_slice %4 {offsets = [0, 127], sizes = [4, 512], strides = [1, 1]} : vector<4x768xf32> to vector<4x512xf32>
    %c12_30 = arith.constant 12 : index
    %c0_31 = arith.constant 0 : index
    %78 = vector.load %arg1[%c12_30, %c0_31] : memref<27x512xf32, #tpu.memory_space<vmem>>, vector<1x512xf32>
    %79 = vector.broadcast %78 : vector<1x512xf32> to vector<4x512xf32>
    %80 = arith.mulf %77, %79 : vector<4x512xf32>
    %81 = arith.truncf %80 : vector<4x512xf32> to vector<4x512xbf16>
    %c48 = arith.constant 48 : index
    %c0_32 = arith.constant 0 : index
    %82 = vector.load %arg8[%c48, %c0_32] : memref<216x512xbf16, #tpu.memory_space<vmem>>, vector<4x512xbf16>
    tpu.vector_store %arg8[%c48, %c0_32], %81 {strides = array<i32>} : memref<216x512xbf16, #tpu.memory_space<vmem>>, vector<4x512xbf16>,
    %83 = vector.extract_strided_slice %4 {offsets = [0, 128], sizes = [4, 512], strides = [1, 1]} : vector<4x768xf32> to vector<4x512xf32>
    %c13 = arith.constant 13 : index
    %c0_33 = arith.constant 0 : index
    %84 = vector.load %arg1[%c13, %c0_33] : memref<27x512xf32, #tpu.memory_space<vmem>>, vector<1x512xf32>
    %85 = vector.broadcast %84 : vector<1x512xf32> to vector<4x512xf32>
    %86 = arith.mulf %83, %85 : vector<4x512xf32>
    %87 = arith.truncf %86 : vector<4x512xf32> to vector<4x512xbf16>
    %c52 = arith.constant 52 : index
    %c0_34 = arith.constant 0 : index
    %88 = vector.load %arg8[%c52, %c0_34] : memref<216x512xbf16, #tpu.memory_space<vmem>>, vector<4x512xbf16>
    tpu.vector_store %arg8[%c52, %c0_34], %87 {strides = array<i32>} : memref<216x512xbf16, #tpu.memory_space<vmem>>, vector<4x512xbf16>,
    %89 = vector.extract_strided_slice %4 {offsets = [0, 129], sizes = [4, 512], strides = [1, 1]} : vector<4x768xf32> to vector<4x512xf32>
    %c14 = arith.constant 14 : index
    %c0_35 = arith.constant 0 : index
    %90 = vector.load %arg1[%c14, %c0_35] : memref<27x512xf32, #tpu.memory_space<vmem>>, vector<1x512xf32>
    %91 = vector.broadcast %90 : vector<1x512xf32> to vector<4x512xf32>
    %92 = arith.mulf %89, %91 : vector<4x512xf32>
    %93 = arith.truncf %92 : vector<4x512xf32> to vector<4x512xbf16>
    %c56 = arith.constant 56 : index
    %c0_36 = arith.constant 0 : index
    %94 = vector.load %arg8[%c56, %c0_36] : memref<216x512xbf16, #tpu.memory_space<vmem>>, vector<4x512xbf16>
    tpu.vector_store %arg8[%c56, %c0_36], %93 {strides = array<i32>} : memref<216x512xbf16, #tpu.memory_space<vmem>>, vector<4x512xbf16>,
    %95 = vector.extract_strided_slice %4 {offsets = [0, 135], sizes = [4, 512], strides = [1, 1]} : vector<4x768xf32> to vector<4x512xf32>
    %c15 = arith.constant 15 : index
    %c0_37 = arith.constant 0 : index
    %96 = vector.load %arg1[%c15, %c0_37] : memref<27x512xf32, #tpu.memory_space<vmem>>, vector<1x512xf32>
    %97 = vector.broadcast %96 : vector<1x512xf32> to vector<4x512xf32>
    %98 = arith.mulf %95, %97 : vector<4x512xf32>
    %99 = arith.truncf %98 : vector<4x512xf32> to vector<4x512xbf16>
    %c60 = arith.constant 60 : index
    %c0_38 = arith.constant 0 : index
    %100 = vector.load %arg8[%c60, %c0_38] : memref<216x512xbf16, #tpu.memory_space<vmem>>, vector<4x512xbf16>
    tpu.vector_store %arg8[%c60, %c0_38], %99 {strides = array<i32>} : memref<216x512xbf16, #tpu.memory_space<vmem>>, vector<4x512xbf16>,
    %101 = vector.extract_strided_slice %4 {offsets = [0, 136], sizes = [4, 512], strides = [1, 1]} : vector<4x768xf32> to vector<4x512xf32>
    %c16_39 = arith.constant 16 : index
    %c0_40 = arith.constant 0 : index
    %102 = vector.load %arg1[%c16_39, %c0_40] : memref<27x512xf32, #tpu.memory_space<vmem>>, vector<1x512xf32>
    %103 = vector.broadcast %102 : vector<1x512xf32> to vector<4x512xf32>
    %104 = arith.mulf %101, %103 : vector<4x512xf32>
    %105 = arith.truncf %104 : vector<4x512xf32> to vector<4x512xbf16>
    %c64 = arith.constant 64 : index
    %c0_41 = arith.constant 0 : index
    %106 = vector.load %arg8[%c64, %c0_41] : memref<216x512xbf16, #tpu.memory_space<vmem>>, vector<4x512xbf16>
    tpu.vector_store %arg8[%c64, %c0_41], %105 {strides = array<i32>} : memref<216x512xbf16, #tpu.memory_space<vmem>>, vector<4x512xbf16>,
    %107 = vector.extract_strided_slice %4 {offsets = [0, 137], sizes = [4, 512], strides = [1, 1]} : vector<4x768xf32> to vector<4x512xf32>
    %c17 = arith.constant 17 : index
    %c0_42 = arith.constant 0 : index
    %108 = vector.load %arg1[%c17, %c0_42] : memref<27x512xf32, #tpu.memory_space<vmem>>, vector<1x512xf32>
    %109 = vector.broadcast %108 : vector<1x512xf32> to vector<4x512xf32>
    %110 = arith.mulf %107, %109 : vector<4x512xf32>
    %111 = arith.truncf %110 : vector<4x512xf32> to vector<4x512xbf16>
    %c68 = arith.constant 68 : index
    %c0_43 = arith.constant 0 : index
    %112 = vector.load %arg8[%c68, %c0_43] : memref<216x512xbf16, #tpu.memory_space<vmem>>, vector<4x512xbf16>
    tpu.vector_store %arg8[%c68, %c0_43], %111 {strides = array<i32>} : memref<216x512xbf16, #tpu.memory_space<vmem>>, vector<4x512xbf16>,
    %113 = vector.extract_strided_slice %4 {offsets = [0, 183], sizes = [4, 512], strides = [1, 1]} : vector<4x768xf32> to vector<4x512xf32>
    %c18 = arith.constant 18 : index
    %c0_44 = arith.constant 0 : index
    %114 = vector.load %arg1[%c18, %c0_44] : memref<27x512xf32, #tpu.memory_space<vmem>>, vector<1x512xf32>
    %115 = vector.broadcast %114 : vector<1x512xf32> to vector<4x512xf32>
    %116 = arith.mulf %113, %115 : vector<4x512xf32>
    %117 = arith.truncf %116 : vector<4x512xf32> to vector<4x512xbf16>
    %c72 = arith.constant 72 : index
    %c0_45 = arith.constant 0 : index
    %118 = vector.load %arg8[%c72, %c0_45] : memref<216x512xbf16, #tpu.memory_space<vmem>>, vector<4x512xbf16>
    tpu.vector_store %arg8[%c72, %c0_45], %117 {strides = array<i32>} : memref<216x512xbf16, #tpu.memory_space<vmem>>, vector<4x512xbf16>,
    %119 = vector.extract_strided_slice %4 {offsets = [0, 184], sizes = [4, 512], strides = [1, 1]} : vector<4x768xf32> to vector<4x512xf32>
    %c19 = arith.constant 19 : index
    %c0_46 = arith.constant 0 : index
    %120 = vector.load %arg1[%c19, %c0_46] : memref<27x512xf32, #tpu.memory_space<vmem>>, vector<1x512xf32>
    %121 = vector.broadcast %120 : vector<1x512xf32> to vector<4x512xf32>
    %122 = arith.mulf %119, %121 : vector<4x512xf32>
    %123 = arith.truncf %122 : vector<4x512xf32> to vector<4x512xbf16>
    %c76 = arith.constant 76 : index
    %c0_47 = arith.constant 0 : index
    %124 = vector.load %arg8[%c76, %c0_47] : memref<216x512xbf16, #tpu.memory_space<vmem>>, vector<4x512xbf16>
    tpu.vector_store %arg8[%c76, %c0_47], %123 {strides = array<i32>} : memref<216x512xbf16, #tpu.memory_space<vmem>>, vector<4x512xbf16>,
    %125 = vector.extract_strided_slice %4 {offsets = [0, 185], sizes = [4, 512], strides = [1, 1]} : vector<4x768xf32> to vector<4x512xf32>
    %c20_48 = arith.constant 20 : index
    %c0_49 = arith.constant 0 : index
    %126 = vector.load %arg1[%c20_48, %c0_49] : memref<27x512xf32, #tpu.memory_space<vmem>>, vector<1x512xf32>
    %127 = vector.broadcast %126 : vector<1x512xf32> to vector<4x512xf32>
    %128 = arith.mulf %125, %127 : vector<4x512xf32>
    %129 = arith.truncf %128 : vector<4x512xf32> to vector<4x512xbf16>
    %c80 = arith.constant 80 : index
    %c0_50 = arith.constant 0 : index
    %130 = vector.load %arg8[%c80, %c0_50] : memref<216x512xbf16, #tpu.memory_space<vmem>>, vector<4x512xbf16>
    tpu.vector_store %arg8[%c80, %c0_50], %129 {strides = array<i32>} : memref<216x512xbf16, #tpu.memory_space<vmem>>, vector<4x512xbf16>,
    %131 = vector.extract_strided_slice %4 {offsets = [0, 191], sizes = [4, 512], strides = [1, 1]} : vector<4x768xf32> to vector<4x512xf32>
    %c21 = arith.constant 21 : index
    %c0_51 = arith.constant 0 : index
    %132 = vector.load %arg1[%c21, %c0_51] : memref<27x512xf32, #tpu.memory_space<vmem>>, vector<1x512xf32>
    %133 = vector.broadcast %132 : vector<1x512xf32> to vector<4x512xf32>
    %134 = arith.mulf %131, %133 : vector<4x512xf32>
    %135 = arith.truncf %134 : vector<4x512xf32> to vector<4x512xbf16>
    %c84 = arith.constant 84 : index
    %c0_52 = arith.constant 0 : index
    %136 = vector.load %arg8[%c84, %c0_52] : memref<216x512xbf16, #tpu.memory_space<vmem>>, vector<4x512xbf16>
    tpu.vector_store %arg8[%c84, %c0_52], %135 {strides = array<i32>} : memref<216x512xbf16, #tpu.memory_space<vmem>>, vector<4x512xbf16>,
    %137 = vector.extract_strided_slice %4 {offsets = [0, 192], sizes = [4, 512], strides = [1, 1]} : vector<4x768xf32> to vector<4x512xf32>
    %c22 = arith.constant 22 : index
    %c0_53 = arith.constant 0 : index
    %138 = vector.load %arg1[%c22, %c0_53] : memref<27x512xf32, #tpu.memory_space<vmem>>, vector<1x512xf32>
    %139 = vector.broadcast %138 : vector<1x512xf32> to vector<4x512xf32>
    %140 = arith.mulf %137, %139 : vector<4x512xf32>
    %141 = arith.truncf %140 : vector<4x512xf32> to vector<4x512xbf16>
    %c88 = arith.constant 88 : index
    %c0_54 = arith.constant 0 : index
    %142 = vector.load %arg8[%c88, %c0_54] : memref<216x512xbf16, #tpu.memory_space<vmem>>, vector<4x512xbf16>
    tpu.vector_store %arg8[%c88, %c0_54], %141 {strides = array<i32>} : memref<216x512xbf16, #tpu.memory_space<vmem>>, vector<4x512xbf16>,
    %143 = vector.extract_strided_slice %4 {offsets = [0, 193], sizes = [4, 512], strides = [1, 1]} : vector<4x768xf32> to vector<4x512xf32>
    %c23 = arith.constant 23 : index
    %c0_55 = arith.constant 0 : index
    %144 = vector.load %arg1[%c23, %c0_55] : memref<27x512xf32, #tpu.memory_space<vmem>>, vector<1x512xf32>
    %145 = vector.broadcast %144 : vector<1x512xf32> to vector<4x512xf32>
    %146 = arith.mulf %143, %145 : vector<4x512xf32>
    %147 = arith.truncf %146 : vector<4x512xf32> to vector<4x512xbf16>
    %c92 = arith.constant 92 : index
    %c0_56 = arith.constant 0 : index
    %148 = vector.load %arg8[%c92, %c0_56] : memref<216x512xbf16, #tpu.memory_space<vmem>>, vector<4x512xbf16>
    tpu.vector_store %arg8[%c92, %c0_56], %147 {strides = array<i32>} : memref<216x512xbf16, #tpu.memory_space<vmem>>, vector<4x512xbf16>,
    %149 = vector.extract_strided_slice %4 {offsets = [0, 199], sizes = [4, 512], strides = [1, 1]} : vector<4x768xf32> to vector<4x512xf32>
    %c24_57 = arith.constant 24 : index
    %c0_58 = arith.constant 0 : index
    %150 = vector.load %arg1[%c24_57, %c0_58] : memref<27x512xf32, #tpu.memory_space<vmem>>, vector<1x512xf32>
    %151 = vector.broadcast %150 : vector<1x512xf32> to vector<4x512xf32>
    %152 = arith.mulf %149, %151 : vector<4x512xf32>
    %153 = arith.truncf %152 : vector<4x512xf32> to vector<4x512xbf16>
    %c96 = arith.constant 96 : index
    %c0_59 = arith.constant 0 : index
    %154 = vector.load %arg8[%c96, %c0_59] : memref<216x512xbf16, #tpu.memory_space<vmem>>, vector<4x512xbf16>
    tpu.vector_store %arg8[%c96, %c0_59], %153 {strides = array<i32>} : memref<216x512xbf16, #tpu.memory_space<vmem>>, vector<4x512xbf16>,
    %155 = vector.extract_strided_slice %4 {offsets = [0, 200], sizes = [4, 512], strides = [1, 1]} : vector<4x768xf32> to vector<4x512xf32>
    %c25 = arith.constant 25 : index
    %c0_60 = arith.constant 0 : index
    %156 = vector.load %arg1[%c25, %c0_60] : memref<27x512xf32, #tpu.memory_space<vmem>>, vector<1x512xf32>
    %157 = vector.broadcast %156 : vector<1x512xf32> to vector<4x512xf32>
    %158 = arith.mulf %155, %157 : vector<4x512xf32>
    %159 = arith.truncf %158 : vector<4x512xf32> to vector<4x512xbf16>
    %c100 = arith.constant 100 : index
    %c0_61 = arith.constant 0 : index
    %160 = vector.load %arg8[%c100, %c0_61] : memref<216x512xbf16, #tpu.memory_space<vmem>>, vector<4x512xbf16>
    tpu.vector_store %arg8[%c100, %c0_61], %159 {strides = array<i32>} : memref<216x512xbf16, #tpu.memory_space<vmem>>, vector<4x512xbf16>,
    %161 = vector.extract_strided_slice %4 {offsets = [0, 201], sizes = [4, 512], strides = [1, 1]} : vector<4x768xf32> to vector<4x512xf32>
    %c26 = arith.constant 26 : index
    %c0_62 = arith.constant 0 : index
    %162 = vector.load %arg1[%c26, %c0_62] : memref<27x512xf32, #tpu.memory_space<vmem>>, vector<1x512xf32>
    %163 = vector.broadcast %162 : vector<1x512xf32> to vector<4x512xf32>
    %164 = arith.mulf %161, %163 : vector<4x512xf32>
    %165 = arith.truncf %164 : vector<4x512xf32> to vector<4x512xbf16>
    %c104 = arith.constant 104 : index
    %c0_63 = arith.constant 0 : index
    %166 = vector.load %arg8[%c104, %c0_63] : memref<216x512xbf16, #tpu.memory_space<vmem>>, vector<4x512xbf16>
    tpu.vector_store %arg8[%c104, %c0_63], %165 {strides = array<i32>} : memref<216x512xbf16, #tpu.memory_space<vmem>>, vector<4x512xbf16>,
    %c0_64 = arith.constant 0 : index
    %c0_65 = arith.constant 0 : index
    %167 = vector.load %arg8[%c0_64, %c0_65] : memref<216x512xbf16, #tpu.memory_space<vmem>>, vector<108x512xbf16>
    %c0_66 = arith.constant 0 : index
    %c0_67 = arith.constant 0 : index
    %168 = vector.load %arg3[%c0_66, %c0_67] : memref<8x108xbf16, #tpu.memory_space<vmem>>, vector<8x108xbf16>
    %cst_68 = arith.constant dense<0.000000e+00> : vector<8x512xf32>
    %169 = tpu.matmul %168, %167, %cst_68 {dimension_numbers = #tpu.dot_dimension_numbers<[1], [0], [0], [1], [0, 0, 1, 1], [], []>} : vector<8x108xbf16>, vector<108x512xbf16>, vector<8x512xf32> -> vector<8x512xf32>
    %c0_69 = arith.constant 0 : index
    %c0_70 = arith.constant 0 : index
    %170 = vector.load %arg4[%c0_69, %c0_70] : memref<8x1xf32, #tpu.memory_space<vmem>>, vector<8x1xf32>
    %171 = vector.broadcast %170 : vector<8x1xf32> to vector<8x512xf32>
    %172 = arith.addf %169, %171 : vector<8x512xf32>
    %cst_71 = arith.constant dense<0.000000e+00> : vector<8xf32>
    %173 = vector.multi_reduction <add>, %172, %cst_71 [1] : vector<8x512xf32> to vector<8xf32>
    %174 = vector.shape_cast %173 : vector<8xf32> to vector<8x1xf32>
    %cst_72 = arith.constant 5.120000e+02 : f32
    %175 = vector.broadcast %cst_72 : f32 to vector<8x1xf32>
    %176 = arith.divf %174, %175 : vector<8x1xf32>
    %177 = vector.broadcast %176 : vector<8x1xf32> to vector<8x512xf32>
    %178 = arith.subf %172, %177 : vector<8x512xf32>
    %179 = arith.mulf %178, %178 : vector<8x512xf32>
    %cst_73 = arith.constant dense<0.000000e+00> : vector<8xf32>
    %180 = vector.multi_reduction <add>, %179, %cst_73 [1] : vector<8x512xf32> to vector<8xf32>
    %181 = vector.shape_cast %180 : vector<8xf32> to vector<8x1xf32>
    %cst_74 = arith.constant 5.120000e+02 : f32
    %182 = vector.broadcast %cst_74 : f32 to vector<8x1xf32>
    %183 = arith.divf %181, %182 : vector<8x1xf32>
    %cst_75 = arith.constant 9.99999974E-6 : f32
    %184 = vector.broadcast %cst_75 : f32 to vector<8x1xf32>
    %185 = arith.addf %183, %184 : vector<8x1xf32>
    %186 = math.rsqrt %185 : vector<8x1xf32>
    %187 = vector.broadcast %186 : vector<8x1xf32> to vector<8x512xf32>
    %188 = arith.mulf %178, %187 : vector<8x512xf32>
    %cst_76 = arith.constant 0.000000e+00 : f32
    %189 = vector.broadcast %cst_76 : f32 to vector<8x512xf32>
    %190 = arith.maximumf %188, %189 : vector<8x512xf32>
    %cst_77 = arith.constant 0.000000e+00 : f32
    %191 = vector.broadcast %cst_77 : f32 to vector<8x128xf32>
    %192 = tpu.concatenate %191, %190, %191 in 1 : vector<8x128xf32>, vector<8x512xf32>, vector<8x128xf32> -> vector<8x768xf32>
    %193 = vector.extract_strided_slice %192 {offsets = [0, 55], sizes = [8, 512], strides = [1, 1]} : vector<8x768xf32> to vector<8x512xf32>
    %c0_78 = arith.constant 0 : index
    %c0_79 = arith.constant 0 : index
    %194 = vector.load %arg1[%c0_78, %c0_79] : memref<27x512xf32, #tpu.memory_space<vmem>>, vector<1x512xf32>
    %195 = vector.broadcast %194 : vector<1x512xf32> to vector<8x512xf32>
    %196 = arith.mulf %193, %195 : vector<8x512xf32>
    %197 = arith.truncf %196 : vector<8x512xf32> to vector<8x512xbf16>
    %c0_80 = arith.constant 0 : index
    %c0_81 = arith.constant 0 : index
    %198 = vector.load %arg8[%c0_80, %c0_81] : memref<216x512xbf16, #tpu.memory_space<vmem>>, vector<8x512xbf16>
    tpu.vector_store %arg8[%c0_80, %c0_81], %197 {strides = array<i32>} : memref<216x512xbf16, #tpu.memory_space<vmem>>, vector<8x512xbf16>,
    %199 = vector.extract_strided_slice %192 {offsets = [0, 56], sizes = [8, 512], strides = [1, 1]} : vector<8x768xf32> to vector<8x512xf32>
    %c1_82 = arith.constant 1 : index
    %c0_83 = arith.constant 0 : index
    %200 = vector.load %arg1[%c1_82, %c0_83] : memref<27x512xf32, #tpu.memory_space<vmem>>, vector<1x512xf32>
    %201 = vector.broadcast %200 : vector<1x512xf32> to vector<8x512xf32>
    %202 = arith.mulf %199, %201 : vector<8x512xf32>
    %203 = arith.truncf %202 : vector<8x512xf32> to vector<8x512xbf16>
    %c8_84 = arith.constant 8 : index
    %c0_85 = arith.constant 0 : index
    %204 = vector.load %arg8[%c8_84, %c0_85] : memref<216x512xbf16, #tpu.memory_space<vmem>>, vector<8x512xbf16>
    tpu.vector_store %arg8[%c8_84, %c0_85], %203 {strides = array<i32>} : memref<216x512xbf16, #tpu.memory_space<vmem>>, vector<8x512xbf16>,
    %205 = vector.extract_strided_slice %192 {offsets = [0, 57], sizes = [8, 512], strides = [1, 1]} : vector<8x768xf32> to vector<8x512xf32>
    %c2_86 = arith.constant 2 : index
    %c0_87 = arith.constant 0 : index
    %206 = vector.load %arg1[%c2_86, %c0_87] : memref<27x512xf32, #tpu.memory_space<vmem>>, vector<1x512xf32>
    %207 = vector.broadcast %206 : vector<1x512xf32> to vector<8x512xf32>
    %208 = arith.mulf %205, %207 : vector<8x512xf32>
    %209 = arith.truncf %208 : vector<8x512xf32> to vector<8x512xbf16>
    %c16_88 = arith.constant 16 : index
    %c0_89 = arith.constant 0 : index
    %210 = vector.load %arg8[%c16_88, %c0_89] : memref<216x512xbf16, #tpu.memory_space<vmem>>, vector<8x512xbf16>
    tpu.vector_store %arg8[%c16_88, %c0_89], %209 {strides = array<i32>} : memref<216x512xbf16, #tpu.memory_space<vmem>>, vector<8x512xbf16>,
    %211 = vector.extract_strided_slice %192 {offsets = [0, 63], sizes = [8, 512], strides = [1, 1]} : vector<8x768xf32> to vector<8x512xf32>
    %c3_90 = arith.constant 3 : index
    %c0_91 = arith.constant 0 : index
    %212 = vector.load %arg1[%c3_90, %c0_91] : memref<27x512xf32, #tpu.memory_space<vmem>>, vector<1x512xf32>
    %213 = vector.broadcast %212 : vector<1x512xf32> to vector<8x512xf32>
    %214 = arith.mulf %211, %213 : vector<8x512xf32>
    %215 = arith.truncf %214 : vector<8x512xf32> to vector<8x512xbf16>
    %c24_92 = arith.constant 24 : index
    %c0_93 = arith.constant 0 : index
    %216 = vector.load %arg8[%c24_92, %c0_93] : memref<216x512xbf16, #tpu.memory_space<vmem>>, vector<8x512xbf16>
    tpu.vector_store %arg8[%c24_92, %c0_93], %215 {strides = array<i32>} : memref<216x512xbf16, #tpu.memory_space<vmem>>, vector<8x512xbf16>,
    %217 = vector.extract_strided_slice %192 {offsets = [0, 64], sizes = [8, 512], strides = [1, 1]} : vector<8x768xf32> to vector<8x512xf32>
    %c4_94 = arith.constant 4 : index
    %c0_95 = arith.constant 0 : index
    %218 = vector.load %arg1[%c4_94, %c0_95] : memref<27x512xf32, #tpu.memory_space<vmem>>, vector<1x512xf32>
    %219 = vector.broadcast %218 : vector<1x512xf32> to vector<8x512xf32>
    %220 = arith.mulf %217, %219 : vector<8x512xf32>
    %221 = arith.truncf %220 : vector<8x512xf32> to vector<8x512xbf16>
    %c32_96 = arith.constant 32 : index
    %c0_97 = arith.constant 0 : index
    %222 = vector.load %arg8[%c32_96, %c0_97] : memref<216x512xbf16, #tpu.memory_space<vmem>>, vector<8x512xbf16>
    tpu.vector_store %arg8[%c32_96, %c0_97], %221 {strides = array<i32>} : memref<216x512xbf16, #tpu.memory_space<vmem>>, vector<8x512xbf16>,
    %223 = vector.extract_strided_slice %192 {offsets = [0, 65], sizes = [8, 512], strides = [1, 1]} : vector<8x768xf32> to vector<8x512xf32>
    %c5_98 = arith.constant 5 : index
    %c0_99 = arith.constant 0 : index
    %224 = vector.load %arg1[%c5_98, %c0_99] : memref<27x512xf32, #tpu.memory_space<vmem>>, vector<1x512xf32>
    %225 = vector.broadcast %224 : vector<1x512xf32> to vector<8x512xf32>
    %226 = arith.mulf %223, %225 : vector<8x512xf32>
    %227 = arith.truncf %226 : vector<8x512xf32> to vector<8x512xbf16>
    %c40_100 = arith.constant 40 : index
    %c0_101 = arith.constant 0 : index
    %228 = vector.load %arg8[%c40_100, %c0_101] : memref<216x512xbf16, #tpu.memory_space<vmem>>, vector<8x512xbf16>
    tpu.vector_store %arg8[%c40_100, %c0_101], %227 {strides = array<i32>} : memref<216x512xbf16, #tpu.memory_space<vmem>>, vector<8x512xbf16>,
    %229 = vector.extract_strided_slice %192 {offsets = [0, 71], sizes = [8, 512], strides = [1, 1]} : vector<8x768xf32> to vector<8x512xf32>
    %c6_102 = arith.constant 6 : index
    %c0_103 = arith.constant 0 : index
    %230 = vector.load %arg1[%c6_102, %c0_103] : memref<27x512xf32, #tpu.memory_space<vmem>>, vector<1x512xf32>
    %231 = vector.broadcast %230 : vector<1x512xf32> to vector<8x512xf32>
    %232 = arith.mulf %229, %231 : vector<8x512xf32>
    %233 = arith.truncf %232 : vector<8x512xf32> to vector<8x512xbf16>
    %c48_104 = arith.constant 48 : index
    %c0_105 = arith.constant 0 : index
    %234 = vector.load %arg8[%c48_104, %c0_105] : memref<216x512xbf16, #tpu.memory_space<vmem>>, vector<8x512xbf16>
    tpu.vector_store %arg8[%c48_104, %c0_105], %233 {strides = array<i32>} : memref<216x512xbf16, #tpu.memory_space<vmem>>, vector<8x512xbf16>,
    %235 = vector.extract_strided_slice %192 {offsets = [0, 72], sizes = [8, 512], strides = [1, 1]} : vector<8x768xf32> to vector<8x512xf32>
    %c7_106 = arith.constant 7 : index
    %c0_107 = arith.constant 0 : index
    %236 = vector.load %arg1[%c7_106, %c0_107] : memref<27x512xf32, #tpu.memory_space<vmem>>, vector<1x512xf32>
    %237 = vector.broadcast %236 : vector<1x512xf32> to vector<8x512xf32>
    %238 = arith.mulf %235, %237 : vector<8x512xf32>
    %239 = arith.truncf %238 : vector<8x512xf32> to vector<8x512xbf16>
    %c56_108 = arith.constant 56 : index
    %c0_109 = arith.constant 0 : index
    %240 = vector.load %arg8[%c56_108, %c0_109] : memref<216x512xbf16, #tpu.memory_space<vmem>>, vector<8x512xbf16>
    tpu.vector_store %arg8[%c56_108, %c0_109], %239 {strides = array<i32>} : memref<216x512xbf16, #tpu.memory_space<vmem>>, vector<8x512xbf16>,
    %241 = vector.extract_strided_slice %192 {offsets = [0, 73], sizes = [8, 512], strides = [1, 1]} : vector<8x768xf32> to vector<8x512xf32>
    %c8_110 = arith.constant 8 : index
    %c0_111 = arith.constant 0 : index
    %242 = vector.load %arg1[%c8_110, %c0_111] : memref<27x512xf32, #tpu.memory_space<vmem>>, vector<1x512xf32>
    %243 = vector.broadcast %242 : vector<1x512xf32> to vector<8x512xf32>
    %244 = arith.mulf %241, %243 : vector<8x512xf32>
    %245 = arith.truncf %244 : vector<8x512xf32> to vector<8x512xbf16>
    %c64_112 = arith.constant 64 : index
    %c0_113 = arith.constant 0 : index
    %246 = vector.load %arg8[%c64_112, %c0_113] : memref<216x512xbf16, #tpu.memory_space<vmem>>, vector<8x512xbf16>
    tpu.vector_store %arg8[%c64_112, %c0_113], %245 {strides = array<i32>} : memref<216x512xbf16, #tpu.memory_space<vmem>>, vector<8x512xbf16>,
    %247 = vector.extract_strided_slice %192 {offsets = [0, 119], sizes = [8, 512], strides = [1, 1]} : vector<8x768xf32> to vector<8x512xf32>
    %c9_114 = arith.constant 9 : index
    %c0_115 = arith.constant 0 : index
    %248 = vector.load %arg1[%c9_114, %c0_115] : memref<27x512xf32, #tpu.memory_space<vmem>>, vector<1x512xf32>
    %249 = vector.broadcast %248 : vector<1x512xf32> to vector<8x512xf32>
    %250 = arith.mulf %247, %249 : vector<8x512xf32>
    %251 = arith.truncf %250 : vector<8x512xf32> to vector<8x512xbf16>
    %c72_116 = arith.constant 72 : index
    %c0_117 = arith.constant 0 : index
    %252 = vector.load %arg8[%c72_116, %c0_117] : memref<216x512xbf16, #tpu.memory_space<vmem>>, vector<8x512xbf16>
    tpu.vector_store %arg8[%c72_116, %c0_117], %251 {strides = array<i32>} : memref<216x512xbf16, #tpu.memory_space<vmem>>, vector<8x512xbf16>,
    %253 = vector.extract_strided_slice %192 {offsets = [0, 120], sizes = [8, 512], strides = [1, 1]} : vector<8x768xf32> to vector<8x512xf32>
    %c10_118 = arith.constant 10 : index
    %c0_119 = arith.constant 0 : index
    %254 = vector.load %arg1[%c10_118, %c0_119] : memref<27x512xf32, #tpu.memory_space<vmem>>, vector<1x512xf32>
    %255 = vector.broadcast %254 : vector<1x512xf32> to vector<8x512xf32>
    %256 = arith.mulf %253, %255 : vector<8x512xf32>
    %257 = arith.truncf %256 : vector<8x512xf32> to vector<8x512xbf16>
    %c80_120 = arith.constant 80 : index
    %c0_121 = arith.constant 0 : index
    %258 = vector.load %arg8[%c80_120, %c0_121] : memref<216x512xbf16, #tpu.memory_space<vmem>>, vector<8x512xbf16>
    tpu.vector_store %arg8[%c80_120, %c0_121], %257 {strides = array<i32>} : memref<216x512xbf16, #tpu.memory_space<vmem>>, vector<8x512xbf16>,
    %259 = vector.extract_strided_slice %192 {offsets = [0, 121], sizes = [8, 512], strides = [1, 1]} : vector<8x768xf32> to vector<8x512xf32>
    %c11_122 = arith.constant 11 : index
    %c0_123 = arith.constant 0 : index
    %260 = vector.load %arg1[%c11_122, %c0_123] : memref<27x512xf32, #tpu.memory_space<vmem>>, vector<1x512xf32>
    %261 = vector.broadcast %260 : vector<1x512xf32> to vector<8x512xf32>
    %262 = arith.mulf %259, %261 : vector<8x512xf32>
    %263 = arith.truncf %262 : vector<8x512xf32> to vector<8x512xbf16>
    %c88_124 = arith.constant 88 : index
    %c0_125 = arith.constant 0 : index
    %264 = vector.load %arg8[%c88_124, %c0_125] : memref<216x512xbf16, #tpu.memory_space<vmem>>, vector<8x512xbf16>
    tpu.vector_store %arg8[%c88_124, %c0_125], %263 {strides = array<i32>} : memref<216x512xbf16, #tpu.memory_space<vmem>>, vector<8x512xbf16>,
    %265 = vector.extract_strided_slice %192 {offsets = [0, 127], sizes = [8, 512], strides = [1, 1]} : vector<8x768xf32> to vector<8x512xf32>
    %c12_126 = arith.constant 12 : index
    %c0_127 = arith.constant 0 : index
    %266 = vector.load %arg1[%c12_126, %c0_127] : memref<27x512xf32, #tpu.memory_space<vmem>>, vector<1x512xf32>
    %267 = vector.broadcast %266 : vector<1x512xf32> to vector<8x512xf32>
    %268 = arith.mulf %265, %267 : vector<8x512xf32>
    %269 = arith.truncf %268 : vector<8x512xf32> to vector<8x512xbf16>
    %c96_128 = arith.constant 96 : index
    %c0_129 = arith.constant 0 : index
    %270 = vector.load %arg8[%c96_128, %c0_129] : memref<216x512xbf16, #tpu.memory_space<vmem>>, vector<8x512xbf16>
    tpu.vector_store %arg8[%c96_128, %c0_129], %269 {strides = array<i32>} : memref<216x512xbf16, #tpu.memory_space<vmem>>, vector<8x512xbf16>,
    %271 = vector.extract_strided_slice %192 {offsets = [0, 128], sizes = [8, 512], strides = [1, 1]} : vector<8x768xf32> to vector<8x512xf32>
    %c13_130 = arith.constant 13 : index
    %c0_131 = arith.constant 0 : index
    %272 = vector.load %arg1[%c13_130, %c0_131] : memref<27x512xf32, #tpu.memory_space<vmem>>, vector<1x512xf32>
    %273 = vector.broadcast %272 : vector<1x512xf32> to vector<8x512xf32>
    %274 = arith.mulf %271, %273 : vector<8x512xf32>
    %275 = arith.truncf %274 : vector<8x512xf32> to vector<8x512xbf16>
    %c104_132 = arith.constant 104 : index
    %c0_133 = arith.constant 0 : index
    %276 = vector.load %arg8[%c104_132, %c0_133] : memref<216x512xbf16, #tpu.memory_space<vmem>>, vector<8x512xbf16>
    tpu.vector_store %arg8[%c104_132, %c0_133], %275 {strides = array<i32>} : memref<216x512xbf16, #tpu.memory_space<vmem>>, vector<8x512xbf16>,
    %277 = vector.extract_strided_slice %192 {offsets = [0, 129], sizes = [8, 512], strides = [1, 1]} : vector<8x768xf32> to vector<8x512xf32>
    %c14_134 = arith.constant 14 : index
    %c0_135 = arith.constant 0 : index
    %278 = vector.load %arg1[%c14_134, %c0_135] : memref<27x512xf32, #tpu.memory_space<vmem>>, vector<1x512xf32>
    %279 = vector.broadcast %278 : vector<1x512xf32> to vector<8x512xf32>
    %280 = arith.mulf %277, %279 : vector<8x512xf32>
    %281 = arith.truncf %280 : vector<8x512xf32> to vector<8x512xbf16>
    %c112 = arith.constant 112 : index
    %c0_136 = arith.constant 0 : index
    %282 = vector.load %arg8[%c112, %c0_136] : memref<216x512xbf16, #tpu.memory_space<vmem>>, vector<8x512xbf16>
    tpu.vector_store %arg8[%c112, %c0_136], %281 {strides = array<i32>} : memref<216x512xbf16, #tpu.memory_space<vmem>>, vector<8x512xbf16>,
    %283 = vector.extract_strided_slice %192 {offsets = [0, 135], sizes = [8, 512], strides = [1, 1]} : vector<8x768xf32> to vector<8x512xf32>
    %c15_137 = arith.constant 15 : index
    %c0_138 = arith.constant 0 : index
    %284 = vector.load %arg1[%c15_137, %c0_138] : memref<27x512xf32, #tpu.memory_space<vmem>>, vector<1x512xf32>
    %285 = vector.broadcast %284 : vector<1x512xf32> to vector<8x512xf32>
    %286 = arith.mulf %283, %285 : vector<8x512xf32>
    %287 = arith.truncf %286 : vector<8x512xf32> to vector<8x512xbf16>
    %c120 = arith.constant 120 : index
    %c0_139 = arith.constant 0 : index
    %288 = vector.load %arg8[%c120, %c0_139] : memref<216x512xbf16, #tpu.memory_space<vmem>>, vector<8x512xbf16>
    tpu.vector_store %arg8[%c120, %c0_139], %287 {strides = array<i32>} : memref<216x512xbf16, #tpu.memory_space<vmem>>, vector<8x512xbf16>,
    %289 = vector.extract_strided_slice %192 {offsets = [0, 136], sizes = [8, 512], strides = [1, 1]} : vector<8x768xf32> to vector<8x512xf32>
    %c16_140 = arith.constant 16 : index
    %c0_141 = arith.constant 0 : index
    %290 = vector.load %arg1[%c16_140, %c0_141] : memref<27x512xf32, #tpu.memory_space<vmem>>, vector<1x512xf32>
    %291 = vector.broadcast %290 : vector<1x512xf32> to vector<8x512xf32>
    %292 = arith.mulf %289, %291 : vector<8x512xf32>
    %293 = arith.truncf %292 : vector<8x512xf32> to vector<8x512xbf16>
    %c128 = arith.constant 128 : index
    %c0_142 = arith.constant 0 : index
    %294 = vector.load %arg8[%c128, %c0_142] : memref<216x512xbf16, #tpu.memory_space<vmem>>, vector<8x512xbf16>
    tpu.vector_store %arg8[%c128, %c0_142], %293 {strides = array<i32>} : memref<216x512xbf16, #tpu.memory_space<vmem>>, vector<8x512xbf16>,
    %295 = vector.extract_strided_slice %192 {offsets = [0, 137], sizes = [8, 512], strides = [1, 1]} : vector<8x768xf32> to vector<8x512xf32>
    %c17_143 = arith.constant 17 : index
    %c0_144 = arith.constant 0 : index
    %296 = vector.load %arg1[%c17_143, %c0_144] : memref<27x512xf32, #tpu.memory_space<vmem>>, vector<1x512xf32>
    %297 = vector.broadcast %296 : vector<1x512xf32> to vector<8x512xf32>
    %298 = arith.mulf %295, %297 : vector<8x512xf32>
    %299 = arith.truncf %298 : vector<8x512xf32> to vector<8x512xbf16>
    %c136 = arith.constant 136 : index
    %c0_145 = arith.constant 0 : index
    %300 = vector.load %arg8[%c136, %c0_145] : memref<216x512xbf16, #tpu.memory_space<vmem>>, vector<8x512xbf16>
    tpu.vector_store %arg8[%c136, %c0_145], %299 {strides = array<i32>} : memref<216x512xbf16, #tpu.memory_space<vmem>>, vector<8x512xbf16>,
    %301 = vector.extract_strided_slice %192 {offsets = [0, 183], sizes = [8, 512], strides = [1, 1]} : vector<8x768xf32> to vector<8x512xf32>
    %c18_146 = arith.constant 18 : index
    %c0_147 = arith.constant 0 : index
    %302 = vector.load %arg1[%c18_146, %c0_147] : memref<27x512xf32, #tpu.memory_space<vmem>>, vector<1x512xf32>
    %303 = vector.broadcast %302 : vector<1x512xf32> to vector<8x512xf32>
    %304 = arith.mulf %301, %303 : vector<8x512xf32>
    %305 = arith.truncf %304 : vector<8x512xf32> to vector<8x512xbf16>
    %c144 = arith.constant 144 : index
    %c0_148 = arith.constant 0 : index
    %306 = vector.load %arg8[%c144, %c0_148] : memref<216x512xbf16, #tpu.memory_space<vmem>>, vector<8x512xbf16>
    tpu.vector_store %arg8[%c144, %c0_148], %305 {strides = array<i32>} : memref<216x512xbf16, #tpu.memory_space<vmem>>, vector<8x512xbf16>,
    %307 = vector.extract_strided_slice %192 {offsets = [0, 184], sizes = [8, 512], strides = [1, 1]} : vector<8x768xf32> to vector<8x512xf32>
    %c19_149 = arith.constant 19 : index
    %c0_150 = arith.constant 0 : index
    %308 = vector.load %arg1[%c19_149, %c0_150] : memref<27x512xf32, #tpu.memory_space<vmem>>, vector<1x512xf32>
    %309 = vector.broadcast %308 : vector<1x512xf32> to vector<8x512xf32>
    %310 = arith.mulf %307, %309 : vector<8x512xf32>
    %311 = arith.truncf %310 : vector<8x512xf32> to vector<8x512xbf16>
    %c152 = arith.constant 152 : index
    %c0_151 = arith.constant 0 : index
    %312 = vector.load %arg8[%c152, %c0_151] : memref<216x512xbf16, #tpu.memory_space<vmem>>, vector<8x512xbf16>
    tpu.vector_store %arg8[%c152, %c0_151], %311 {strides = array<i32>} : memref<216x512xbf16, #tpu.memory_space<vmem>>, vector<8x512xbf16>,
    %313 = vector.extract_strided_slice %192 {offsets = [0, 185], sizes = [8, 512], strides = [1, 1]} : vector<8x768xf32> to vector<8x512xf32>
    %c20_152 = arith.constant 20 : index
    %c0_153 = arith.constant 0 : index
    %314 = vector.load %arg1[%c20_152, %c0_153] : memref<27x512xf32, #tpu.memory_space<vmem>>, vector<1x512xf32>
    %315 = vector.broadcast %314 : vector<1x512xf32> to vector<8x512xf32>
    %316 = arith.mulf %313, %315 : vector<8x512xf32>
    %317 = arith.truncf %316 : vector<8x512xf32> to vector<8x512xbf16>
    %c160 = arith.constant 160 : index
    %c0_154 = arith.constant 0 : index
    %318 = vector.load %arg8[%c160, %c0_154] : memref<216x512xbf16, #tpu.memory_space<vmem>>, vector<8x512xbf16>
    tpu.vector_store %arg8[%c160, %c0_154], %317 {strides = array<i32>} : memref<216x512xbf16, #tpu.memory_space<vmem>>, vector<8x512xbf16>,
    %319 = vector.extract_strided_slice %192 {offsets = [0, 191], sizes = [8, 512], strides = [1, 1]} : vector<8x768xf32> to vector<8x512xf32>
    %c21_155 = arith.constant 21 : index
    %c0_156 = arith.constant 0 : index
    %320 = vector.load %arg1[%c21_155, %c0_156] : memref<27x512xf32, #tpu.memory_space<vmem>>, vector<1x512xf32>
    %321 = vector.broadcast %320 : vector<1x512xf32> to vector<8x512xf32>
    %322 = arith.mulf %319, %321 : vector<8x512xf32>
    %323 = arith.truncf %322 : vector<8x512xf32> to vector<8x512xbf16>
    %c168 = arith.constant 168 : index
    %c0_157 = arith.constant 0 : index
    %324 = vector.load %arg8[%c168, %c0_157] : memref<216x512xbf16, #tpu.memory_space<vmem>>, vector<8x512xbf16>
    tpu.vector_store %arg8[%c168, %c0_157], %323 {strides = array<i32>} : memref<216x512xbf16, #tpu.memory_space<vmem>>, vector<8x512xbf16>,
    %325 = vector.extract_strided_slice %192 {offsets = [0, 192], sizes = [8, 512], strides = [1, 1]} : vector<8x768xf32> to vector<8x512xf32>
    %c22_158 = arith.constant 22 : index
    %c0_159 = arith.constant 0 : index
    %326 = vector.load %arg1[%c22_158, %c0_159] : memref<27x512xf32, #tpu.memory_space<vmem>>, vector<1x512xf32>
    %327 = vector.broadcast %326 : vector<1x512xf32> to vector<8x512xf32>
    %328 = arith.mulf %325, %327 : vector<8x512xf32>
    %329 = arith.truncf %328 : vector<8x512xf32> to vector<8x512xbf16>
    %c176 = arith.constant 176 : index
    %c0_160 = arith.constant 0 : index
    %330 = vector.load %arg8[%c176, %c0_160] : memref<216x512xbf16, #tpu.memory_space<vmem>>, vector<8x512xbf16>
    tpu.vector_store %arg8[%c176, %c0_160], %329 {strides = array<i32>} : memref<216x512xbf16, #tpu.memory_space<vmem>>, vector<8x512xbf16>,
    %331 = vector.extract_strided_slice %192 {offsets = [0, 193], sizes = [8, 512], strides = [1, 1]} : vector<8x768xf32> to vector<8x512xf32>
    %c23_161 = arith.constant 23 : index
    %c0_162 = arith.constant 0 : index
    %332 = vector.load %arg1[%c23_161, %c0_162] : memref<27x512xf32, #tpu.memory_space<vmem>>, vector<1x512xf32>
    %333 = vector.broadcast %332 : vector<1x512xf32> to vector<8x512xf32>
    %334 = arith.mulf %331, %333 : vector<8x512xf32>
    %335 = arith.truncf %334 : vector<8x512xf32> to vector<8x512xbf16>
    %c184 = arith.constant 184 : index
    %c0_163 = arith.constant 0 : index
    %336 = vector.load %arg8[%c184, %c0_163] : memref<216x512xbf16, #tpu.memory_space<vmem>>, vector<8x512xbf16>
    tpu.vector_store %arg8[%c184, %c0_163], %335 {strides = array<i32>} : memref<216x512xbf16, #tpu.memory_space<vmem>>, vector<8x512xbf16>,
    %337 = vector.extract_strided_slice %192 {offsets = [0, 199], sizes = [8, 512], strides = [1, 1]} : vector<8x768xf32> to vector<8x512xf32>
    %c24_164 = arith.constant 24 : index
    %c0_165 = arith.constant 0 : index
    %338 = vector.load %arg1[%c24_164, %c0_165] : memref<27x512xf32, #tpu.memory_space<vmem>>, vector<1x512xf32>
    %339 = vector.broadcast %338 : vector<1x512xf32> to vector<8x512xf32>
    %340 = arith.mulf %337, %339 : vector<8x512xf32>
    %341 = arith.truncf %340 : vector<8x512xf32> to vector<8x512xbf16>
    %c192 = arith.constant 192 : index
    %c0_166 = arith.constant 0 : index
    %342 = vector.load %arg8[%c192, %c0_166] : memref<216x512xbf16, #tpu.memory_space<vmem>>, vector<8x512xbf16>
    tpu.vector_store %arg8[%c192, %c0_166], %341 {strides = array<i32>} : memref<216x512xbf16, #tpu.memory_space<vmem>>, vector<8x512xbf16>,
    %343 = vector.extract_strided_slice %192 {offsets = [0, 200], sizes = [8, 512], strides = [1, 1]} : vector<8x768xf32> to vector<8x512xf32>
    %c25_167 = arith.constant 25 : index
    %c0_168 = arith.constant 0 : index
    %344 = vector.load %arg1[%c25_167, %c0_168] : memref<27x512xf32, #tpu.memory_space<vmem>>, vector<1x512xf32>
    %345 = vector.broadcast %344 : vector<1x512xf32> to vector<8x512xf32>
    %346 = arith.mulf %343, %345 : vector<8x512xf32>
    %347 = arith.truncf %346 : vector<8x512xf32> to vector<8x512xbf16>
    %c200 = arith.constant 200 : index
    %c0_169 = arith.constant 0 : index
    %348 = vector.load %arg8[%c200, %c0_169] : memref<216x512xbf16, #tpu.memory_space<vmem>>, vector<8x512xbf16>
    tpu.vector_store %arg8[%c200, %c0_169], %347 {strides = array<i32>} : memref<216x512xbf16, #tpu.memory_space<vmem>>, vector<8x512xbf16>,
    %349 = vector.extract_strided_slice %192 {offsets = [0, 201], sizes = [8, 512], strides = [1, 1]} : vector<8x768xf32> to vector<8x512xf32>
    %c26_170 = arith.constant 26 : index
    %c0_171 = arith.constant 0 : index
    %350 = vector.load %arg1[%c26_170, %c0_171] : memref<27x512xf32, #tpu.memory_space<vmem>>, vector<1x512xf32>
    %351 = vector.broadcast %350 : vector<1x512xf32> to vector<8x512xf32>
    %352 = arith.mulf %349, %351 : vector<8x512xf32>
    %353 = arith.truncf %352 : vector<8x512xf32> to vector<8x512xbf16>
    %c208 = arith.constant 208 : index
    %c0_172 = arith.constant 0 : index
    %354 = vector.load %arg8[%c208, %c0_172] : memref<216x512xbf16, #tpu.memory_space<vmem>>, vector<8x512xbf16>
    tpu.vector_store %arg8[%c208, %c0_172], %353 {strides = array<i32>} : memref<216x512xbf16, #tpu.memory_space<vmem>>, vector<8x512xbf16>,
    %c0_173 = arith.constant 0 : index
    %c0_174 = arith.constant 0 : index
    %355 = vector.load %arg8[%c0_173, %c0_174] : memref<216x512xbf16, #tpu.memory_space<vmem>>, vector<216x512xbf16>
    %c0_175 = arith.constant 0 : index
    %c0_176 = arith.constant 0 : index
    %356 = vector.load %arg5[%c0_175, %c0_176] : memref<8x216xbf16, #tpu.memory_space<vmem>>, vector<8x216xbf16>
    %cst_177 = arith.constant dense<0.000000e+00> : vector<8x512xf32>
    %357 = tpu.matmul %356, %355, %cst_177 {dimension_numbers = #tpu.dot_dimension_numbers<[1], [0], [0], [1], [0, 0, 1, 1], [], []>} : vector<8x216xbf16>, vector<216x512xbf16>, vector<8x512xf32> -> vector<8x512xf32>
    %c0_178 = arith.constant 0 : index
    %c0_179 = arith.constant 0 : index
    %358 = vector.load %arg6[%c0_178, %c0_179] : memref<8x1xf32, #tpu.memory_space<vmem>>, vector<8x1xf32>
    %359 = vector.broadcast %358 : vector<8x1xf32> to vector<8x512xf32>
    %360 = arith.addf %357, %359 : vector<8x512xf32>
    %cst_180 = arith.constant dense<0.000000e+00> : vector<8xf32>
    %361 = vector.multi_reduction <add>, %360, %cst_180 [1] : vector<8x512xf32> to vector<8xf32>
    %362 = vector.shape_cast %361 : vector<8xf32> to vector<8x1xf32>
    %cst_181 = arith.constant 5.120000e+02 : f32
    %363 = vector.broadcast %cst_181 : f32 to vector<8x1xf32>
    %364 = arith.divf %362, %363 : vector<8x1xf32>
    %365 = vector.broadcast %364 : vector<8x1xf32> to vector<8x512xf32>
    %366 = arith.subf %360, %365 : vector<8x512xf32>
    %367 = arith.mulf %366, %366 : vector<8x512xf32>
    %cst_182 = arith.constant dense<0.000000e+00> : vector<8xf32>
    %368 = vector.multi_reduction <add>, %367, %cst_182 [1] : vector<8x512xf32> to vector<8xf32>
    %369 = vector.shape_cast %368 : vector<8xf32> to vector<8x1xf32>
    %cst_183 = arith.constant 5.120000e+02 : f32
    %370 = vector.broadcast %cst_183 : f32 to vector<8x1xf32>
    %371 = arith.divf %369, %370 : vector<8x1xf32>
    %cst_184 = arith.constant 9.99999974E-6 : f32
    %372 = vector.broadcast %cst_184 : f32 to vector<8x1xf32>
    %373 = arith.addf %371, %372 : vector<8x1xf32>
    %374 = math.rsqrt %373 : vector<8x1xf32>
    %375 = vector.broadcast %374 : vector<8x1xf32> to vector<8x512xf32>
    %376 = arith.mulf %366, %375 : vector<8x512xf32>
    %cst_185 = arith.constant 0.000000e+00 : f32
    %377 = vector.broadcast %cst_185 : f32 to vector<8x512xf32>
    %378 = arith.maximumf %376, %377 : vector<8x512xf32>
    %c0_186 = arith.constant 0 : index
    %c0_187 = arith.constant 0 : index
    %c0_188 = arith.constant 0 : index
    %379 = vector.load %arg7[%c0_186, %c0_187, %c0_188] : memref<1x8x512xf32, #tpu.memory_space<vmem>>, vector<1x8x512xf32>
    %380 = vector.shape_cast %379 : vector<1x8x512xf32> to vector<8x512xf32>
    %381 = vector.shape_cast %378 : vector<8x512xf32> to vector<1x8x512xf32>
    tpu.vector_store %arg7[%c0_186, %c0_187, %c0_188], %381 {strides = array<i32>} : memref<1x8x512xf32, #tpu.memory_space<vmem>>, vector<1x8x512xf32>,
    return
  }
  func.func @transform_0(%arg0: i32) -> (i32, i32) {
    %c0_i32 = arith.constant 0 : i32
    %c0_i32_0 = arith.constant 0 : i32
    %c0_i32_1 = arith.constant 0 : i32
    return %c0_i32, %c0_i32_0 : i32, i32
  }
  func.func @transform_1(%arg0: i32) -> (i32, i32, i32) {
    %c0_i32 = arith.constant 0 : i32
    %c0_i32_0 = arith.constant 0 : i32
    %c0_i32_1 = arith.constant 0 : i32
    return %arg0, %c0_i32, %c0_i32_0 : i32, i32, i32
  }
  func.func @transform_2(%arg0: i32) -> (i32, i32) {
    %c0_i32 = arith.constant 0 : i32
    %c0_i32_0 = arith.constant 0 : i32
    %c0_i32_1 = arith.constant 0 : i32
    return %c0_i32, %c0_i32_0 : i32, i32
  }
  func.func @transform_3(%arg0: i32) -> (i32, i32) {
    %c0_i32 = arith.constant 0 : i32
    %c0_i32_0 = arith.constant 0 : i32
    %c0_i32_1 = arith.constant 0 : i32
    return %c0_i32, %c0_i32_0 : i32, i32
  }
  func.func @transform_4(%arg0: i32) -> (i32, i32) {
    %c0_i32 = arith.constant 0 : i32
    %c0_i32_0 = arith.constant 0 : i32
    %c0_i32_1 = arith.constant 0 : i32
    return %c0_i32, %c0_i32_0 : i32, i32
  }
  func.func @transform_5(%arg0: i32) -> (i32, i32) {
    %c0_i32 = arith.constant 0 : i32
    %c0_i32_0 = arith.constant 0 : i32
    %c0_i32_1 = arith.constant 0 : i32
    return %c0_i32, %c0_i32_0 : i32, i32
  }
  func.func @transform_6(%arg0: i32) -> (i32, i32, i32) {
    %c0_i32 = arith.constant 0 : i32
    %c0_i32_0 = arith.constant 0 : i32
    %c0_i32_1 = arith.constant 0 : i32
    return %arg0, %c0_i32, %c0_i32_0 : i32, i32, i32
  }
}

</mosaic_0001>

<bundles_post_ra>
// kernel: tpu_custom_call.1
= control target key start
LH: loop header
LB: loop body
LE: loop exit
PB: predicated region body
PF: predicated region fallthrough
CT: control target
= control target key end

     0   :  { %s8899_s0 = inlined_call_operand.hbm [shape: f32[27,512], index: 0, kind: input, shape index: {}]   ;;  %s8900_s1 = inlined_call_operand.vmem [shape: bf16[2,4,512], index: 1, kind: input, shape index: {}]   ;;  %s8901_s2 = inlined_call_operand.hbm [shape: bf16[8,108], index: 2, kind: input, shape index: {}]   ;;  %s8902_s3 = inlined_call_operand.vmem [shape: f32[8,1], index: 3, kind: input, shape index: {}]   ;;  %s8903_s4 = inlined_call_operand.vmem [shape: bf16[8,216], index: 4, kind: input, shape index: {}]   ;;  %s8904_s5 = inlined_call_operand.vmem [shape: f32[8,1], index: 5, kind: input, shape index: {}]   ;;  %s8905_s6 = inlined_call_operand.hbm [shape: f32[2,8,512], index: 6, kind: output, shape index: {}]  }
   0x1   :  { %9038 = sst [smem:[#allocation90_spill]] %s8899_s0 }
   0x2   :  { %9039 = sst [smem:[#allocation91_spill]] %s8900_s1 }
   0x3   :  { %11 = vsyncpa [#allocation4], 0 }
   0x4   :  { %12 = vsyncpa [#allocation7], 0 }
   0x5   :  { %13 = vsyncpa [#allocation5], 0 }
   0x6   :  { %15 = vsyncpa [#allocation5 + $0x1], 0  ;;  %s5937_s21 = smov 0   ;;  %s5939_s22 = smov 0  }
   0x7   :  { %s5941_s23 = smov 0   ;;  %s5943_s24 = smov 0  }
   0x8 LB: > { %s5958_s25 = sadd.s32 4294967295, %s5877_s24   ;;  %s5190_s26 = sadd.s32 4294967294, %s5877_s24   ;;  %s5877_s24 = sphi %s5943_s24, %s9392_s24   ;;  %s5873_s23 = sphi %s5941_s23, %s9391_s23   ;;  %s5869_s22 = sphi %s5939_s22, %s9390_s22   ;;  %s5865_s21 = sphi %s5937_s21, %s9389_s21  }
   0x9   : > { %s5962_s27 = sadd.s32 1, %s5877_s24   ;;  %s159_s28 = sadd.s32 1, %s5873_s23 }
   0xa   : > { %s156_s29 = ssub.s32 %s5877_s24, %s5962_s27  ;;  %p169_p0 = scmp.ne.s32.totalorder %s5873_s23, %s5869_s22 }
   0xb   : > { %p157_p1 = scmp.eq.s32.totalorder %s156_s29, 0  ;;  %p170_p2 = scmp.eq.s32.totalorder %s5958_s25, 1 }
   0xc   : > { %p175_p3 = scmp.ne.s32.totalorder %s5869_s22, %s5865_s21  ;;  %p176_p4 = scmp.eq.s32.totalorder %s5190_s26, 1 }
   0xd   : > { %s5973_s30 = scalar_select %p157_p1, %s5873_s23, %s159_s28  }
   0xe   : > { %p5975_p5 = por %p170_p2, %p169_p0  ;;  %p5979_p6 = por %p176_p4, %p175_p3 }
   0xf   : > { %p5191_p7 = scmp.ge.s32.totalorder %s5877_s24, 1  ;;  %p183_p8 = scmp.lt.s32.totalorder %s5877_s24, 3 }
  0x10   : > { %s9040_s7 = scalar_select %p5975_p5, 1, 0 }
  0x11   : > { %s9041_s8 = scalar_select %p5979_p6, 1, 0 }
  0x12   : > { %p8906_p9 = scmp.eq.s32.totalorder %s5958_s25, 0  ;;  %p5986_p10 = pnand %p5191_p7, %p183_p8 }
  0x13   : > { %s5879_s10 = smov [#allocation3]   ;;  %s5880_s13 = smov [#allocation6]  }
  0x14   : > { %s9042_s9 = scalar_select %p5986_p10, 1, 0 }
  0x15   : > { %s195_s11 = sshll.u32 %s5879_s10, 4  ;;  %p5632_p11 = pneg %p5986_p10  ;;  %s196_s11 = int_to_ptr.vmem [resolvable:$true] %s195_s11 }
  0x16   : > { %s209_s14 = sshll.u32 %s5880_s13, 4  ;;  %s9044_s0 = sld [smem:[#allocation90_spill]]  ;;  %s5998_s14 = int_to_ptr.vmem [resolvable:$true] %s209_s14 }
  0x17   : > { %p5994_p12 = pnand %p8906_p9, %p5632_p11 }
  0x19   : > { %p5753_p0 = pneg %p5994_p12 }
  0x1c   : > { %s5751_s17 = scalar_lea.hbm %s9044_s0, 2048 }
  0x1d   : > { %p5752_p13 = scmp.ne.s32.totalorder %s9044_s0, %s5751_s17  ;;  %p5758_p3 = scmp.lt.u32.totalorder %s5751_s17, %s9044_s0 }
  0x1f   : > { %p5754_p1 = pnand %p5753_p0, %p5752_p13 }
  0x21   : > { %p5755_p2 = pneg %p5754_p1 }
  0x23   : > { %p5760_p4 = pnand %p5758_p3, %p5755_p2 }
  0x25   : > { %5763 = shalt.err (!%p5760_p4)
}
  0x26   : > { %s5764_s28 = scalar_lea.vmem %s196_s11, 2048  ;;  %p5772_p9 = scmp.lt.s32.totalorder %s196_s11, %s196_s11 }
  0x27   : > { %p5765_p7 = scmp.ne.s32.totalorder %s196_s11, %s5764_s28  ;;  %p5773_p6 = scmp.lt.s32.totalorder %s5764_s28, %s5764_s28 }
  0x29   : > { %p5767_p8 = pnand %p5765_p7, %p5753_p0  ;;  %p5774_p5 = por %p5773_p6, %p5772_p9 }
  0x2b   : > { %p5768_p11 = pneg %p5767_p8 }
  0x2d   : > { %p5775_p10 = pnand %p5774_p5, %p5768_p11 }
  0x2f   : > { %5778 = shalt.err (!%p5775_p10)
}
  0x30   : > { %s5881_s29 = smov 512   ;;  %s5882_s10 = smov 32  }
  0x31   : > { %5635 = dma.hbm_to_vmem [thread:$0]  (!%p5994_p12), %s9044_s0, 2048, %s196_s11, [#allocation4], %s5881_s29, %s5881_s29, %s5882_s10  }
  0x32   : > { %s5779_s18 = scalar_lea.hbm %s8901_s2, 64 }
  0x33   : > { %p5780_p13 = scmp.ne.s32.totalorder %s8901_s2, %s5779_s18  ;;  %p5786_p9 = scmp.lt.u32.totalorder %s5779_s18, %s8901_s2 }
  0x35   : > { %p5782_p5 = pnand %p5780_p13, %p5753_p0 }
  0x37   : > { %p5783_p6 = pneg %p5782_p5 }
  0x39   : > { %p5788_p10 = pnand %p5786_p9, %p5783_p6 }
  0x3b   : > { %5791 = shalt.err (!%p5788_p10)
}
  0x3c   : > { %s5792_s11 = scalar_lea.vmem %s5998_s14, 64  ;;  %p5800_p4 = scmp.lt.s32.totalorder %s5998_s14, %s5998_s14 }
  0x3d   : > { %p5793_p1 = scmp.ne.s32.totalorder %s5998_s14, %s5792_s11  ;;  %p5801_p7 = scmp.lt.s32.totalorder %s5792_s11, %s5792_s11 }
  0x3f   : > { %p5795_p2 = pnand %p5793_p1, %p5753_p0  ;;  %p5802_p8 = por %p5801_p7, %p5800_p4 }
  0x41   : > { %p5796_p3 = pneg %p5795_p2 }
  0x43   : > { %p5803_p11 = pnand %p5802_p8, %p5796_p3 }
  0x45   : > { %5806 = shalt.err (!%p5803_p11)
}
  0x46   : > { %5638 = dma.hbm_to_vmem [thread:$0]  (!%p5994_p12), %s8901_s2, 64, %s5998_s14, [#allocation7]  }
  0x47   : > { %p9045_p13 = scmp.ne.s32.totalorder %s9042_s9, 0 }
  0x49   : > { %239 = sbr.rel (%p9045_p13) target bundleno = 2055 (0x807), region = 44 }
  0x50   : > { %p9046_p5 = scmp.eq.s32.totalorder %s5958_s25, 0 }
  0x52   : > { %5852 = dma.done.wait (%p9046_p5), [#allocation4], 2048   ;;  %p9047_p0 = pmov %p9046_p5 }
  0x54   : > { %5854 = vsyncadd (%p9047_p0), [#allocation4], 4294965248  ;;  %p9048_p6 = pmov %p9047_p0 }
  0x55   : > { %p9049_p9 = pmov %p9047_p0 }
  0x56   : > { %5856 = dma.done.wait (%p9048_p6), [#allocation7], 64  }
  0x57   : > { %5858 = vsyncadd (%p9049_p9), [#allocation7], 4294967232  ;;  %v290_v0 = vlaneseq  ;;  %v366_v6 = vld [vmem:[#allocation3 + $0x1] ss:$8 sm:$0xf]  ;;  %s8943_s9 = smov 56  }
  0x58   : > { %v523_v11 = vld [vmem:[#allocation3 + $0x3] ss:$8 sm:$0xf]  ;;  %s8947_s12 = smov 63   ;;  %s8928_s14 = smov 55   ;;  %vm392_vm0 = vcmask 457728  }
  0x59   : > { %v291_v1 = vshrl.u32 %v290_v0, 7  ;;  %v288_v16 = vld [vmem:[#allocation3] ss:$8 sm:$0xf]  ;;  %s8945_s13 = smov 57   ;;  %s8939_s15 = smov 65  }
  0x5a   : > { %v446_v21 = vld [vmem:[#allocation3 + $0x2] ss:$8 sm:$0xf]  ;;  %v680_v26 = vld [vmem:[#allocation3 + $0x5] ss:$8 sm:$0xf] }
  0x5b   : > { %v6057_v2 = vsub.s32 2, %v291_v1  ;;  %v6059_v3 = vsub.s32 0, %v291_v1  ;;  %v6061_v4 = vsub.s32 3, %v291_v1  ;;  %v6063_v5 = vsub.s32 1, %v291_v1  ;;  %s8933_s16 = smov 72   ;;  %s8941_s17 = smov 64  }
  0x5c   : > { %v837_v31 = vld [vmem:[#allocation3 + $0x7] ss:$8 sm:$0xf]  ;;  %v603_v36 = vld [vmem:[#allocation3 + $0x4] ss:$8 sm:$0xf] }
  0x5d   : > { %9050 = vst [vmem:[#allocation12_spill] sm:$0xff] %v6057_v2  ;;  %9051 = vst [vmem:[#allocation13_spill] sm:$0xff] %v6059_v3  ;;  %v379_v7 = vrot.slane %v366_v6, %v6057_v2  ;;  %v371_v8 = vrot.slane %v366_v6, %v6059_v3  ;;  %v383_v9 = vrot.slane %v366_v6, %v6061_v4  ;;  %v760_v41 = vld [vmem:[#allocation3 + $0x6] ss:$8 sm:$0xf]  ;;  %s8935_s18 = smov 71  }
  0x5e   : > { %9052 = vst [vmem:[#allocation14_spill] sm:$0xff] %v6061_v4  ;;  %9053 = vst [vmem:[#allocation15_spill] sm:$0xff] %v6063_v5  ;;  %v375_v10 = vrot.slane %v366_v6, %v6063_v5  ;;  %v532_v12 = vrot.slane %v523_v11, %v6063_v5  ;;  %v528_v13 = vrot.slane %v523_v11, %v6059_v3  ;;  %v994_v46 = vld [vmem:[#allocation3 + $0x21] ss:$8 sm:$0xf]  ;;  %s8909_s19 = smov 119  }
  0x5f   : > { %388 = vrot.lane.b32.xlu1 %v379_v7, %s8943_s9  ;;  %384 = vrot.lane.b32.xlu0 %v371_v8, %s8943_s9  ;;  %v540_v14 = vrot.slane %v523_v11, %v6061_v4  ;;  %v536_v15 = vrot.slane %v523_v11, %v6057_v2  ;;  %v297_v17 = vrot.slane %v288_v16, %v6063_v5  ;;  %v1151_v51 = vld [vmem:[#allocation3 + $0x23] ss:$8 sm:$0xf]  ;;  %s8913_s20 = smov 121   ;;  %s8931_s26 = smov 73   ;;  %vm314_vm1 = vcmask 449536  }
  0x60   : > { %v293_v18 = vrot.slane %v288_v16, %v6059_v3  ;;  %v305_v19 = vrot.slane %v288_v16, %v6061_v4  ;;  %v301_v20 = vrot.slane %v288_v16, %v6057_v2  ;;  %v455_v22 = vrot.slane %v446_v21, %v6063_v5  ;;  %v917_v56 = vld [vmem:[#allocation3 + $0x20] ss:$8 sm:$0xf]  ;;  %v1074_v61 = vld [vmem:[#allocation3 + $0x22] ss:$8 sm:$0xf] }
  0x61   : > { %v451_v23 = vrot.slane %v446_v21, %v6059_v3  ;;  %v463_v24 = vrot.slane %v446_v21, %v6061_v4  ;;  %v459_v25 = vrot.slane %v446_v21, %v6057_v2  ;;  %v689_v27 = vrot.slane %v680_v26, %v6063_v5  ;;  %s8911_s28 = smov 120   ;;  %v1432_v6 = vld [vmem:[#allocation3 + $0x27] ss:$8 sm:$0xf]  ;;  %s8919_s11 = smov 7  }
  0x62   : > { %v685_v28 = vrot.slane %v680_v26, %v6059_v3  ;;  %v697_v29 = vrot.slane %v680_v26, %v6061_v4  ;;  %v693_v30 = vrot.slane %v680_v26, %v6057_v2  ;;  %v846_v32 = vrot.slane %v837_v31, %v6063_v5  ;;  %v1231_v11 = vld [vmem:[#allocation3 + $0x24] ss:$8 sm:$0xf]  ;;  %s8915_s29 = smov 127   ;;  %s8917_s10 = smov 1  }
  0x63   : > { %390 = vrot.lane.b32.xlu1 %v383_v9, %s8943_s9  ;;  %386 = vrot.lane.b32.xlu0 %v375_v10, %s8943_s9  ;;  %v842_v33 = vrot.slane %v837_v31, %v6059_v3  ;;  %v854_v34 = vrot.slane %v837_v31, %v6061_v4  ;;  %v850_v35 = vrot.slane %v837_v31, %v6057_v2  ;;  %v1355_v16 = vld [vmem:[#allocation3 + $0x26] ss:$8 sm:$0xf]  ;;  %v1589_v21 = vld [vmem:[#allocation3 + $0x41] ss:$8 sm:$0xf] }
  0x64   : > { %v612_v37 = vrot.slane %v603_v36, %v6063_v5  ;;  %v608_v38 = vrot.slane %v603_v36, %v6059_v3  ;;  %v620_v39 = vrot.slane %v603_v36, %v6061_v4  ;;  %v616_v40 = vrot.slane %v603_v36, %v6057_v2  ;;  %p273_p12 = scmp.lt.s32.totalorder %s5958_s25, 1  ;;  %s9054_s1 = sld [smem:[#allocation91_spill]] }
  0x65   : > { %v769_v42 = vrot.slane %v760_v41, %v6063_v5  ;;  %v765_v43 = vrot.slane %v760_v41, %v6059_v3  ;;  %v777_v44 = vrot.slane %v760_v41, %v6061_v4  ;;  %v773_v45 = vrot.slane %v760_v41, %v6057_v2  ;;  %s9076_s0 = smov 57   ;;  %p9387_p1 = scmp.ne.s32.totalorder %s9040_s7, 0 }
  0x66   : > { %v1003_v47 = vrot.slane %v994_v46, %v6063_v5  ;;  %v999_v48 = vrot.slane %v994_v46, %v6059_v3  ;;  %v1011_v49 = vrot.slane %v994_v46, %v6061_v4  ;;  %v1007_v50 = vrot.slane %v994_v46, %v6057_v2 }
  0x67   : > { %543 = vrot.lane.b32.xlu1 %v532_v12, %s8947_s12  ;;  %541 = vrot.lane.b32.xlu0 %v528_v13, %s8947_s12  ;;  %v1160_v52 = vrot.slane %v1151_v51, %v6063_v5  ;;  %v1156_v53 = vrot.slane %v1151_v51, %v6059_v3  ;;  %v1168_v54 = vrot.slane %v1151_v51, %v6061_v4  ;;  %vm549_vm2 = vcmask 515072  }
  0x68   : > { %v1164_v55 = vrot.slane %v1151_v51, %v6057_v2  ;;  %v926_v57 = vrot.slane %v917_v56, %v6063_v5  ;;  %v922_v58 = vrot.slane %v917_v56, %v6059_v3  ;;  %v934_v59 = vrot.slane %v917_v56, %v6061_v4 }
  0x69   : > { %v930_v60 = vrot.slane %v917_v56, %v6057_v2  ;;  %v1083_v62 = vrot.slane %v1074_v61, %v6063_v5  ;;  %v1079_v63 = vrot.slane %v1074_v61, %v6059_v3  ;;  %v1091_v0 = vrot.slane %v1074_v61, %v6061_v4 }
  0x6a   : > { %v1087_v1 = vrot.slane %v1074_v61, %v6057_v2  ;;  %v1441_v7 = vrot.slane %v1432_v6, %v6063_v5  ;;  %v1437_v8 = vrot.slane %v1432_v6, %v6059_v3  ;;  %v1449_v9 = vrot.slane %v1432_v6, %v6061_v4 }
  0x6b   : > { %547 = vrot.lane.b32.xlu1 %v540_v14, %s8947_s12  ;;  %545 = vrot.lane.b32.xlu0 %v536_v15, %s8947_s12  ;;  %v1445_v10 = vrot.slane %v1432_v6, %v6057_v2  ;;  %v1240_v12 = vrot.slane %v1231_v11, %v6063_v5  ;;  %v1236_v13 = vrot.slane %v1231_v11, %v6059_v3  ;;  %v2050_v6 = vld [vmem:[#allocation3 + $0x47] ss:$8 sm:$0xf]  ;;  %vm472_vm3 = vcmask 465920  }
  0x6c   : > { %v1248_v14 = vrot.slane %v1231_v11, %v6061_v4  ;;  %v1244_v15 = vrot.slane %v1231_v11, %v6057_v2  ;;  %vm594_vm4 = vcmask 531456   ;;  %vm629_vm5 = vcmask 523264  }
  0x6d   : > { %vm437_vm6 = vcmask 588800   ;;  %vm514_vm7 = vcmask 580608   ;;  %vm8925_vm8 = vcmask 973824   ;;  %vm357_vm9 = vcmask 596992  }
  0x6e   : > { %vm1177_vm10 = vcmask 990208   ;;  %vm8930_vm11 = vcmask 982016   ;;  %vm1257_vm12 = vcmask 1039360   ;;  %vm9018_vm13 = vcmask 56320  }
  0x6f   : > { %308 = vrot.lane.b32.xlu1 %v297_v17, %s8928_s14  ;;  %306 = vrot.lane.b32.xlu0 %v293_v18, %s8928_s14  ;;  %v1364_v17 = vrot.slane %v1355_v16, %v6063_v5  ;;  %v1360_v18 = vrot.slane %v1355_v16, %v6059_v3  ;;  %vm9017_vm14 = vcmask 7168   ;;  %vm8937_vm15 = vcmask 72704  }
  0x73   : > { %312 = vrot.lane.b32.xlu1 %v305_v19, %s8928_s14  ;;  %310 = vrot.lane.b32.xlu0 %v301_v20, %s8928_s14  ;;  %v1372_v19 = vrot.slane %v1355_v16, %v6061_v4  ;;  %v1368_v20 = vrot.slane %v1355_v16, %v6057_v2 }
  0x77   : > { %466 = vrot.lane.b32.xlu1 %v455_v22, %s8945_s13  ;;  %464 = vrot.lane.b32.xlu0 %v451_v23, %s8945_s13 }
  0x7b   : > { %470 = vrot.lane.b32.xlu1 %v463_v24, %s8945_s13  ;;  %468 = vrot.lane.b32.xlu0 %v459_v25, %s8945_s13  ;;  %v1598_v24 = vrot.slane %v1589_v21, %v6063_v5  ;;  %v1594_v25 = vrot.slane %v1589_v21, %v6059_v3 }
  0x7f   : > { %700 = vrot.lane.b32.xlu1 %v689_v27, %s8939_s15  ;;  %698 = vrot.lane.b32.xlu0 %v685_v28, %s8939_s15  ;;  %v1606_v28 = vrot.slane %v1589_v21, %v6061_v4 }
  0x83   : > { %704 = vrot.lane.b32.xlu1 %v697_v29, %s8939_s15  ;;  %702 = vrot.lane.b32.xlu0 %v693_v30, %s8939_s15  ;;  %v1602_v29 = vrot.slane %v1589_v21, %v6057_v2  ;;  %v1744_v30 = vld [vmem:[#allocation3 + $0x43] ss:$8 sm:$0xf] }
  0x87   : > { %857 = vrot.lane.b32.xlu1 %v846_v32, %s8933_s16  ;;  %855 = vrot.lane.b32.xlu0 %v842_v33, %s8933_s16  ;;  %v1753_v33 = vrot.slane %v1744_v30, %v6063_v5 }
  0x8b   : > { %861 = vrot.lane.b32.xlu1 %v854_v34, %s8933_s16  ;;  %859 = vrot.lane.b32.xlu0 %v850_v35, %s8933_s16  ;;  %v1749_v34 = vrot.slane %v1744_v30, %v6059_v3 }
  0x8f   : > { %623 = vrot.lane.b32.xlu1 %v612_v37, %s8941_s17  ;;  %621 = vrot.lane.b32.xlu0 %v608_v38, %s8941_s17  ;;  %v1761_v37 = vrot.slane %v1744_v30, %v6061_v4  ;;  %v1757_v38 = vrot.slane %v1744_v30, %v6057_v2 }
  0x93   : > { %627 = vrot.lane.b32.xlu1 %v620_v39, %s8941_s17  ;;  %625 = vrot.lane.b32.xlu0 %v616_v40, %s8941_s17  ;;  %v1512_v39 = vld [vmem:[#allocation3 + $0x40] ss:$8 sm:$0xf] }
  0x94   : > { %v1529_v46 = vrot.slane %v1512_v39, %v6061_v4 }
  0x97   : > { %780 = vrot.lane.b32.xlu1 %v769_v42, %s8935_s18  ;;  %778 = vrot.lane.b32.xlu0 %v765_v43, %s8935_s18  ;;  %v1521_v42 = vrot.slane %v1512_v39, %v6063_v5  ;;  %v1517_v43 = vrot.slane %v1512_v39, %v6059_v3 }
  0x9b   : > { %784 = vrot.lane.b32.xlu1 %v777_v44, %s8935_s18  ;;  %782 = vrot.lane.b32.xlu0 %v773_v45, %s8935_s18 }
  0x9f   : > { %1014 = vrot.lane.b32.xlu1 %v1003_v47, %s8909_s19  ;;  %1012 = vrot.lane.b32.xlu0 %v999_v48, %s8909_s19  ;;  %v1525_v47 = vrot.slane %v1512_v39, %v6057_v2  ;;  %v1669_v48 = vld [vmem:[#allocation3 + $0x42] ss:$8 sm:$0xf] }
  0xa0   : > { %v1678_v51 = vrot.slane %v1669_v48, %v6063_v5  ;;  %v1682_v56 = vrot.slane %v1669_v48, %v6057_v2 }
  0xa3   : > { %1018 = vrot.lane.b32.xlu1 %v1011_v49, %s8909_s19  ;;  %1016 = vrot.lane.b32.xlu0 %v1007_v50, %s8909_s19  ;;  %s8926_s19 = smov 9  }
  0xa7   : > { %1171 = vrot.lane.b32.xlu1 %v1160_v52, %s8913_s20  ;;  %1169 = vrot.lane.b32.xlu0 %v1156_v53, %s8913_s20  ;;  %v1674_v52 = vrot.slane %v1669_v48, %v6059_v3 }
  0xab   : > { %1175 = vrot.lane.b32.xlu1 %v1168_v54, %s8913_s20  ;;  %1173 = vrot.lane.b32.xlu0 %v1164_v55, %s8913_s20  ;;  %v1686_v55 = vrot.slane %v1669_v48, %v6061_v4  ;;  %s274_s20 = scalar_select %p273_p12, %s5958_s25, 1 }
  0xaf   : > { %937 = vrot.lane.b32.xlu1 %v926_v57, %s8931_s26  ;;  %935 = vrot.lane.b32.xlu0 %v922_v58, %s8931_s26  ;;  %v1897_v57 = vld [vmem:[#allocation3 + $0x45] ss:$8 sm:$0xf] }
  0xb0   : > { %v1902_v61 = vrot.slane %v1897_v57, %v6059_v3 }
  0xb3   : > { %941 = vrot.lane.b32.xlu1 %v934_v59, %s8931_s26  ;;  %939 = vrot.lane.b32.xlu0 %v930_v60, %s8931_s26  ;;  %v1906_v60 = vrot.slane %v1897_v57, %v6063_v5 }
  0xb7   : > { %1094 = vrot.lane.b32.xlu1 %v1083_v62, %s8911_s28  ;;  %1092 = vrot.lane.b32.xlu0 %v1079_v63, %s8911_s28 }
  0xbb   : > { %1098 = vrot.lane.b32.xlu1 %v1091_v0, %s8911_s28  ;;  %1096 = vrot.lane.b32.xlu0 %v1087_v1, %s8911_s28  ;;  %s8921_s28 = smov 8   ;;  %v1914_v0 = vrot.slane %v1897_v57, %v6061_v4  ;;  %v1910_v1 = vrot.slane %v1897_v57, %v6057_v2 }
  0xbf   : > { %1452 = vrot.lane.b32.xlu1 %v1441_v7, %s8919_s11  ;;  %1450 = vrot.lane.b32.xlu0 %v1437_v8, %s8919_s11 }
  0xc3   : > { %1456 = vrot.lane.b32.xlu1 %v1449_v9, %s8919_s11  ;;  %1454 = vrot.lane.b32.xlu0 %v1445_v10, %s8919_s11  ;;  %v2059_v9 = vrot.slane %v2050_v6, %v6063_v5  ;;  %v2055_v10 = vrot.slane %v2050_v6, %v6059_v3  ;;  %s9058_s11 = smov 1  }
  0xc7   : > { %1251 = vrot.lane.b32.xlu1 %v1240_v12, %s8915_s29  ;;  %1249 = vrot.lane.b32.xlu0 %v1236_v13, %s8915_s29  ;;  %v2067_v13 = vrot.slane %v2050_v6, %v6061_v4 }
  0xcb   : > { %1255 = vrot.lane.b32.xlu1 %v1248_v14, %s8915_s29  ;;  %1253 = vrot.lane.b32.xlu0 %v1244_v15, %s8915_s29  ;;  %v2063_v14 = vrot.slane %v2050_v6, %v6057_v2  ;;  %v1822_v15 = vld [vmem:[#allocation3 + $0x44] ss:$8 sm:$0xf]  ;;  %s5460_s29 = sshll.u32 %s274_s20, 3  ;;  %s9055_s20 = smov 8  }
  0xcf   : > { %1375 = vrot.lane.b32.xlu1 %v1364_v17, %s8917_s10  ;;  %1373 = vrot.lane.b32.xlu0 %v1360_v18, %s8917_s10  ;;  %v1831_v18 = vrot.slane %v1822_v15, %v6063_v5 }
  0xd1   : > { %v6183_v22 = vpop.permute.xlu1 %388  ;;  %v6185_v23 = vpop.permute.xlu0 %384 }
  0xd3   : > { %1379 = vrot.lane.b32.xlu1 %v1372_v19, %s8917_s10  ;;  %1377 = vrot.lane.b32.xlu0 %v1368_v20, %s8917_s10  ;;  %v1827_v19 = vrot.slane %v1822_v15, %v6059_v3  ;;  %s9060_s10 = smov 121  }
  0xd5   : > { %v6191_v26 = vpop.permute.xlu1 %390  ;;  %v6193_v27 = vpop.permute.xlu0 %386 }
  0xd7   : > { %1609 = vrot.lane.b32.xlu1 %v1598_v24, %s8926_s19  ;;  %1607 = vrot.lane.b32.xlu0 %v1594_v25, %s8926_s19  ;;  %v1839_v24 = vrot.slane %v1822_v15, %v6061_v4  ;;  %v1835_v25 = vrot.slane %v1822_v15, %v6057_v2 }
  0xd9   : > { %v6199_v31 = vpop.permute.xlu1 %543  ;;  %v6201_v32 = vpop.permute.xlu0 %541 }
  0xdb   : > { %1613 = vrot.lane.b32.xlu1 %v1606_v28, %s8926_s19  ;;  %1611 = vrot.lane.b32.xlu0 %v1602_v29, %s8926_s19  ;;  %v1975_v28 = vld [vmem:[#allocation3 + $0x46] ss:$8 sm:$0xf] }
  0xdc   : > { %v1992_v39 = vrot.slane %v1975_v28, %v6061_v4 }
  0xdd   : > { %v6207_v35 = vpop.permute.xlu1 %547  ;;  %v6209_v36 = vpop.permute.xlu0 %545 }
  0xdf   : > { %1764 = vrot.lane.b32.xlu1 %v1753_v33, %s8943_s9  ;;  %1762 = vrot.lane.b32.xlu0 %v1749_v34, %s8943_s9  ;;  %v1984_v33 = vrot.slane %v1975_v28, %v6063_v5  ;;  %v1980_v34 = vrot.slane %v1975_v28, %v6059_v3 }
  0xe1   : > { %v6215_v40 = vpop.permute.xlu1 %308  ;;  %v6217_v41 = vpop.permute.xlu0 %306 }
  0xe3   : > { %1768 = vrot.lane.b32.xlu1 %v1761_v37, %s8943_s9  ;;  %1766 = vrot.lane.b32.xlu0 %v1757_v38, %s8943_s9 }
  0xe5   : > { %v6223_v44 = vpop.permute.xlu1 %312  ;;  %v6225_v45 = vpop.permute.xlu0 %310 }
  0xe7   : > { %1532 = vrot.lane.b32.xlu1 %v1521_v42, %s8921_s28  ;;  %1530 = vrot.lane.b32.xlu0 %v1517_v43, %s8921_s28  ;;  %v1988_v42 = vrot.slane %v1975_v28, %v6057_v2  ;;  %v2203_v43 = vld [vmem:[#allocation3 + $0x61] ss:$8 sm:$0xf] }
  0xe8   : > { %v2212_v48 = vrot.slane %v2203_v43, %v6063_v5  ;;  %v2216_v57 = vrot.slane %v2203_v43, %v6057_v2 }
  0xe9   : > { %v6231_v49 = vpop.permute.xlu1 %466  ;;  %v6233_v50 = vpop.permute.xlu0 %464 }
  0xeb   : > { %1536 = vrot.lane.b32.xlu1 %v1529_v46, %s8921_s28  ;;  %1534 = vrot.lane.b32.xlu0 %v1525_v47, %s8921_s28  ;;  %s277_s28 = scalar_lea.vmem %s9054_s1, %s5460_s29  ;;  %s9059_s29 = smov 127  }
  0xec   : > { %s9078_s1 = smov 63  }
  0xed   : > { %v6239_v53 = vpop.permute.xlu1 %470  ;;  %v6241_v54 = vpop.permute.xlu0 %468 }
  0xef   : > { %1689 = vrot.lane.b32.xlu1 %v1678_v51, %s8928_s14  ;;  %1687 = vrot.lane.b32.xlu0 %v1674_v52, %s8928_s14  ;;  %v2208_v51 = vrot.slane %v2203_v43, %v6059_v3 }
  0xf1   : > { %v6247_v58 = vpop.permute.xlu1 %700  ;;  %v6249_v59 = vpop.permute.xlu0 %698 }
  0xf3   : > { %1693 = vrot.lane.b32.xlu1 %v1686_v55, %s8928_s14  ;;  %1691 = vrot.lane.b32.xlu0 %v1682_v56, %s8928_s14  ;;  %v2220_v56 = vrot.slane %v2203_v43, %v6061_v4  ;;  %v394_v43 = vsel %vm392_vm0, %v6193_v27, %v6183_v22 }
  0xf5   : > { %v6255_v62 = vpop.permute.xlu1 %704  ;;  %v6257_v63 = vpop.permute.xlu0 %702 }
  0xf7   : > { %1917 = vrot.lane.b32.xlu1 %v1906_v60, %s8947_s12  ;;  %1915 = vrot.lane.b32.xlu0 %v1902_v61, %s8947_s12  ;;  %v2128_v60 = vld [vmem:[#allocation3 + $0x60] ss:$8 sm:$0xf] }
  0xf8   : > { %v2133_v6 = vrot.slane %v2128_v60, %v6059_v3  ;;  %v2141_v15 = vrot.slane %v2128_v60, %v6057_v2 }
  0xf9   : > { %v6263_v7 = vpop.permute.xlu1 %857  ;;  %v6265_v8 = vpop.permute.xlu0 %855 }
  0xfb   : > { %1921 = vrot.lane.b32.xlu1 %v1914_v0, %s8947_s12  ;;  %1919 = vrot.lane.b32.xlu0 %v1910_v1, %s8947_s12  ;;  %v2137_v1 = vrot.slane %v2128_v60, %v6063_v5 }
  0xfd   : > { %v6271_v11 = vpop.permute.xlu1 %861  ;;  %v6273_v12 = vpop.permute.xlu0 %859 }
  0xff   : > { %2070 = vrot.lane.b32.xlu1 %v2059_v9, %s8939_s15  ;;  %2068 = vrot.lane.b32.xlu0 %v2055_v10, %s8939_s15  ;;  %v279_v9 = vld [vmem:[%s277_s28] sm:$0xff]  ;;  %s9056_s28 = smov 7  }
 0x101   : > { %v6279_v16 = vpop.permute.xlu1 %623  ;;  %v6281_v17 = vpop.permute.xlu0 %621 }
 0x103   : > { %2074 = vrot.lane.b32.xlu1 %v2067_v13, %s8939_s15  ;;  %2072 = vrot.lane.b32.xlu0 %v2063_v14, %s8939_s15  ;;  %v2145_v14 = vrot.slane %v2128_v60, %v6061_v4  ;;  %v316_v60 = vsel %vm314_vm1, %v6215_v40, %v6225_v45 }
 0x105   : > { %v6287_v20 = vpop.permute.xlu1 %627  ;;  %v6289_v21 = vpop.permute.xlu0 %625 }
 0x107   : > { %1842 = vrot.lane.b32.xlu1 %v1831_v18, %s8945_s13  ;;  %1840 = vrot.lane.b32.xlu0 %v1827_v19, %s8945_s13  ;;  %v6348_v18 = vunpack.c.l.bf16 %v279_v9  ;;  %v2281_v19 = vld [vmem:[#allocation3 + $0x62] ss:$8 sm:$0xf] }
 0x108   : > { %v2290_v28 = vrot.slane %v2281_v19, %v6063_v5 }
 0x109   : > { %v6295_v29 = vpop.permute.xlu1 %780  ;;  %v6297_v30 = vpop.permute.xlu0 %778 }
 0x10b   : > { %1846 = vrot.lane.b32.xlu1 %v1839_v24, %s8945_s13  ;;  %1844 = vrot.lane.b32.xlu0 %v1835_v25, %s8945_s13 }
 0x10d   : > { %v6303_v37 = vpop.permute.xlu1 %784  ;;  %v6305_v38 = vpop.permute.xlu0 %782 }
 0x10f   : > { %1995 = vrot.lane.b32.xlu1 %v1984_v33, %s8941_s17  ;;  %1993 = vrot.lane.b32.xlu0 %v1980_v34, %s8941_s17  ;;  %v2286_v33 = vrot.slane %v2281_v19, %v6059_v3  ;;  %v6360_v34 = vcombine.high %v6348_v18, %v6348_v18 }
 0x111   : > { %v6312_v46 = vpop.permute.xlu1 %1014  ;;  %v6314_v47 = vpop.permute.xlu0 %1012 }
 0x113   : > { %1999 = vrot.lane.b32.xlu1 %v1992_v39, %s8941_s17  ;;  %1997 = vrot.lane.b32.xlu0 %v1988_v42, %s8941_s17  ;;  %v393_v39 = vsel %vm392_vm0, %v6185_v23, %v6193_v27  ;;  %v395_v42 = vsel %vm392_vm0, %v6183_v22, %v6191_v26  ;;  %v2298_v27 = vrot.slane %v2281_v19, %v6061_v4 }
 0x114   : > { %v402_v22 = vmul.f32 %v393_v39, %v6348_v18  ;;  %v325_v39 = vmul.f32 %v316_v60, %v6360_v34 }
 0x115   : > { %v6321_v52 = vpop.permute.xlu1 %1018  ;;  %v6323_v55 = vpop.permute.xlu0 %1016 }
 0x117   : > { %2223 = vrot.lane.b32.xlu1 %v2212_v48, %s8933_s16  ;;  %2221 = vrot.lane.b32.xlu0 %v2208_v51, %s8933_s16 }
 0x119   : > { %v6329_v61 = vpop.permute.xlu1 %1171  ;;  %v6331_v0 = vpop.permute.xlu0 %1169 }
 0x11b   : > { %2227 = vrot.lane.b32.xlu1 %v2220_v56, %s8933_s16  ;;  %2225 = vrot.lane.b32.xlu0 %v2216_v57, %s8933_s16  ;;  %v6375_v56 = vunpack.c.h.bf16 %v279_v9  ;;  %v315_v57 = vsel %vm314_vm1, %v6217_v41, %v6215_v40  ;;  %v401_v9 = vmul.f32 0.0, %v6185_v23  ;;  %v403_v40 = vmul.f32 %v394_v43, %v6360_v34 }
 0x11c   : > { %v552_v43 = vsel %vm549_vm2, %v6209_v36, %v6207_v35 }
 0x11d   : > { %v6340_v10 = vpop.permute.xlu1 %1175  ;;  %v6342_v13 = vpop.permute.xlu0 %1173 }
 0x11f   : > { %2148 = vrot.lane.b32.xlu1 %v2137_v1, %s8935_s18  ;;  %2146 = vrot.lane.b32.xlu0 %v2133_v6, %s8935_s18  ;;  %v317_v1 = vsel %vm314_vm1, %v6225_v45, %v6223_v44  ;;  %v2294_v6 = vrot.slane %v2281_v19, %v6057_v2  ;;  %v324_v45 = vmul.f32 %v315_v57, %v6348_v18 }
 0x120   : > { %v5464_v19 = vpack.c.bf16 %v402_v22, %v401_v9 }
 0x121   : > { %v6350_v24 = vpop.permute.xlu1 %937  ;;  %v6352_v25 = vpop.permute.xlu0 %935 }
 0x122   : > { %v424_v9 = vrot.slane %v5464_v19, 6 }
 0x123   : > { %2152 = vrot.lane.b32.xlu1 %v2145_v14, %s8935_s18  ;;  %2150 = vrot.lane.b32.xlu0 %v2141_v15, %s8935_s18  ;;  %v404_v14 = vmul.f32 %v395_v42, %v6375_v56  ;;  %v323_v15 = vmul.f32 0.0, %v6217_v41  ;;  %v550_v41 = vsel %vm549_vm2, %v6201_v32, %v6199_v31  ;;  %v551_v42 = vsel %vm549_vm2, %v6199_v31, %v6209_v36 }
 0x124   : > { %v475_v31 = vsel %vm472_vm3, %v6241_v54, %v6239_v53  ;;  %v6428_v36 = vcombine.high %v6375_v56, %v6375_v56 }
 0x125   : > { %v6371_v48 = vpop.permute.xlu1 %941  ;;  %v6373_v51 = vpop.permute.xlu0 %939  ;;  %v5465_v23 = vpack.c.bf16 %v404_v14, %v403_v40  ;;  %v5461_v57 = vpack.c.bf16 %v324_v45, %v323_v15  ;;  %v558_v14 = vmul.f32 0.0, %v6201_v32  ;;  %v559_v15 = vmul.f32 %v550_v41, %v6348_v18 }
 0x126   : > { %v561_v45 = vmul.f32 %v552_v43, %v6375_v56  ;;  %v484_v19 = vmul.f32 %v475_v31, %v6375_v56 }
 0x127   : > { %2301 = vrot.lane.b32.xlu1 %v2290_v28, %s8931_s26  ;;  %2299 = vrot.lane.b32.xlu0 %v2286_v33, %s8931_s26  ;;  %v326_v28 = vmul.f32 %v317_v1, %v6375_v56  ;;  %v425_v40 = vrot.slane %v5465_v23, 6  ;;  %v405_v23 = vmul.f32 %v6191_v26, %v6428_v36  ;;  %v5470_v41 = vpack.c.bf16 %v559_v15, %v558_v14 }
 0x128   : > { %v327_v26 = vmul.f32 %v6223_v44, %v6428_v36  ;;  %v708_v44 = vsel %vm594_vm4, %v6247_v58, %v6257_v63 }
 0x129   : > { %v6398_v33 = vpop.permute.xlu1 %1094  ;;  %v6400_v4 = vpop.permute.xlu0 %1092  ;;  %v5462_v60 = vpack.c.bf16 %v326_v28, %v325_v39  ;;  %v5466_v31 = vpack.c.bf16 %v405_v23, %v405_v23 }
 0x12b   : > { %2305 = vrot.lane.b32.xlu1 %v2298_v27, %s8931_s26  ;;  %2303 = vrot.lane.b32.xlu0 %v2294_v6, %s8931_s26  ;;  %v473_v27 = vsel %vm472_vm3, %v6233_v50, %v6231_v49  ;;  %v474_v6 = vsel %vm472_vm3, %v6231_v49, %v6241_v54  ;;  %v560_v49 = vmul.f32 %v551_v42, %v6360_v34  ;;  %v481_v54 = vmul.f32 0.0, %v6233_v50 }
 0x12c   : > { %v482_v39 = vmul.f32 %v473_v27, %v6348_v18  ;;  %v483_v28 = vmul.f32 %v474_v6, %v6360_v34  ;;  %v562_v6 = vmul.f32 %v6207_v35, %v6428_v36  ;;  %v485_v35 = vmul.f32 %v6239_v53, %v6428_v36 }
 0x12d   : > { %v6413_v1 = vpop.permute.xlu1 %1098  ;;  %v6415_v22 = vpop.permute.xlu0 %1096  ;;  %v5471_v42 = vpack.c.bf16 %v561_v45, %v560_v49  ;;  %v707_v45 = vsel %vm594_vm4, %v6249_v59, %v6247_v58  ;;  %v630_v53 = vsel %vm629_vm5, %v6281_v17, %v6279_v16  ;;  %v632_v58 = vsel %vm629_vm5, %v6289_v21, %v6287_v20 }
 0x12e   : > { %v5467_v50 = vpack.c.bf16 %v482_v39, %v481_v54  ;;  %v5468_v43 = vpack.c.bf16 %v484_v19, %v483_v28  ;;  %v5472_v49 = vpack.c.bf16 %v562_v6, %v562_v6  ;;  %v426_v54 = vrot.slane %v5466_v31, 6 }
 0x12f   : > { %346 = vrot.lane.b32.xlu0 %v5461_v57, %s8931_s26  ;;  %348 = vrot.lane.b32.xlu1 %v5462_v60, %s8931_s26  ;;  %v5463_v39 = vpack.c.bf16 %v327_v26, %v327_v26  ;;  %v709_v28 = vsel %vm594_vm4, %v6257_v63, %v6255_v62  ;;  %v716_v63 = vmul.f32 %v707_v45, %v6348_v18 }
 0x130   : > { %v717_v6 = vmul.f32 %v708_v44, %v6360_v34  ;;  %v718_v31 = vmul.f32 %v709_v28, %v6375_v56 }
 0x131   : > { %v6440_v32 = vpop.permute.xlu1 %1452  ;;  %v6442_v57 = vpop.permute.xlu0 %1450 }
 0x133   : > { %427 = vrot.lane.b32.xlu0 %v424_v9, %s8933_s16  ;;  %429 = vrot.lane.b32.xlu1 %v425_v40, %s8933_s16  ;;  %v581_v9 = vrot.slane %v5470_v41, 6  ;;  %v582_v40 = vrot.slane %v5471_v42, 6  ;;  %v631_v41 = vsel %vm629_vm5, %v6279_v16, %v6289_v21  ;;  %v715_v42 = vmul.f32 0.0, %v6249_v59 }
 0x134   : > { %v638_v16 = vmul.f32 0.0, %v6281_v17  ;;  %v640_v21 = vmul.f32 %v631_v41, %v6360_v34  ;;  %v641_v59 = vmul.f32 %v632_v58, %v6375_v56  ;;  %v864_v17 = vsel %vm437_vm6, %v6265_v8, %v6263_v7 }
 0x135   : > { %v6448_v60 = vpop.permute.xlu1 %1456  ;;  %v6450_v27 = vpop.permute.xlu0 %1454  ;;  %v5476_v45 = vpack.c.bf16 %v716_v63, %v715_v42  ;;  %v787_v41 = vsel %vm514_vm7, %v6297_v30, %v6295_v29  ;;  %v788_v58 = vsel %vm514_vm7, %v6295_v29, %v6305_v38  ;;  %v795_v29 = vmul.f32 0.0, %v6297_v30 }
 0x136   : > { %v5474_v44 = vpack.c.bf16 %v641_v59, %v640_v21  ;;  %v719_v21 = vmul.f32 %v6255_v62, %v6428_v36  ;;  %v642_v62 = vmul.f32 %v6287_v20, %v6428_v36  ;;  %v1022_v20 = vsel %vm8925_vm8, %v6312_v46, %v6323_v55 }
 0x137   : > { %504 = vrot.lane.b32.xlu0 %v5467_v50, %s8935_s18  ;;  %506 = vrot.lane.b32.xlu1 %v5468_v43, %s8935_s18  ;;  %v583_v50 = vrot.slane %v5472_v49, 6  ;;  %v5469_v43 = vpack.c.bf16 %v485_v35, %v485_v35  ;;  %v5477_v49 = vpack.c.bf16 %v718_v31, %v717_v6  ;;  %v865_v35 = vsel %vm437_vm6, %v6263_v7, %v6273_v12 }
 0x138   : > { %v789_v7 = vsel %vm514_vm7, %v6305_v38, %v6303_v37  ;;  %v738_v42 = vrot.slane %v5476_v45, 6  ;;  %v796_v31 = vmul.f32 %v787_v41, %v6348_v18  ;;  %v797_v38 = vmul.f32 %v788_v58, %v6360_v34 }
 0x139   : > { %v6458_v14 = vpop.permute.xlu1 %1251  ;;  %v6460_v15 = vpop.permute.xlu0 %1249  ;;  %v739_v63 = vrot.slane %v5477_v49, 6 }
 0x13a   : > { %v5479_v30 = vpack.c.bf16 %v796_v31, %v795_v29  ;;  %v945_v31 = vsel %vm357_vm9, %v6350_v24, %v6373_v51 }
 0x13b   : > { %584 = vrot.lane.b32.xlu0 %v581_v9, %s8939_s15  ;;  %586 = vrot.lane.b32.xlu1 %v582_v40, %s8939_s15  ;;  %v639_v9 = vmul.f32 %v630_v53, %v6348_v18 }
 0x13d   : > { %v6475_v19 = vpop.permute.xlu1 %1255  ;;  %v6477_v23 = vpop.permute.xlu0 %1253 }
 0x13f   : > { %350 = vrot.lane.b32.xlu0 %v5463_v39, %s8931_s26  ;;  %431 = vrot.lane.b32.xlu1 %v426_v54, %s8933_s16  ;;  %v866_v54 = vsel %vm437_vm6, %v6273_v12, %v6271_v11  ;;  %v5473_v39 = vpack.c.bf16 %v639_v9, %v638_v16  ;;  %v872_v12 = vmul.f32 0.0, %v6265_v8  ;;  %v798_v16 = vmul.f32 %v789_v7, %v6375_v56 }
 0x140   : > { %v875_v6 = vmul.f32 %v866_v54, %v6375_v56  ;;  %v876_v54 = vmul.f32 %v6271_v11, %v6428_v36  ;;  %v799_v11 = vmul.f32 %v6303_v37, %v6428_v36  ;;  %v944_v37 = vsel %vm357_vm9, %v6352_v25, %v6350_v24 }
 0x141   : > { %v6498_v40 = vpop.permute.xlu1 %1375  ;;  %v6500_v26 = vpop.permute.xlu0 %1373  ;;  %v5480_v49 = vpack.c.bf16 %v798_v16, %v797_v38  ;;  %v1029_v38 = vmul.f32 0.0, %v6314_v47  ;;  %v952_v24 = vmul.f32 0.0, %v6352_v25  ;;  %v1178_v25 = vsel %vm1177_vm10, %v6331_v0, %v6329_v61 }
 0x143   : > { %508 = vrot.lane.b32.xlu0 %v5469_v43, %s8935_s18  ;;  %588 = vrot.lane.b32.xlu1 %v583_v50, %s8939_s15  ;;  %v873_v50 = vmul.f32 %v864_v17, %v6348_v18  ;;  %v874_v43 = vmul.f32 %v865_v35, %v6360_v34 }
 0x145   : > { %v6513_v28 = vpop.permute.xlu1 %1379  ;;  %v6515_v53 = vpop.permute.xlu0 %1377  ;;  %v5482_v59 = vpack.c.bf16 %v873_v50, %v872_v12  ;;  %v5483_v45 = vpack.c.bf16 %v875_v6, %v874_v43  ;;  %v1021_v12 = vsel %vm8925_vm8, %v6314_v47, %v6312_v46  ;;  %v5475_v50 = vpack.c.bf16 %v642_v62, %v642_v62 }
 0x146   : > { %v1023_v43 = vsel %vm8925_vm8, %v6323_v55, %v6321_v52  ;;  %v946_v46 = vsel %vm357_vm9, %v6373_v51, %v6371_v48  ;;  %v1030_v55 = vmul.f32 %v1021_v12, %v6348_v18  ;;  %v954_v51 = vmul.f32 %v945_v31, %v6360_v34 }
 0x147   : > { %661 = vrot.lane.b32.xlu0 %v5473_v39, %s8941_s17  ;;  %663 = vrot.lane.b32.xlu1 %v5474_v44, %s8941_s17  ;;  %v5478_v39 = vpack.c.bf16 %v719_v21, %v719_v21  ;;  %v895_v44 = vrot.slane %v5482_v59, 6  ;;  %v896_v41 = vrot.slane %v5483_v45, 6  ;;  %v5481_v21 = vpack.c.bf16 %v799_v11, %v799_v11 }
 0x148   : > { %v1031_v59 = vmul.f32 %v1022_v20, %v6360_v34  ;;  %v1032_v45 = vmul.f32 %v1023_v43, %v6375_v56  ;;  %v955_v47 = vmul.f32 %v946_v46, %v6375_v56  ;;  %v1180_v62 = vsel %vm1177_vm10, %v6342_v13, %v6340_v10 }
 0x149   : > { %v6536_v8 = vpop.permute.xlu1 %1609  ;;  %v6538_v9 = vpop.permute.xlu0 %1607  ;;  %v1102_v20 = vsel %vm8930_vm11, %v6398_v33, %v6415_v22  ;;  %v1187_v31 = vmul.f32 %v1178_v25, %v6348_v18  ;;  %vm8938_vm8 = vcmask 64512  }
 0x14a   : > { %v5486_v11 = vpack.c.bf16 %v955_v47, %v954_v51 }
 0x14b   : > { %741 = vrot.lane.b32.xlu0 %v738_v42, %s8947_s12  ;;  %743 = vrot.lane.b32.xlu1 %v739_v63, %s8947_s12  ;;  %v5484_v42 = vpack.c.bf16 %v876_v54, %v876_v54  ;;  %v740_v63 = vrot.slane %v5478_v39, 6  ;;  %v5488_v39 = vpack.c.bf16 %v1030_v55, %v1029_v38  ;;  %v1189_v38 = vmul.f32 %v1180_v62, %v6375_v56 }
 0x14d   : > { %v6544_v17 = vpop.permute.xlu1 %1613  ;;  %v6546_v35 = vpop.permute.xlu0 %1611  ;;  %v897_v16 = vrot.slane %v5484_v42, 6  ;;  %v1052_v43 = vrot.slane %v5488_v39, 6  ;;  %v6644_v39 = vld [vmem:[#allocation3 + $0x25] ss:$8 sm:$0xf] }
 0x14e   : > { %v1317_v62 = vrot.slane %v6644_v39, %v6063_v5 }
 0x14f   : > { %818 = vrot.lane.b32.xlu0 %v5479_v30, %s8945_s13  ;;  %820 = vrot.lane.b32.xlu1 %v5480_v49, %s8945_s13  ;;  %v953_v30 = vmul.f32 %v944_v37, %v6348_v18 }
 0x151   : > { %v6554_v58 = vpop.permute.xlu1 %1764  ;;  %v6556_v7 = vpop.permute.xlu0 %1762  ;;  %v5485_v42 = vpack.c.bf16 %v953_v30, %v952_v24 }
 0x153   : > { %898 = vrot.lane.b32.xlu0 %v895_v44, %s8943_s9  ;;  %900 = vrot.lane.b32.xlu1 %v896_v41, %s8943_s9  ;;  %v5489_v44 = vpack.c.bf16 %v1032_v45, %v1031_v59  ;;  %v1179_v41 = vsel %vm1177_vm10, %v6329_v61, %v6342_v13  ;;  %v1103_v61 = vsel %vm8930_vm11, %v6415_v22, %v6413_v1  ;;  %v1186_v13 = vmul.f32 0.0, %v6331_v0 }
 0x154   : > { %v1188_v46 = vmul.f32 %v1179_v41, %v6360_v34  ;;  %v1111_v22 = vmul.f32 %v1102_v20, %v6360_v34  ;;  %v1033_v59 = vmul.f32 %v6321_v52, %v6428_v36  ;;  %v1190_v52 = vmul.f32 %v6340_v10, %v6428_v36 }
 0x155   : > { %v6571_v6 = vpop.permute.xlu1 %1768  ;;  %v6573_v29 = vpop.permute.xlu0 %1766  ;;  %v1053_v37 = vrot.slane %v5489_v44, 6  ;;  %v5494_v45 = vpack.c.bf16 %v1187_v31, %v1186_v13  ;;  %v1313_v44 = vrot.slane %v6644_v39, %v6059_v3  ;;  %v956_v41 = vmul.f32 %v6371_v48, %v6428_v36 }
 0x156   : > { %v5495_v24 = vpack.c.bf16 %v1189_v38, %v1188_v46  ;;  %v5490_v25 = vpack.c.bf16 %v1033_v59, %v1033_v59  ;;  %v5496_v48 = vpack.c.bf16 %v1190_v52, %v1190_v52  ;;  %v1113_v31 = vmul.f32 %v6413_v1, %v6428_v36 }
 0x157   : > { %665 = vrot.lane.b32.xlu0 %v5475_v50, %s8941_s17  ;;  %745 = vrot.lane.b32.xlu1 %v740_v63, %s8947_s12  ;;  %v1101_v50 = vsel %vm8930_vm11, %v6400_v4, %v6398_v33  ;;  %v1109_v33 = vmul.f32 0.0, %v6400_v4  ;;  %v5487_v13 = vpack.c.bf16 %v956_v41, %v956_v41  ;;  %v1258_v46 = vsel %vm1257_vm12, %v6460_v15, %v6458_v14 }
 0x158   : > { %v1110_v55 = vmul.f32 %v1101_v50, %v6348_v18  ;;  %v1054_v10 = vrot.slane %v5490_v25, 6  ;;  %v1259_v38 = vsel %vm1257_vm12, %v6458_v14, %v6477_v23  ;;  %v1459_v1 = vsel %vm9018_vm13, %v6442_v57, %v6440_v32 }
 0x159   : > { %v6594_v49 = vpop.permute.xlu1 %1532  ;;  %v6596_v54 = vpop.permute.xlu0 %1530  ;;  %v1460_v59 = vsel %vm9018_vm13, %v6440_v32, %v6450_v27  ;;  %v1461_v14 = vsel %vm9018_vm13, %v6450_v27, %v6448_v60  ;;  %v1467_v32 = vmul.f32 %v6442_v57, %v6348_v18  ;;  %v1382_v27 = vsel %vm9017_vm14, %v6500_v26, %v6498_v40 }
 0x15a   : > { %v5491_v4 = vpack.c.bf16 %v1110_v55, %v1109_v33  ;;  %v1260_v33 = vsel %vm1257_vm12, %v6477_v23, %v6475_v19  ;;  %v1266_v23 = vmul.f32 0.0, %v6460_v15  ;;  %v1468_v15 = vmul.f32 %v1459_v1, %v6360_v34 }
 0x15b   : > { %822 = vrot.lane.b32.xlu0 %v5481_v21, %s8945_s13  ;;  %902 = vrot.lane.b32.xlu1 %v897_v16, %s8943_s9  ;;  %v1112_v16 = vmul.f32 %v1103_v61, %v6375_v56  ;;  %v1330_v61 = vmul.f32 %v1313_v44, %v6348_v18  ;;  %v5493_v44 = vpack.c.bf16 %v1113_v31, %v1113_v31  ;;  %vm355_vm11 = vcmask 1043456  }
 0x15c   : > { %v1469_v41 = vmul.f32 %v1460_v59, %v6375_v56  ;;  %v1384_v57 = vsel %vm9017_vm14, %v6515_v53, %v6513_v28 }
 0x15d   : > { %v6609_v12 = vpop.permute.xlu1 %1536  ;;  %v6611_v63 = vpop.permute.xlu0 %1534  ;;  %v5492_v30 = vpack.c.bf16 %v1112_v16, %v1111_v22 }
 0x15f   : > { %975 = vrot.lane.b32.xlu0 %v5485_v42, %s8928_s14  ;;  %977 = vrot.lane.b32.xlu1 %v5486_v11, %s8928_s14  ;;  %v1209_v42 = vrot.slane %v5494_v45, 6  ;;  %v1210_v11 = vrot.slane %v5495_v24, 6  ;;  %v1267_v45 = vmul.f32 %v1258_v46, %v6348_v18  ;;  %v1268_v24 = vmul.f32 %v1259_v38, %v6360_v34 }
 0x161   : > { %v6632_v0 = vpop.permute.xlu1 %1689  ;;  %v6634_v21 = vpop.permute.xlu0 %1687 }
 0x163   : > { %1055 = vrot.lane.b32.xlu0 %v1052_v43, %s8926_s19  ;;  %1057 = vrot.lane.b32.xlu1 %v1053_v37, %s8926_s19  ;;  %v1331_v43 = vmul.f32 %v1317_v62, %v6360_v34  ;;  %v1383_v62 = vsel %vm9017_vm14, %v6498_v40, %v6515_v53  ;;  %v1390_v40 = vmul.f32 %v6500_v26, %v6348_v18 }
 0x164   : > { %v1392_v53 = vmul.f32 %v1383_v62, %v6375_v56  ;;  %v5505_v26 = vpack.c.bf16 %v1468_v15, %v1467_v32 }
 0x165   : > { %v6640_v51 = vpop.permute.xlu1 %1693  ;;  %v6642_v47 = vpop.permute.xlu0 %1691  ;;  %v5500_v37 = vpack.c.bf16 %v1331_v43, %v1330_v61  ;;  %v9057_v61 = vld [vmem:[#allocation14_spill] sm:$0xff] }
 0x166   : > { %v1325_v43 = vrot.slane %v6644_v39, %v9057_v61 }
 0x167   : > { %1132 = vrot.lane.b32.xlu0 %v5491_v4, %s9055_s20  ;;  %1134 = vrot.lane.b32.xlu1 %v5492_v30, %s9055_s20  ;;  %v1348_v16 = vrot.slane %v5500_v37, 6  ;;  %v1269_v4 = vmul.f32 %v1260_v33, %v6375_v56  ;;  %v1211_v30 = vrot.slane %v5496_v48, 6  ;;  %v1393_v37 = vmul.f32 %v1384_v57, %v6428_v36 }
 0x168   : > { %v1333_v33 = vmul.f32 %v1325_v43, %v6428_v36  ;;  %v1624_v57 = vmul.f32 %v6538_v9, %v6348_v18  ;;  %v1618_v43 = vsel %vm8937_vm15, %v6546_v35, %v6544_v17 }
 0x169   : > { %v6656_v50 = vpop.permute.xlu1 %1917  ;;  %v6658_v20 = vpop.permute.xlu0 %1915  ;;  %1352 = vst [vmem:[#allocation2 + $0x60] sm:$0xcc] %v1348_v16  ;;  %v5498_v48 = vpack.c.bf16 %v1269_v4, %v1268_v24  ;;  %v5503_v59 = vpack.c.bf16 %v1393_v37, %v1392_v53  ;;  %v1471_v24 = vmul.f32 0.0, %v6448_v60  ;;  %v1270_v4 = vmul.f32 %v6475_v19, %v6428_v36 }
 0x16a   : > { %v1627_v37 = vmul.f32 %v1618_v43, %v6428_v36 }
 0x16b   : > { %1212 = vrot.lane.b32.xlu0 %v1209_v42, %s9056_s28  ;;  %1214 = vrot.lane.b32.xlu1 %v1210_v11, %s9056_s28  ;;  %v1470_v42 = vmul.f32 %v1461_v14, %v6428_v36  ;;  %v1321_v11 = vrot.slane %v6644_v39, %v6057_v2  ;;  %v5507_v62 = vpack.c.bf16 %v1471_v24, %v1471_v24 }
 0x16c   : > { %v5499_v19 = vpack.c.bf16 %v1270_v4, %v1270_v4  ;;  %v1771_v4 = vsel %vm392_vm0, %v6554_v58, %v6573_v29 }
 0x16d   : > { %v6675_v55 = vpop.permute.xlu1 %1921  ;;  %v6677_v22 = vpop.permute.xlu0 %1919  ;;  %v1332_v38 = vmul.f32 %v1321_v11, %v6375_v56  ;;  %v5506_v16 = vpack.c.bf16 %v1470_v42, %v1469_v41  ;;  %v1539_v41 = vsel %vm8938_vm8, %v6596_v54, %v6594_v49  ;;  %v1617_v11 = vsel %vm8937_vm15, %v6536_v8, %v6546_v35 }
 0x16e   : > { %v1492_v35 = vrot.slane %v5507_v62, 6  ;;  %v1626_v53 = vmul.f32 %v1617_v11, %v6375_v56  ;;  %v1696_v62 = vsel %vm314_vm1, %v6632_v0, %v6642_v47 }
 0x16f   : > { %979 = vrot.lane.b32.xlu0 %v5487_v13, %s8928_s14  ;;  %1059 = vrot.lane.b32.xlu1 %v1054_v10, %s8926_s19  ;;  %v5497_v10 = vpack.c.bf16 %v1267_v45, %v1266_v23  ;;  %v1391_v13 = vmul.f32 %v1382_v27, %v6360_v34  ;;  %v5501_v39 = vpack.c.bf16 %v1333_v33, %v1332_v38  ;;  %v1491_v32 = vrot.slane %v5506_v16, 6  ;;  %s9061_s19 = smov 120   ;;  %s9062_s14 = smov 119  }
 0x170   : > { %v1616_v27 = vsel %vm8937_vm15, %v6538_v9, %v6536_v8  ;;  %v1540_v9 = vsel %vm8938_vm8, %v6594_v49, %v6611_v63  ;;  %v1541_v8 = vsel %vm8938_vm8, %v6611_v63, %v6609_v12  ;;  %v1770_v38 = vsel %vm392_vm0, %v6556_v7, %v6554_v58 }
 0x171   : > { %v6699_v25 = vpop.permute.xlu1 %2070  ;;  %v6701_v52 = vpop.permute.xlu0 %2068  ;;  %v5502_v1 = vpack.c.bf16 %v1391_v13, %v1390_v40  ;;  %v1349_v45 = vrot.slane %v5501_v39, 6  ;;  %v1625_v42 = vmul.f32 %v1616_v27, %v6360_v34  ;;  %v1549_v49 = vmul.f32 %v1540_v9, %v6375_v56 }
 0x172   : > { %v1550_v39 = vmul.f32 %v1541_v8, %v6428_v36  ;;  %v1695_v16 = vsel %vm314_vm1, %v6634_v21, %v6632_v0  ;;  %v1779_v24 = vmul.f32 %v1770_v38, %v6360_v34  ;;  %v1697_v58 = vsel %vm314_vm1, %v6642_v47, %v6640_v51 }
 0x173   : > { %1136 = vrot.lane.b32.xlu0 %v5493_v44, %s9055_s20  ;;  %1216 = vrot.lane.b32.xlu1 %v1211_v30, %s9056_s28  ;;  %1353 = vst [vmem:[#allocation2 + $0x68] sm:$0xcc] %v1349_v45  ;;  %v1394_v30 = vmul.f32 0.0, %v6513_v28  ;;  %v1490_v44 = vrot.slane %v5505_v26, 6  ;;  %v1778_v45 = vmul.f32 %v6556_v7, %v6348_v18  ;;  %v1772_v7 = vsel %vm392_vm0, %v6573_v29, %v6571_v6 }
 0x174   : > { %v1705_v29 = vmul.f32 %v1696_v62, %v6375_v56  ;;  %v1706_v11 = vmul.f32 %v1697_v58, %v6428_v36  ;;  %v1628_v47 = vmul.f32 0.0, %v6544_v17  ;;  %v1551_v9 = vmul.f32 0.0, %v6609_v12 }
 0x175   : > { %v6723_v31 = vpop.permute.xlu1 %2074  ;;  %v6725_v46 = vpop.permute.xlu0 %2072  ;;  %v5504_v28 = vpack.c.bf16 %v1394_v30, %v1394_v30  ;;  %v5509_v30 = vpack.c.bf16 %v1550_v39, %v1549_v49  ;;  %v1707_v17 = vmul.f32 0.0, %v6640_v51  ;;  %v1923_v12 = vsel %vm549_vm2, %v6658_v20, %v6656_v50 }
 0x176   : > { %v5515_v8 = vpack.c.bf16 %v1706_v11, %v1705_v29  ;;  %v1931_v51 = vmul.f32 %v6658_v20, %v6348_v18 }
 0x177   : > { %1289 = vrot.lane.b32.xlu0 %v5497_v10, %s9058_s11  ;;  %1291 = vrot.lane.b32.xlu1 %v5498_v48, %s9058_s11  ;;  %v1547_v10 = vmul.f32 %v6596_v54, %v6348_v18  ;;  %v1548_v48 = vmul.f32 %v1539_v41, %v6360_v34  ;;  %v5511_v54 = vpack.c.bf16 %v1625_v42, %v1624_v57 }
 0x178   : > { %v1781_v57 = vmul.f32 %v1772_v7, %v6428_v36 }
 0x179   : > { %v6731_v14 = vpop.permute.xlu1 %1842  ;;  %v6733_v23 = vpop.permute.xlu0 %1840  ;;  %v5508_v33 = vpack.c.bf16 %v1548_v48, %v1547_v10 }
 0x17b   : > { %1413 = vrot.lane.b32.xlu0 %v5502_v1, %s9059_s29  ;;  %1415 = vrot.lane.b32.xlu1 %v5503_v59, %s9059_s29  ;;  %v1647_v1 = vrot.slane %v5511_v54, 6  ;;  %v5512_v59 = vpack.c.bf16 %v1627_v37, %v1626_v53  ;;  %v1782_v53 = vmul.f32 0.0, %v6571_v6  ;;  %v5513_v37 = vpack.c.bf16 %v1628_v47, %v1628_v47 }
 0x17c   : > { %v1848_v6 = vsel %vm472_vm3, %v6733_v23, %v6731_v14  ;;  %v2084_v47 = vmul.f32 %v6701_v52, %v6348_v18 }
 0x17d   : > { %v6744_v15 = vpop.permute.xlu1 %1846  ;;  %v6746_v60 = vpop.permute.xlu0 %1844 }
 0x17e   : > { %v1849_v7 = vsel %vm472_vm3, %v6731_v14, %v6746_v60 }
 0x17f   : > { %1493 = vrot.lane.b32.xlu0 %v1490_v44, %s9060_s10  ;;  %1495 = vrot.lane.b32.xlu1 %v1491_v32, %s9060_s10  ;;  %v1703_v44 = vmul.f32 %v6634_v21, %v6348_v18  ;;  %v1704_v32 = vmul.f32 %v1695_v16, %v6360_v34  ;;  %v1648_v21 = vrot.slane %v5512_v59, 6  ;;  %v5519_v16 = vpack.c.bf16 %v1782_v53, %v1782_v53 }
 0x180   : > { %v1924_v59 = vsel %vm549_vm2, %v6656_v50, %v6677_v22  ;;  %v1850_v50 = vsel %vm472_vm3, %v6746_v60, %v6744_v15  ;;  %v1858_v14 = vmul.f32 %v1849_v7, %v6375_v56 }
 0x181   : > { %v6765_v40 = vpop.permute.xlu1 %1995  ;;  %v6767_v13 = vpop.permute.xlu0 %1993  ;;  %v5514_v42 = vpack.c.bf16 %v1704_v32, %v1703_v44  ;;  %v1857_v44 = vmul.f32 %v1848_v6, %v6360_v34 }
 0x182   : > { %v2009_v53 = vmul.f32 %v6767_v13, %v6348_v18 }
 0x183   : > { %1293 = vrot.lane.b32.xlu0 %v5499_v19, %s9058_s11  ;;  %1417 = vrot.lane.b32.xlu1 %v5504_v28, %s9059_s29  ;;  %v5517_v19 = vpack.c.bf16 %v1779_v24, %v1778_v45  ;;  %v1780_v28 = vmul.f32 %v1771_v4, %v6375_v56  ;;  %v1925_v45 = vsel %vm549_vm2, %v6677_v22, %v6675_v55  ;;  %v1649_v24 = vrot.slane %v5513_v37, 6 }
 0x184   : > { %v5516_v4 = vpack.c.bf16 %v1707_v17, %v1707_v17  ;;  %v1933_v22 = vmul.f32 %v1924_v59, %v6375_v56  ;;  %v1934_v62 = vmul.f32 %v1925_v45, %v6428_v36 }
 0x185   : > { %v6784_v63 = vpop.permute.xlu1 %1999  ;;  %v6786_v26 = vpop.permute.xlu0 %1997  ;;  %v1801_v10 = vrot.slane %v5517_v19, 6  ;;  %v5518_v48 = vpack.c.bf16 %v1781_v57, %v1780_v28  ;;  %v1859_v28 = vmul.f32 %v1850_v50, %v6428_v36 }
 0x186   : > { %v5524_v29 = vpack.c.bf16 %v1934_v62, %v1933_v22  ;;  %v1860_v62 = vmul.f32 0.0, %v6744_v15 }
 0x187   : > { %1497 = vrot.lane.b32.xlu0 %v1492_v35, %s9060_s10  ;;  %1570 = vrot.lane.b32.xlu1 %v5508_v33, %s9061_s19  ;;  %v1802_v38 = vrot.slane %v5518_v48, 6  ;;  %v5510_v33 = vpack.c.bf16 %v1551_v9, %v1551_v9  ;;  %v2077_v48 = vsel %vm594_vm4, %v6699_v25, %v6725_v46  ;;  %v2078_v9 = vsel %vm594_vm4, %v6725_v46, %v6723_v31 }
 0x188   : > { %v2086_v6 = vmul.f32 %v2077_v48, %v6375_v56 }
 0x189   : > { %v6802_v27 = vpop.permute.xlu1 %2223  ;;  %v6804_v41 = vpop.permute.xlu0 %2221 }
 0x18a   : > { %v2229_v15 = vsel %vm437_vm6, %v6804_v41, %v6802_v27 }
 0x18b   : > { %1572 = vrot.lane.b32.xlu0 %v5509_v30, %s9061_s19  ;;  %1650 = vrot.lane.b32.xlu1 %v1647_v1, %s9062_s14  ;;  %v1932_v1 = vmul.f32 %v1923_v12, %v6360_v34  ;;  %v1856_v30 = vmul.f32 %v6733_v23, %v6348_v18  ;;  %v1803_v23 = vrot.slane %v5519_v16, 6  ;;  %v1955_v12 = vrot.slane %v5524_v29, 6 }
 0x18c   : > { %v2087_v16 = vmul.f32 %v2078_v9, %v6428_v36  ;;  %v2013_v29 = vmul.f32 0.0, %v6784_v63 }
 0x18d   : > { %v6821_v0 = vpop.permute.xlu1 %2227  ;;  %v6823_v43 = vpop.permute.xlu0 %2225  ;;  %v5523_v58 = vpack.c.bf16 %v1932_v1, %v1931_v51  ;;  %v5520_v19 = vpack.c.bf16 %v1857_v44, %v1856_v30  ;;  %v1935_v44 = vmul.f32 0.0, %v6675_v55 }
 0x18e   : > { %v5530_v22 = vpack.c.bf16 %v2087_v16, %v2086_v6 }
 0x18f   : > { %1652 = vrot.lane.b32.xlu0 %v1648_v21, %s9062_s14  ;;  %1726 = vrot.lane.b32.xlu1 %v5514_v42, %s8931_s26  ;;  %v2076_v21 = vsel %vm594_vm4, %v6701_v52, %v6699_v25  ;;  %v2001_v42 = vsel %vm629_vm5, %v6767_v13, %v6765_v40  ;;  %v1954_v11 = vrot.slane %v5523_v58, 6  ;;  %v2002_v52 = vsel %vm629_vm5, %v6765_v40, %v6786_v26 }
 0x190   : > { %v2010_v37 = vmul.f32 %v2001_v42, %v6360_v34  ;;  %v2003_v25 = vsel %vm629_vm5, %v6786_v26, %v6784_v63  ;;  %v2011_v26 = vmul.f32 %v2002_v52, %v6375_v56  ;;  %v5525_v42 = vpack.c.bf16 %v1935_v44, %v1935_v44 }
 0x191   : > { %v6829_v35 = vpop.permute.xlu1 %2148  ;;  %v6831_v54 = vpop.permute.xlu0 %2146  ;;  %v2012_v1 = vmul.f32 %v2003_v25, %v6428_v36  ;;  %v5528_v52 = vpack.c.bf16 %v2013_v29, %v2013_v29  ;;  %v2237_v25 = vmul.f32 %v6804_v41, %v6348_v18 }
 0x192   : > { %v5526_v51 = vpack.c.bf16 %v2010_v37, %v2009_v53  ;;  %v2154_v63 = vsel %vm514_vm7, %v6831_v54, %v6829_v35  ;;  %v2162_v6 = vmul.f32 %v6831_v54, %v6348_v18 }
 0x193   : > { %1728 = vrot.lane.b32.xlu0 %v5515_v8, %s8931_s26  ;;  %1804 = vrot.lane.b32.xlu1 %v1801_v10, %s8933_s16  ;;  %v2085_v10 = vmul.f32 %v2076_v21, %v6360_v34  ;;  %v5521_v8 = vpack.c.bf16 %v1859_v28, %v1858_v14  ;;  %v2088_v14 = vmul.f32 0.0, %v6723_v31  ;;  %v2163_v41 = vmul.f32 %v2154_v63, %v6360_v34 }
 0x195   : > { %v6840_v49 = vpop.permute.xlu1 %2152  ;;  %v6842_v39 = vpop.permute.xlu0 %2150  ;;  %v5529_v13 = vpack.c.bf16 %v2085_v10, %v2084_v47  ;;  %v2108_v47 = vrot.slane %v5530_v22, 6  ;;  %v5522_v10 = vpack.c.bf16 %v1860_v62, %v1860_v62  ;;  %v5532_v22 = vpack.c.bf16 %v2163_v41, %v2162_v6 }
 0x197   : > { %1806 = vrot.lane.b32.xlu0 %v1802_v38, %s8933_s16  ;;  %1574 = vrot.lane.b32.xlu1 %v5510_v33, %s9061_s19  ;;  %v2107_v7 = vrot.slane %v5529_v13, 6  ;;  %v2231_v13 = vsel %vm437_vm6, %v6823_v43, %v6821_v0 }
 0x199   : > { %v6861_v32 = vpop.permute.xlu1 %2301  ;;  %v6863_v20 = vpop.permute.xlu0 %2299 }
 0x19b   : > { %1654 = vrot.lane.b32.xlu0 %v1649_v24, %s9062_s14  ;;  %1730 = vrot.lane.b32.xlu1 %v5516_v4, %s8931_s26  ;;  %s9063_s26 = smov 55  }
 0x19d   : > { %v6880_v60 = vpop.permute.xlu1 %2305  ;;  %v6882_v57 = vpop.permute.xlu0 %2303 }
 0x19f   : > { %1808 = vrot.lane.b32.xlu0 %v1803_v23, %s8933_s16  ;;  %1879 = vrot.lane.b32.xlu1 %v5520_v19, %s8935_s18  ;;  %v5527_v23 = vpack.c.bf16 %v2012_v1, %v2011_v26  ;;  %s9064_s16 = smov 71  }
 0x1a1   : > { %v347_v38 = vpop.permute.xlu0 %346  ;;  %v6901_v33 = vpop.permute.xlu1 %348 }
 0x1a2   : > { %v352_v17 = vrot.slane %v347_v38, 4  ;;  %v353_v46 = vrot.slane %v6901_v33, 4 }
 0x1a3   : > { %1881 = vrot.lane.b32.xlu0 %v5521_v8, %s8935_s18  ;;  %1957 = vrot.lane.b32.xlu1 %v1954_v11, %s8939_s15  ;;  %v5531_v8 = vpack.c.bf16 %v2088_v14, %v2088_v14  ;;  %v2307_v14 = vsel %vm357_vm9, %v6863_v20, %v6861_v32 }
 0x1a4   : > { %v356_v40 = vsel %vm355_vm11, %v352_v17, %v353_v46  ;;  %v2238_v17 = vmul.f32 %v2229_v15, %v6360_v34  ;;  %v2315_v15 = vmul.f32 %v6863_v20, %v6348_v18  ;;  %v2309_v18 = vsel %vm357_vm9, %v6882_v57, %v6880_v60 }
 0x1a5   : > { %v358_v59 = vsel %vm357_vm9, %v347_v38, %v356_v40  ;;  %v428_v45 = vpop.permute.xlu0 %427  ;;  %v6920_v24 = vpop.permute.xlu1 %429  ;;  %v1956_v38 = vrot.slane %v5525_v42, 6  ;;  %v2155_v40 = vsel %vm514_vm7, %v6829_v35, %v6842_v39 }
 0x1a6   : > { %363 = vst [vmem:[#allocation2] sm:$0x33] %v358_v59  ;;  %v433_v4 = vrot.slane %v428_v45, 4  ;;  %v434_v30 = vrot.slane %v6920_v24, 4  ;;  %v5535_v54 = vpack.c.bf16 %v2238_v17, %v2237_v25  ;;  %v2164_v35 = vmul.f32 %v2155_v40, %v6375_v56 }
 0x1a7   : > { %1959 = vrot.lane.b32.xlu0 %v1955_v12, %s8939_s15  ;;  %2032 = vrot.lane.b32.xlu1 %v5526_v51, %s8941_s17  ;;  %v2230_v12 = vsel %vm437_vm6, %v6802_v27, %v6823_v43  ;;  %v2156_v51 = vsel %vm514_vm7, %v6842_v39, %v6840_v49 }
 0x1a8   : > { %v436_v50 = vsel %vm355_vm11, %v433_v4, %v434_v30  ;;  %v2240_v4 = vmul.f32 %v2231_v13, %v6428_v36  ;;  %v2165_v39 = vmul.f32 %v2156_v51, %v6428_v36  ;;  %v2260_v42 = vrot.slane %v5535_v54, 6 }
 0x1a9   : > { %v438_v58 = vsel %vm437_vm6, %v428_v45, %v436_v50  ;;  %v505_v21 = vpop.permute.xlu0 %504  ;;  %v6929_v19 = vpop.permute.xlu1 %506  ;;  %v2239_v45 = vmul.f32 %v2230_v12, %v6375_v56  ;;  %v2109_v50 = vrot.slane %v5531_v8, 6 }
 0x1aa   : > { %443 = vst [vmem:[#allocation2] sm:$0xcc] %v438_v58  ;;  %v510_v55 = vrot.slane %v505_v21, 4  ;;  %v511_v28 = vrot.slane %v6929_v19, 4 }
 0x1ab   : > { %2034 = vrot.lane.b32.xlu0 %v5527_v23, %s8941_s17  ;;  %2110 = vrot.lane.b32.xlu1 %v2107_v7, %s8947_s12 }
 0x1ac   : > { %v513_v11 = vsel %vm355_vm11, %v510_v55, %v511_v28 }
 0x1ad   : > { %v515_v31 = vsel %vm514_vm7, %v505_v21, %v513_v11  ;;  %v585_v48 = vpop.permute.xlu0 %584  ;;  %v587_v9 = vpop.permute.xlu1 %586  ;;  %v2316_v11 = vmul.f32 %v2307_v14, %v6360_v34 }
 0x1ae   : > { %520 = vst [vmem:[#allocation2 + $0x10] sm:$0x33] %v515_v31  ;;  %v590_v53 = vrot.slane %v585_v48, 4  ;;  %v591_v37 = vrot.slane %v587_v9, 4 }
 0x1af   : > { %2112 = vrot.lane.b32.xlu0 %v2108_v47, %s8947_s12  ;;  %1883 = vrot.lane.b32.xlu1 %v5522_v10, %s8935_s18  ;;  %s9067_s18 = smov 72  }
 0x1b0   : > { %v593_v16 = vsel %vm355_vm11, %v590_v53, %v591_v37  ;;  %v2166_v53 = vmul.f32 0.0, %v6840_v49 }
 0x1b1   : > { %v595_v27 = vsel %vm594_vm4, %v585_v48, %v593_v16  ;;  %v351_v26 = vpop.permute.xlu0 %350  ;;  %v432_v1 = vpop.permute.xlu1 %431 }
 0x1b2   : > { %600 = vst [vmem:[#allocation2 + $0x10] sm:$0xcc] %v595_v27  ;;  %v354_v43 = vrot.slane %v351_v26, 4  ;;  %v435_v59 = vrot.slane %v432_v1, 4  ;;  %v5534_v6 = vpack.c.bf16 %v2166_v53, %v2166_v53 }
 0x1b3   : > { %1961 = vrot.lane.b32.xlu0 %v1956_v38, %s8939_s15  ;;  %2036 = vrot.lane.b32.xlu1 %v5528_v52, %s8941_s17  ;;  %v2318_v38 = vmul.f32 %v2309_v18, %v6428_v36 }
 0x1b4   : > { %v359_v44 = vsel %vm355_vm11, %v353_v46, %v354_v43  ;;  %v439_v7 = vsel %vm355_vm11, %v434_v30, %v435_v59  ;;  %v5536_v30 = vpack.c.bf16 %v2240_v4, %v2239_v45 }
 0x1b5   : > { %v360_v62 = vsel %vm357_vm9, %v6901_v33, %v359_v44  ;;  %v440_v23 = vsel %vm437_vm6, %v6920_v24, %v439_v7  ;;  %v509_v58 = vpop.permute.xlu0 %508  ;;  %v589_v21 = vpop.permute.xlu1 %588  ;;  %v5533_v33 = vpack.c.bf16 %v2165_v39, %v2164_v35  ;;  %v5900_v44 = vmov 0  }
 0x1b6   : > { %364 = vst [vmem:[#allocation2 + $0x8] sm:$0x33] %v360_v62  ;;  %444 = vst [vmem:[#allocation2 + $0x8] sm:$0xcc] %v440_v23  ;;  %v512_v55 = vrot.slane %v509_v58, 4  ;;  %v592_v46 = vrot.slane %v589_v21, 4  ;;  %2575 = vmatprep.mubr.bf16.mxu0 %v5900_v44  ;;  %2616 = vmatprep.mubr.bf16.mxu1 %v5900_v44 }
 0x1b7   : > { %2114 = vrot.lane.b32.xlu0 %v2109_v50, %s8947_s12  ;;  %2185 = vrot.lane.b32.xlu1 %v5532_v22, %s8945_s13 }
 0x1b8   : > { %v516_v29 = vsel %vm355_vm11, %v511_v28, %v512_v55  ;;  %v596_v24 = vsel %vm355_vm11, %v591_v37, %v592_v46  ;;  %v2308_v28 = vsel %vm357_vm9, %v6861_v32, %v6882_v57  ;;  %v5538_v37 = vpack.c.bf16 %v2316_v11, %v2315_v15  ;;  %5702 = vset.pattern.permute.xlu0 %v5900_v44  ;;  %v2384_v55 = vld [vmem:[%s8902_s3] sm:$0xff] }
 0x1b9   : > { %v517_v47 = vsel %vm514_vm7, %v6929_v19, %v516_v29  ;;  %v597_v10 = vsel %vm594_vm4, %v587_v9, %v596_v24  ;;  %v662_v31 = vpop.permute.xlu0 %661  ;;  %v6993_v48 = vpop.permute.xlu1 %663  ;;  %v5703_v8 = vld [vmem:[#allocation2 + $0x4] ss:$16 sps:$4 sm:$0xff]   ;;  %v5705_v63 = vld [vmem:[#allocation2] ss:$16 sps:$4 sm:$0xff]   ;;  %v2241_v19 = vmul.f32 0.0, %v6821_v0  ;;  %v2261_v9 = vrot.slane %v5536_v30, 6 }
 0x1ba   : > { %521 = vst [vmem:[#allocation2 + $0x18] sm:$0x33] %v517_v47  ;;  %601 = vst [vmem:[#allocation2 + $0x18] sm:$0xcc] %v597_v10  ;;  %v667_v34 = vrot.slane %v662_v31, 4  ;;  %v668_v20 = vrot.slane %v6993_v48, 4  ;;  %2543 = vmatprep.subr.bf16.mxu0 %v5703_v8  ;;  %v2317_v57 = vmul.f32 %v2308_v28, %v6375_v56 }
 0x1bb   : > { %2187 = vrot.lane.b32.xlu0 %v5533_v33, %s8945_s13  ;;  %2263 = vrot.lane.b32.xlu1 %v2260_v42, %s8943_s9  ;;  %v5537_v0 = vpack.c.bf16 %v2241_v19, %v2241_v19  ;;  %v2319_v56 = vmul.f32 0.0, %v6880_v60  ;;  %v2656_v46 = vld [vmem:[#allocation3] ss:$8 sm:$0xf] }
 0x1bc   : > { %v670_v32 = vsel %vm355_vm11, %v667_v34, %v668_v20  ;;  %2544 = vmatpush1.bf16.msra.mxu0 %v5705_v63  ;;  %v5539_v16 = vpack.c.bf16 %v2318_v38, %v2317_v57  ;;  %v2661_v24 = vrot.slane %v2656_v46, %v6059_v3  ;;  %v2665_v15 = vrot.slane %v2656_v46, %v6063_v5  ;;  %v2730_v10 = vld [vmem:[#allocation3 + $0x1] ss:$8 sm:$0xf] }
 0x1bd   : > { %v672_v52 = vsel %vm629_vm5, %v662_v31, %v670_v32  ;;  %v742_v25 = vpop.permute.xlu0 %741  ;;  %v744_v17 = vpop.permute.xlu1 %743  ;;  %v2262_v59 = vrot.slane %v5537_v0, 6  ;;  %v5540_v54 = vpack.c.bf16 %v2319_v56, %v2319_v56  ;;  %v2669_v31 = vrot.slane %v2656_v46, %v6057_v2  ;;  %v2804_v0 = vld [vmem:[#allocation3 + $0x2] ss:$8 sm:$0xf] }
 0x1be   : > { %677 = vst [vmem:[#allocation2 + $0x20] sm:$0x33] %v672_v52  ;;  %v747_v12 = vrot.slane %v742_v25, 4  ;;  %v748_v13 = vrot.slane %v744_v17, 4  ;;  %v2813_v44 = vrot.slane %v2804_v0, %v6063_v5 }
 0x1bf   : > { %2265 = vrot.lane.b32.xlu0 %v2261_v9, %s8943_s9  ;;  %2338 = vrot.lane.b32.xlu1 %v5538_v37, %s9063_s26  ;;  %v2735_v9 = vrot.slane %v2730_v10, %v6059_v3  ;;  %v2673_v37 = vrot.slane %v2656_v46, %v9057_v61 }
 0x1c0   : > { %v750_v49 = vsel %vm355_vm11, %v747_v12, %v748_v13 }
 0x1c1   : > { %v752_v36 = vsel %vm549_vm2, %v742_v25, %v750_v49  ;;  %v819_v41 = vpop.permute.xlu0 %818  ;;  %v821_v40 = vpop.permute.xlu1 %820  ;;  %v5706_v51 = vld [vmem:[#allocation2 + $0xc] ss:$16 sps:$4 sm:$0xff]   ;;  %v5708_v27 = vld [vmem:[#allocation2 + $0x8] ss:$16 sps:$4 sm:$0xff]   ;;  %v2739_v49 = vrot.slane %v2730_v10, %v6063_v5 }
 0x1c2   : > { %757 = vst [vmem:[#allocation2 + $0x20] sm:$0xcc] %v752_v36  ;;  %v824_v26 = vrot.slane %v819_v41, 4  ;;  %v825_v1 = vrot.slane %v821_v40, 4  ;;  %2584 = vmatprep.subr.bf16.mxu1 %v5706_v51  ;;  %v2809_v51 = vrot.slane %v2804_v0, %v6059_v3 }
 0x1c3   : > { %2340 = vrot.lane.b32.xlu0 %v5539_v16, %s9063_s26  ;;  %2189 = vrot.lane.b32.xlu1 %v5534_v6, %s8945_s13 }
 0x1c4   : > { %v827_v43 = vsel %vm355_vm11, %v824_v26, %v825_v1  ;;  %2585 = vmatpush1.bf16.msra.mxu1 %v5708_v27 }
 0x1c5   : > { %v829_v60 = vsel %vm472_vm3, %v819_v41, %v827_v43  ;;  %v899_v45 = vpop.permute.xlu0 %898  ;;  %v901_v4 = vpop.permute.xlu1 %900 }
 0x1c6   : > { %834 = vst [vmem:[#allocation2 + $0x30] sm:$0x33] %v829_v60  ;;  %v904_v35 = vrot.slane %v899_v45, 4  ;;  %v905_v39 = vrot.slane %v901_v4, 4 }
 0x1c7   : > { %2267 = vrot.lane.b32.xlu0 %v2262_v59, %s8943_s9  ;;  %2342 = vrot.lane.b32.xlu1 %v5540_v54, %s9063_s26 }
 0x1c8   : > { %v907_v7 = vsel %vm355_vm11, %v904_v35, %v905_v39 }
 0x1c9   : > { %v909_v50 = vsel %vm392_vm0, %v899_v45, %v907_v7  ;;  %v666_v22 = vpop.permute.xlu0 %665  ;;  %v746_v62 = vpop.permute.xlu1 %745  ;;  %v2817_v45 = vrot.slane %v2804_v0, %v6057_v2 }
 0x1ca   : > { %914 = vst [vmem:[#allocation2 + $0x30] sm:$0xcc] %v909_v50  ;;  %v669_v23 = vrot.slane %v666_v22, 4  ;;  %v749_v58 = vrot.slane %v746_v62, 4 }
 0x1cb   : > { %2387 = vperm.xlu0 %5702, %v2384_v55   ;;  %2674 = vrot.lane.b32.xlu1 %v2661_v24, %s9063_s26 }
 0x1cc   : > { %v673_v21 = vsel %vm355_vm11, %v668_v20, %v669_v23  ;;  %v753_v14 = vsel %vm355_vm11, %v748_v13, %v749_v58 }
 0x1cd   : > { %v674_v42 = vsel %vm629_vm5, %v6993_v48, %v673_v21  ;;  %v754_v30 = vsel %vm549_vm2, %v744_v17, %v753_v14  ;;  %v823_v33 = vpop.permute.xlu0 %822  ;;  %v903_v29 = vpop.permute.xlu1 %902  ;;  %v2743_v17 = vrot.slane %v2730_v10, %v6057_v2  ;;  %v2821_v14 = vrot.slane %v2804_v0, %v9057_v61 }
 0x1ce   : > { %678 = vst [vmem:[#allocation2 + $0x28] sm:$0x33] %v674_v42  ;;  %758 = vst [vmem:[#allocation2 + $0x28] sm:$0xcc] %v754_v30  ;;  %v826_v11 = vrot.slane %v823_v33, 4  ;;  %v906_v47 = vrot.slane %v903_v29, 4 }
 0x1cf   : > { %2676 = vrot.lane.b32.xlu0 %v2665_v15, %s9063_s26  ;;  %2678 = vrot.lane.b32.xlu1 %v2669_v31, %s9063_s26 }
 0x1d0   : > { %v830_v48 = vsel %vm355_vm11, %v825_v1, %v826_v11  ;;  %v910_v8 = vsel %vm355_vm11, %v905_v39, %v906_v47  ;;  %v2747_v1 = vrot.slane %v2730_v10, %v9057_v61  ;;  %v2878_v39 = vld [vmem:[#allocation3 + $0x3] ss:$8 sm:$0xf]  ;;  %v2952_v47 = vld [vmem:[#allocation3 + $0x4] ss:$8 sm:$0xf] }
 0x1d1   : > { %v831_v63 = vsel %vm472_vm3, %v821_v40, %v830_v48  ;;  %v911_v28 = vsel %vm392_vm0, %v901_v4, %v910_v8  ;;  %v976_v18 = vpop.permute.xlu0 %975  ;;  %v7039_v34 = vpop.permute.xlu1 %977  ;;  %v5709_v20 = vld [vmem:[#allocation2 + $0x24] ss:$16 sps:$4 sm:$0xff]   ;;  %v5711_v19 = vld [vmem:[#allocation2 + $0x20] ss:$16 sps:$4 sm:$0xff]   ;;  %v2883_v23 = vrot.slane %v2878_v39, %v6059_v3  ;;  %v2891_v24 = vrot.slane %v2878_v39, %v6057_v2 }
 0x1d2   : > { %835 = vst [vmem:[#allocation2 + $0x38] sm:$0x33] %v831_v63  ;;  %915 = vst [vmem:[#allocation2 + $0x38] sm:$0xcc] %v911_v28  ;;  %v981_v53 = vrot.slane %v976_v18, 4  ;;  %v982_v32 = vrot.slane %v7039_v34, 4  ;;  %2545 = vmatprep.subr.bf16.mxu0 %v5709_v20  ;;  %v2887_v10 = vrot.slane %v2878_v39, %v6063_v5  ;;  %v2961_v0 = vrot.slane %v2952_v47, %v6063_v5 }
 0x1d3   : > { %2546 = vmatpush1.bf16.msra.mxu0 %v5711_v19  ;;  %2748 = vrot.lane.b32.xlu0 %v2735_v9, %s8943_s9  ;;  %v2957_v19 = vrot.slane %v2952_v47, %v6059_v3 }
 0x1d4   : > { %v984_v57 = vsel %vm355_vm11, %v981_v53, %v982_v32  ;;  %2680 = vrot.lane.b32.xlu1 %v2673_v37, %s9063_s26 }
 0x1d5   : > { %v986_v38 = vsel %vm314_vm1, %v976_v18, %v984_v57  ;;  %v1056_v52 = vpop.permute.xlu0 %1055  ;;  %v1058_v25 = vpop.permute.xlu1 %1057 }
 0x1d6   : > { %991 = vst [vmem:[#allocation2 + $0x40] sm:$0x33] %v986_v38  ;;  %v1061_v12 = vrot.slane %v1056_v52, 4  ;;  %v1062_v13 = vrot.slane %v1058_v25, 4 }
 0x1d7   : > { %2752 = vrot.lane.b32.xlu0 %v2743_v17, %s8943_s9 }
 0x1d8   : > { %v1064_v6 = vsel %vm355_vm11, %v1061_v12, %v1062_v13  ;;  %2750 = vrot.lane.b32.xlu1 %v2739_v49, %s8943_s9 }
 0x1d9   : > { %v1066_v56 = vsel %vm8937_vm15, %v1056_v52, %v1064_v6  ;;  %v1133_v16 = vpop.permute.xlu0 %1132  ;;  %v1135_v36 = vpop.permute.xlu1 %1134  ;;  %v5712_v41 = vld [vmem:[#allocation2 + $0x2c] ss:$16 sps:$4 sm:$0xff]   ;;  %v5714_v40 = vld [vmem:[#allocation2 + $0x28] ss:$16 sps:$4 sm:$0xff]  }
 0x1da   : > { %1071 = vst [vmem:[#allocation2 + $0x40] sm:$0xcc] %v1066_v56  ;;  %v1138_v27 = vrot.slane %v1133_v16, 4  ;;  %v1139_v26 = vrot.slane %v1135_v36, 4  ;;  %2586 = vmatprep.subr.bf16.mxu1 %v5712_v41 }
 0x1db   : > { %2587 = vmatpush1.bf16.msra.mxu1 %v5714_v40  ;;  %2822 = vrot.lane.b32.xlu0 %v2809_v51, %s8945_s13 }
 0x1dc   : > { %v1141_v43 = vsel %vm355_vm11, %v1138_v27, %v1139_v26  ;;  %2754 = vrot.lane.b32.xlu1 %v2747_v1, %s8943_s9 }
 0x1dd   : > { %v1143_v59 = vsel %vm8938_vm8, %v1133_v16, %v1141_v43  ;;  %v1213_v54 = vpop.permute.xlu0 %1212  ;;  %v1215_v60 = vpop.permute.xlu1 %1214 }
 0x1de   : > { %1148 = vst [vmem:[#allocation2 + $0x50] sm:$0x33] %v1143_v59  ;;  %v1218_v4 = vrot.slane %v1213_v54, 4  ;;  %v1219_v35 = vrot.slane %v1215_v60, 4 }
 0x1df   : > { %2826 = vrot.lane.b32.xlu0 %v2817_v45, %s8945_s13 }
 0x1e0   : > { %v1221_v7 = vsel %vm355_vm11, %v1218_v4, %v1219_v35  ;;  %2824 = vrot.lane.b32.xlu1 %v2813_v44, %s8945_s13 }
 0x1e1   : > { %v1223_v50 = vsel %vm9018_vm13, %v1213_v54, %v1221_v7  ;;  %v980_v22 = vpop.permute.xlu0 %979  ;;  %v1060_v62 = vpop.permute.xlu1 %1059 }
 0x1e2   : > { %1228 = vst [vmem:[#allocation2 + $0x50] sm:$0xcc] %v1223_v50  ;;  %v983_v58 = vrot.slane %v980_v22, 4  ;;  %v1063_v21 = vrot.slane %v1060_v62, 4 }
 0x1e3   : > { %2896 = vrot.lane.b32.xlu0 %v2883_v23, %s8947_s12 }
 0x1e4   : > { %v987_v55 = vsel %vm355_vm11, %v982_v32, %v983_v58  ;;  %v1067_v46 = vsel %vm355_vm11, %v1062_v13, %v1063_v21  ;;  %2828 = vrot.lane.b32.xlu1 %v2821_v14, %s8945_s13  ;;  %v2895_v32 = vrot.slane %v2878_v39, %v9057_v61  ;;  %v3026_v13 = vld [vmem:[#allocation3 + $0x5] ss:$8 sm:$0xf] }
 0x1e5   : > { %v988_v42 = vsel %vm314_vm1, %v7039_v34, %v987_v55  ;;  %v1068_v30 = vsel %vm8937_vm15, %v1058_v25, %v1067_v46  ;;  %v1137_v33 = vpop.permute.xlu0 %1136  ;;  %v1217_v29 = vpop.permute.xlu1 %1216  ;;  %v2965_v25 = vrot.slane %v2952_v47, %v6057_v2  ;;  %v3031_v40 = vrot.slane %v3026_v13, %v6059_v3 }
 0x1e6   : > { %992 = vst [vmem:[#allocation2 + $0x48] sm:$0x33] %v988_v42  ;;  %1072 = vst [vmem:[#allocation2 + $0x48] sm:$0xcc] %v1068_v30  ;;  %v1140_v15 = vrot.slane %v1137_v33, 4  ;;  %v1220_v11 = vrot.slane %v1217_v29, 4  ;;  %v3035_v39 = vrot.slane %v3026_v13, %v6063_v5  ;;  %v3043_v14 = vrot.slane %v3026_v13, %v9057_v61 }
 0x1e7   : > { %2900 = vrot.lane.b32.xlu0 %v2891_v24, %s8947_s12  ;;  %vm9065_vm15 = vcmask 982016  }
 0x1e8   : > { %v1144_v31 = vsel %vm355_vm11, %v1139_v26, %v1140_v15  ;;  %v1224_v48 = vsel %vm355_vm11, %v1219_v35, %v1220_v11  ;;  %2898 = vrot.lane.b32.xlu1 %v2887_v10, %s8947_s12  ;;  %v2969_v26 = vrot.slane %v2952_v47, %v9057_v61  ;;  %v3100_v35 = vld [vmem:[#allocation3 + $0x6] ss:$8 sm:$0xf]  ;;  %v3174_v47 = vld [vmem:[#allocation3 + $0x7] ss:$8 sm:$0xf] }
 0x1e9   : > { %v1145_v8 = vsel %vm8938_vm8, %v1135_v36, %v1144_v31  ;;  %v1225_v63 = vsel %vm9018_vm13, %v1215_v60, %v1224_v48  ;;  %v1290_v28 = vpop.permute.xlu0 %1289  ;;  %v1292_v18 = vpop.permute.xlu1 %1291  ;;  %v5715_v34 = vld [vmem:[#allocation2 + $0x44] ss:$16 sps:$4 sm:$0xff]   ;;  %v5717_v20 = vld [vmem:[#allocation2 + $0x40] ss:$16 sps:$4 sm:$0xff]   ;;  %v3039_v60 = vrot.slane %v3026_v13, %v6057_v2  ;;  %v3105_v58 = vrot.slane %v3100_v35, %v6059_v3 }
 0x1ea   : > { %1149 = vst [vmem:[#allocation2 + $0x58] sm:$0x33] %v1145_v8  ;;  %1229 = vst [vmem:[#allocation2 + $0x58] sm:$0xcc] %v1225_v63  ;;  %v1295_v9 = vrot.slane %v1290_v28, 4  ;;  %v1296_v53 = vrot.slane %v1292_v18, 4  ;;  %2547 = vmatprep.subr.bf16.mxu0 %v5715_v34  ;;  %v3113_v24 = vrot.slane %v3100_v35, %v6057_v2  ;;  %v3109_v10 = vrot.slane %v3100_v35, %v6063_v5 }
 0x1eb   : > { %2548 = vmatpush1.bf16.msra.mxu0 %v5717_v20  ;;  %2970 = vrot.lane.b32.xlu0 %v2957_v19, %s8941_s17  ;;  %v3117_v20 = vrot.slane %v3100_v35, %v9057_v61  ;;  %vm9066_vm8 = vcmask 973824  }
 0x1ec   : > { %v1298_v37 = vsel %vm355_vm11, %v1295_v9, %v1296_v53  ;;  %2902 = vrot.lane.b32.xlu1 %v2895_v32, %s8947_s12 }
 0x1ed   : > { %v1300_v57 = vsel %vm9017_vm14, %v1290_v28, %v1298_v37  ;;  %v1414_v38 = vpop.permute.xlu0 %1413  ;;  %v1416_v52 = vpop.permute.xlu1 %1415  ;;  %v3179_v28 = vrot.slane %v3174_v47, %v6059_v3 }
 0x1ee   : > { %1305 = vst [vmem:[#allocation2 + $0x60] sm:$0x33] %v1300_v57  ;;  %v1419_v17 = vrot.slane %v1414_v38, 4  ;;  %v1420_v12 = vrot.slane %v1416_v52, 4 }
 0x1ef   : > { %2974 = vrot.lane.b32.xlu0 %v2965_v25, %s8941_s17 }
 0x1f0   : > { %v1422_v49 = vsel %vm355_vm11, %v1419_v17, %v1420_v12  ;;  %2972 = vrot.lane.b32.xlu1 %v2961_v0, %s8941_s17  ;;  %v3248_v17 = vld [vmem:[#allocation3 + $0x20] ss:$8 sm:$0xf] }
 0x1f1   : > { %v1424_v6 = vsel %vm1257_vm12, %v1414_v38, %v1422_v49  ;;  %v1494_v56 = vpop.permute.xlu0 %1493  ;;  %v1496_v16 = vpop.permute.xlu1 %1495  ;;  %v5718_v36 = vld [vmem:[#allocation2 + $0x4c] ss:$16 sps:$4 sm:$0xff]   ;;  %v5720_v41 = vld [vmem:[#allocation2 + $0x48] ss:$16 sps:$4 sm:$0xff]   ;;  %v3187_v38 = vrot.slane %v3174_v47, %v6057_v2  ;;  %v3257_v35 = vrot.slane %v3248_v17, %v6063_v5 }
 0x1f2   : > { %1429 = vst [vmem:[#allocation2 + $0x70] sm:$0x33] %v1424_v6  ;;  %v1499_v51 = vrot.slane %v1494_v56, 4  ;;  %v1500_v27 = vrot.slane %v1496_v16, 4  ;;  %2588 = vmatprep.subr.bf16.mxu1 %v5718_v36 }
 0x1f3   : > { %2589 = vmatpush1.bf16.msra.mxu1 %v5720_v41  ;;  %3044 = vrot.lane.b32.xlu0 %v3031_v40, %s8939_s15  ;;  %v3191_v40 = vrot.slane %v3174_v47, %v9057_v61 }
 0x1f4   : > { %v1502_v1 = vsel %vm355_vm11, %v1499_v51, %v1500_v27  ;;  %2976 = vrot.lane.b32.xlu1 %v2969_v26, %s8941_s17  ;;  %s9071_s17 = smov 9  }
 0x1f5   : > { %v1504_v43 = vsel %vm1177_vm10, %v1494_v56, %v1502_v1  ;;  %v1294_v59 = vpop.permute.xlu0 %1293  ;;  %v1418_v54 = vpop.permute.xlu1 %1417  ;;  %v3253_v56 = vrot.slane %v3248_v17, %v6059_v3 }
 0x1f6   : > { %1509 = vst [vmem:[#allocation2 + $0x70] sm:$0xcc] %v1504_v43  ;;  %v1297_v45 = vrot.slane %v1294_v59, 4  ;;  %v1421_v4 = vrot.slane %v1418_v54, 4  ;;  %v3261_v54 = vrot.slane %v3248_v17, %v6057_v2 }
 0x1f7   : > { %3048 = vrot.lane.b32.xlu0 %v3039_v60, %s8939_s15 }
 0x1f8   : > { %v1301_v44 = vsel %vm355_vm11, %v1296_v53, %v1297_v45  ;;  %v1425_v7 = vsel %vm355_vm11, %v1420_v12, %v1421_v4  ;;  %3046 = vrot.lane.b32.xlu1 %v3035_v39, %s8939_s15  ;;  %v3183_v12 = vrot.slane %v3174_v47, %v6063_v5  ;;  %v3322_v4 = vld [vmem:[#allocation3 + $0x21] ss:$8 sm:$0xf] }
 0x1f9   : > { %v1302_v50 = vsel %vm9017_vm14, %v1292_v18, %v1301_v44  ;;  %v1426_v22 = vsel %vm1257_vm12, %v1416_v52, %v1425_v7  ;;  %v1498_v62 = vpop.permute.xlu0 %1497  ;;  %v1571_v23 = vpop.permute.xlu1 %1570  ;;  %v3331_v47 = vrot.slane %v3322_v4, %v6063_v5 }
 0x1fa   : > { %1306 = vst [vmem:[#allocation2 + $0x68] sm:$0x33] %v1302_v50  ;;  %1430 = vst [vmem:[#allocation2 + $0x78] sm:$0x33] %v1426_v22  ;;  %v1501_v21 = vrot.slane %v1498_v62, 4  ;;  %v1576_v15 = vrot.slane %v1571_v23, 4 }
 0x1fb   : > { %3118 = vrot.lane.b32.xlu0 %v3105_v58, %s9064_s16 }
 0x1fc   : > { %v1505_v55 = vsel %vm355_vm11, %v1500_v27, %v1501_v21  ;;  %3050 = vrot.lane.b32.xlu1 %v3043_v14, %s8939_s15  ;;  %s9069_s15 = smov 73   ;;  %v3265_v21 = vrot.slane %v3248_v17, %v9057_v61 }
 0x1fd   : > { %v1506_v46 = vsel %vm1177_vm10, %v1496_v16, %v1505_v55  ;;  %v1573_v42 = vpop.permute.xlu0 %1572  ;;  %v1651_v30 = vpop.permute.xlu1 %1650  ;;  %v5721_v33 = vld [vmem:[#allocation2 + $0x64] ss:$16 sps:$4 sm:$0xff]   ;;  %v5723_v29 = vld [vmem:[#allocation2 + $0x60] ss:$16 sps:$4 sm:$0xff]  }
 0x1fe   : > { %1510 = vst [vmem:[#allocation2 + $0x78] sm:$0xcc] %v1506_v46  ;;  %v1577_v11 = vrot.slane %v1573_v42, 4  ;;  %2549 = vmatprep.subr.bf16.mxu0 %v5721_v33  ;;  %v1656_v18 = vrot.slane %v1651_v30, 4 }
 0x1ff   : > { %2550 = vmatpush1.bf16.msra.mxu0 %v5723_v29  ;;  %3122 = vrot.lane.b32.xlu0 %v3113_v24, %s9064_s16  ;;  %v3335_v29 = vrot.slane %v3322_v4, %v6057_v2 }
 0x200   : > { %v1579_v31 = vsel %vm355_vm11, %v1576_v15, %v1577_v11  ;;  %3120 = vrot.lane.b32.xlu1 %v3109_v10, %s9064_s16 }
 0x201   : > { %v1581_v48 = vsel %vm9065_vm15, %v1571_v23, %v1579_v31  ;;  %v1653_v8 = vpop.permute.xlu0 %1652  ;;  %v1727_v63 = vpop.permute.xlu1 %1726  ;;  %v3327_v23 = vrot.slane %v3322_v4, %v6059_v3 }
 0x202   : > { %1586 = vst [vmem:[#allocation2 + $0x80] sm:$0x33] %v1581_v48  ;;  %v1657_v34 = vrot.slane %v1653_v8, 4  ;;  %v1732_v52 = vrot.slane %v1727_v63, 4 }
 0x203   : > { %3192 = vrot.lane.b32.xlu0 %v3179_v28, %s9067_s18 }
 0x204   : > { %v1659_v19 = vsel %vm355_vm11, %v1656_v18, %v1657_v34  ;;  %3124 = vrot.lane.b32.xlu1 %v3117_v20, %s9064_s16 }
 0x205   : > { %v1661_v9 = vsel %vm9066_vm8, %v1651_v30, %v1659_v19  ;;  %v1729_v53 = vpop.permute.xlu0 %1728  ;;  %v1805_v32 = vpop.permute.xlu1 %1804  ;;  %v5724_v37 = vld [vmem:[#allocation2 + $0x6c] ss:$16 sps:$4 sm:$0xff]   ;;  %v5726_v57 = vld [vmem:[#allocation2 + $0x68] ss:$16 sps:$4 sm:$0xff]   ;;  %vm9068_vm8 = vmmov %vm9065_vm15  ;;  %vm9070_vm15 = vcmask 973824  }
 0x206   : > { %1666 = vst [vmem:[#allocation2 + $0x80] sm:$0xcc] %v1661_v9  ;;  %v1733_v25 = vrot.slane %v1729_v53, 4  ;;  %2590 = vmatprep.subr.bf16.mxu1 %v5724_v37  ;;  %v1810_v16 = vrot.slane %v1805_v32, 4 }
 0x207   : > { %2591 = vmatpush1.bf16.msra.mxu1 %v5726_v57  ;;  %3196 = vrot.lane.b32.xlu0 %v3187_v38, %s9067_s18 }
 0x208   : > { %v1735_v13 = vsel %vm355_vm11, %v1732_v52, %v1733_v25  ;;  %3194 = vrot.lane.b32.xlu1 %v3183_v12, %s9067_s18 }
 0x209   : > { %v1736_v0 = vsel %vm357_vm9, %v1727_v63, %v1735_v13  ;;  %v1807_v49 = vpop.permute.xlu0 %1806  ;;  %v1575_v6 = vpop.permute.xlu1 %1574 }
 0x20a   : > { %1741 = vst [vmem:[#allocation2 + $0x90] sm:$0x33] %v1736_v0  ;;  %v1811_v36 = vrot.slane %v1807_v49, 4  ;;  %v1578_v41 = vrot.slane %v1575_v6, 4 }
 0x20b   : > { %3266 = vrot.lane.b32.xlu0 %v3253_v56, %s9069_s15 }
 0x20c   : > { %v1813_v51 = vsel %vm355_vm11, %v1810_v16, %v1811_v36  ;;  %v1582_v27 = vsel %vm355_vm11, %v1577_v11, %v1578_v41  ;;  %3198 = vrot.lane.b32.xlu1 %v3191_v40, %s9067_s18  ;;  %v3396_v11 = vld [vmem:[#allocation3 + $0x22] ss:$8 sm:$0xf] }
 0x20d   : > { %v1814_v26 = vsel %vm437_vm6, %v1805_v32, %v1813_v51  ;;  %v1583_v1 = vsel %vm9068_vm8, %v1573_v42, %v1582_v27  ;;  %v1655_v43 = vpop.permute.xlu0 %1654  ;;  %v1731_v59 = vpop.permute.xlu1 %1730  ;;  %v3401_v63 = vrot.slane %v3396_v11, %v6059_v3  ;;  %v3409_v57 = vrot.slane %v3396_v11, %v6057_v2 }
 0x20e   : > { %1819 = vst [vmem:[#allocation2 + $0x90] sm:$0xcc] %v1814_v26  ;;  %1587 = vst [vmem:[#allocation2 + $0x88] sm:$0x33] %v1583_v1  ;;  %v1658_v60 = vrot.slane %v1655_v43, 4  ;;  %v1734_v45 = vrot.slane %v1731_v59, 4  ;;  %v3405_v17 = vrot.slane %v3396_v11, %v6063_v5  ;;  %v3413_v41 = vrot.slane %v3396_v11, %v9057_v61 }
 0x20f   : > { %3270 = vrot.lane.b32.xlu0 %v3261_v54, %s9069_s15  ;;  %vm2530_vm8 = vcmask 1045504  }
 0x210   : > { %v1662_v39 = vsel %vm355_vm11, %v1657_v34, %v1658_v60  ;;  %v1737_v44 = vsel %vm355_vm11, %v1733_v25, %v1734_v45  ;;  %3268 = vrot.lane.b32.xlu1 %v3257_v35, %s9069_s15  ;;  %v3339_v34 = vrot.slane %v3322_v4, %v9057_v61  ;;  %v3470_v25 = vld [vmem:[#allocation3 + $0x23] ss:$8 sm:$0xf] }
 0x211   : > { %v1663_v7 = vsel %vm9070_vm15, %v1653_v8, %v1662_v39  ;;  %v1738_v50 = vsel %vm357_vm9, %v1729_v53, %v1737_v44  ;;  %v1809_v22 = vpop.permute.xlu0 %1808  ;;  %v1880_v62 = vpop.permute.xlu1 %1879  ;;  %v3475_v6 = vrot.slane %v3470_v25, %v6059_v3  ;;  %v3483_v59 = vrot.slane %v3470_v25, %v6057_v2 }
 0x212   : > { %1667 = vst [vmem:[#allocation2 + $0x88] sm:$0xcc] %v1663_v7  ;;  %1742 = vst [vmem:[#allocation2 + $0x98] sm:$0x33] %v1738_v50  ;;  %v1812_v58 = vrot.slane %v1809_v22, 4  ;;  %v1885_v24 = vrot.slane %v1880_v62, 4  ;;  %v3479_v45 = vrot.slane %v3470_v25, %v6063_v5 }
 0x213   : > { %3340 = vrot.lane.b32.xlu0 %v3327_v23, %s9062_s14  ;;  %vm2526_vm15 = vcmask 883712  }
 0x214   : > { %v1815_v14 = vsel %vm355_vm11, %v1811_v36, %v1812_v58  ;;  %3272 = vrot.lane.b32.xlu1 %v3265_v21, %s9069_s15 }
 0x215   : > { %v1816_v55 = vsel %vm437_vm6, %v1807_v49, %v1815_v14  ;;  %v1882_v46 = vpop.permute.xlu0 %1881  ;;  %v1958_v42 = vpop.permute.xlu1 %1957  ;;  %v5727_v30 = vld [vmem:[#allocation2 + $0x84] ss:$16 sps:$4 sm:$0xff]   ;;  %v5729_v33 = vld [vmem:[#allocation2 + $0x80] ss:$16 sps:$4 sm:$0xff]  }
 0x216   : > { %1820 = vst [vmem:[#allocation2 + $0x98] sm:$0xcc] %v1816_v55  ;;  %v1886_v15 = vrot.slane %v1882_v46, 4  ;;  %2551 = vmatprep.subr.bf16.mxu0 %v5727_v30  ;;  %v1963_v28 = vrot.slane %v1958_v42, 4 }
 0x217   : > { %2552 = vmatpush1.bf16.msra.mxu0 %v5729_v33  ;;  %3344 = vrot.lane.b32.xlu0 %v3335_v29, %s9062_s14 }
 0x218   : > { %v1888_v10 = vsel %vm355_vm11, %v1885_v24, %v1886_v15  ;;  %3342 = vrot.lane.b32.xlu1 %v3331_v47, %s9062_s14 }
 0x219   : > { %v1889_v31 = vsel %vm514_vm7, %v1880_v62, %v1888_v10  ;;  %v1960_v48 = vpop.permute.xlu0 %1959  ;;  %v2033_v8 = vpop.permute.xlu1 %2032  ;;  %v3487_v62 = vrot.slane %v3470_v25, %v9057_v61 }
 0x21a   : > { %1894 = vst [vmem:[#allocation2 + $0xa0] sm:$0x33] %v1889_v31  ;;  %v1964_v18 = vrot.slane %v1960_v48, 4  ;;  %v2038_v38 = vrot.slane %v2033_v8, 4 }
 0x21b   : > { %3414 = vrot.lane.b32.xlu0 %v3401_v63, %s9061_s19 }
 0x21c   : > { %v1966_v20 = vsel %vm355_vm11, %v1963_v28, %v1964_v18  ;;  %3346 = vrot.lane.b32.xlu1 %v3339_v34, %s9062_s14 }
 0x21d   : > { %v1967_v19 = vsel %vm594_vm4, %v1958_v42, %v1966_v20  ;;  %v2035_v9 = vpop.permute.xlu0 %2034  ;;  %v2111_v53 = vpop.permute.xlu1 %2110  ;;  %v5730_v32 = vld [vmem:[#allocation2 + $0x8c] ss:$16 sps:$4 sm:$0xff]   ;;  %v5732_v37 = vld [vmem:[#allocation2 + $0x88] ss:$16 sps:$4 sm:$0xff]  }
 0x21e   : > { %1972 = vst [vmem:[#allocation2 + $0xa0] sm:$0xcc] %v1967_v19  ;;  %v2039_v52 = vrot.slane %v2035_v9, 4  ;;  %2592 = vmatprep.subr.bf16.mxu1 %v5730_v32  ;;  %v2116_v56 = vrot.slane %v2111_v53, 4 }
 0x21f   : > { %2593 = vmatpush1.bf16.msra.mxu1 %v5732_v37  ;;  %3418 = vrot.lane.b32.xlu0 %v3409_v57, %s9061_s19 }
 0x220   : > { %v2041_v12 = vsel %vm355_vm11, %v2038_v38, %v2039_v52  ;;  %3416 = vrot.lane.b32.xlu1 %v3405_v17, %s9061_s19 }
 0x221   : > { %v2042_v13 = vsel %vm629_vm5, %v2033_v8, %v2041_v12  ;;  %v2113_v0 = vpop.permute.xlu0 %2112  ;;  %v1884_v49 = vpop.permute.xlu1 %1883 }
 0x222   : > { %2047 = vst [vmem:[#allocation2 + $0xb0] sm:$0x33] %v2042_v13  ;;  %v2117_v16 = vrot.slane %v2113_v0, 4  ;;  %v1887_v36 = vrot.slane %v1884_v49, 4 }
 0x223   : > { %3488 = vrot.lane.b32.xlu0 %v3475_v6, %s9060_s10 }
 0x224   : > { %v2119_v40 = vsel %vm355_vm11, %v2116_v56, %v2117_v16  ;;  %v1890_v51 = vsel %vm355_vm11, %v1886_v15, %v1887_v36  ;;  %3420 = vrot.lane.b32.xlu1 %v3413_v41, %s9061_s19  ;;  %v2383_v56 = vld [vmem:[#allocation6] sm:$0xf] }
 0x225   : > { %v2120_v27 = vsel %vm549_vm2, %v2111_v53, %v2119_v40  ;;  %v1891_v26 = vsel %vm514_vm7, %v1882_v46, %v1890_v51  ;;  %v1962_v1 = vpop.permute.xlu0 %1961  ;;  %v2037_v43 = vpop.permute.xlu1 %2036  ;;  %v7207_v40 = vld [vmem:[#allocation3 + $0x24] ss:$8 sm:$0xf] }
 0x226   : > { %2125 = vst [vmem:[#allocation2 + $0xb0] sm:$0xcc] %v2120_v27  ;;  %1895 = vst [vmem:[#allocation2 + $0xa8] sm:$0x33] %v1891_v26  ;;  %v1965_v54 = vrot.slane %v1962_v1, 4  ;;  %v2040_v60 = vrot.slane %v2037_v43, 4  ;;  %v3549_v51 = vrot.slane %v7207_v40, %v6059_v3  ;;  %v3557_v27 = vrot.slane %v7207_v40, %v6057_v2 }
 0x227   : > { %3492 = vrot.lane.b32.xlu0 %v3483_v59, %s9060_s10  ;;  %v7215_v26 = vld [vmem:[#allocation3 + $0x26] ss:$8 sm:$0xf]  ;;  %v7223_v59 = vld [vmem:[#allocation3 + $0x27] ss:$8 sm:$0xf] }
 0x228   : > { %v1968_v4 = vsel %vm355_vm11, %v1964_v18, %v1965_v54  ;;  %v2043_v35 = vsel %vm355_vm11, %v2039_v52, %v2040_v60  ;;  %3490 = vrot.lane.b32.xlu1 %v3479_v45, %s9060_s10  ;;  %v3667_v1 = vrot.slane %v7215_v26, %v6059_v3  ;;  %v3675_v43 = vrot.slane %v7215_v26, %v6057_v2  ;;  %v7231_v45 = vld [vmem:[#allocation3 + $0x40] ss:$8 sm:$0xf] }
 0x229   : > { %v1969_v39 = vsel %vm594_vm4, %v1960_v48, %v1968_v4  ;;  %v2044_v44 = vsel %vm629_vm5, %v2035_v9, %v2043_v35  ;;  %v2115_v7 = vpop.permute.xlu0 %2114  ;;  %v2186_v50 = vpop.permute.xlu1 %2185  ;;  %v3741_v54 = vrot.slane %v7223_v59, %v6059_v3  ;;  %v3749_v60 = vrot.slane %v7223_v59, %v6057_v2 }
 0x22a   : > { %1973 = vst [vmem:[#allocation2 + $0xa8] sm:$0xcc] %v1969_v39  ;;  %2048 = vst [vmem:[#allocation2 + $0xb8] sm:$0x33] %v2044_v44  ;;  %v2118_v22 = vrot.slane %v2115_v7, 4  ;;  %v2191_v42 = vrot.slane %v2186_v50, 4  ;;  %v3815_v4 = vrot.slane %v7231_v45, %v6059_v3  ;;  %v3823_v35 = vrot.slane %v7231_v45, %v6057_v2 }
 0x22b   : > { %3562 = vrot.lane.b32.xlu0 %v3549_v51, %s9059_s29  ;;  %v7239_v39 = vld [vmem:[#allocation3 + $0x41] ss:$8 sm:$0xf] }
 0x22c   : > { %v2121_v23 = vsel %vm355_vm11, %v2117_v16, %v2118_v22  ;;  %3494 = vrot.lane.b32.xlu1 %v3487_v62, %s9060_s10  ;;  %v3889_v44 = vrot.slane %v7239_v39, %v6059_v3  ;;  %v3897_v7 = vrot.slane %v7239_v39, %v6057_v2 }
 0x22d   : > { %v2122_v58 = vsel %vm549_vm2, %v2113_v0, %v2121_v23  ;;  %v2188_v21 = vpop.permute.xlu0 %2187  ;;  %v2264_v14 = vpop.permute.xlu1 %2263  ;;  %v5733_v55 = vld [vmem:[#allocation2 + $0xa4] ss:$16 sps:$4 sm:$0xff]   ;;  %v5735_v46 = vld [vmem:[#allocation2 + $0xa0] ss:$16 sps:$4 sm:$0xff]  }
 0x22e   : > { %2126 = vst [vmem:[#allocation2 + $0xb8] sm:$0xcc] %v2122_v58  ;;  %v2192_v30 = vrot.slane %v2188_v21, 4  ;;  %2553 = vmatprep.subr.bf16.mxu0 %v5733_v55  ;;  %v2269_v11 = vrot.slane %v2264_v14, 4 }
 0x22f   : > { %2554 = vmatpush1.bf16.msra.mxu0 %v5735_v46  ;;  %3566 = vrot.lane.b32.xlu0 %v3557_v27, %s9059_s29  ;;  %v7255_v23 = vld [vmem:[#allocation3 + $0x43] ss:$8 sm:$0xf]  ;;  %v3561_v27 = vrot.slane %v7207_v40, %v9057_v61 }
 0x230   : > { %v2194_v33 = vsel %vm355_vm11, %v2191_v42, %v2192_v30  ;;  %v4037_v58 = vrot.slane %v7255_v23, %v6059_v3  ;;  %v7271_v42 = vld [vmem:[#allocation3 + $0x45] ss:$8 sm:$0xf] }
 0x231   : > { %v2195_v29 = vsel %vm472_vm3, %v2186_v50, %v2194_v33  ;;  %v2266_v24 = vpop.permute.xlu0 %2265  ;;  %v2339_v15 = vpop.permute.xlu1 %2338  ;;  %v7247_v50 = vld [vmem:[#allocation3 + $0x42] ss:$8 sm:$0xf]  ;;  %v4193_v33 = vrot.slane %v7271_v42, %v6057_v2 }
 0x232   : > { %2200 = vst [vmem:[#allocation2 + $0xc0] sm:$0x33] %v2195_v29  ;;  %v2270_v47 = vrot.slane %v2266_v24, 4  ;;  %v2344_v18 = vrot.slane %v2339_v15, 4  ;;  %v3963_v22 = vrot.slane %v7247_v50, %v6059_v3  ;;  %v3971_v62 = vrot.slane %v7247_v50, %v6057_v2 }
 0x233   : > { %3680 = vrot.lane.b32.xlu0 %v3667_v1, %s9058_s11  ;;  %v7279_v29 = vld [vmem:[#allocation3 + $0x46] ss:$8 sm:$0xf]  ;;  %v3671_v1 = vrot.slane %v7215_v26, %v6063_v5 }
 0x234   : > { %v2272_v10 = vsel %vm355_vm11, %v2269_v11, %v2270_v47  ;;  %v7287_v11 = vld [vmem:[#allocation3 + $0x47] ss:$8 sm:$0xf] }
 0x235   : > { %v2273_v31 = vsel %vm392_vm0, %v2264_v14, %v2272_v10  ;;  %v2341_v48 = vpop.permute.xlu0 %2340  ;;  %v2190_v8 = vpop.permute.xlu1 %2189  ;;  %v5736_v63 = vld [vmem:[#allocation2 + $0xac] ss:$16 sps:$4 sm:$0xff]   ;;  %v5738_v28 = vld [vmem:[#allocation2 + $0xa8] ss:$16 sps:$4 sm:$0xff]   ;;  %v4341_v10 = vrot.slane %v7287_v11, %v6057_v2 }
 0x236   : > { %2278 = vst [vmem:[#allocation2 + $0xc0] sm:$0xcc] %v2273_v31  ;;  %v2345_v34 = vrot.slane %v2341_v48, 4  ;;  %v2193_v20 = vrot.slane %v2190_v8, 4  ;;  %2594 = vmatprep.subr.bf16.mxu1 %v5736_v63 }
 0x237   : > { %2595 = vmatpush1.bf16.msra.mxu1 %v5738_v28  ;;  %3684 = vrot.lane.b32.xlu0 %v3675_v43, %s9058_s11  ;;  %v7263_v14 = vld [vmem:[#allocation3 + $0x44] ss:$8 sm:$0xf]  ;;  %v7295_v31 = vld [vmem:[#allocation3 + $0x60] ss:$8 sm:$0xf] }
 0x238   : > { %v2347_v19 = vsel %vm355_vm11, %v2344_v18, %v2345_v34  ;;  %v2196_v9 = vsel %vm355_vm11, %v2192_v30, %v2193_v20  ;;  %v4111_v55 = vrot.slane %v7263_v14, %v6059_v3  ;;  %v4119_v46 = vrot.slane %v7263_v14, %v6057_v2  ;;  %v7303_v63 = vld [vmem:[#allocation3 + $0x61] ss:$8 sm:$0xf] }
 0x239   : > { %v2348_v53 = vsel %vm314_vm1, %v2339_v15, %v2347_v19  ;;  %v2197_v32 = vsel %vm472_vm3, %v2188_v21, %v2196_v9  ;;  %v2268_v37 = vpop.permute.xlu0 %2267  ;;  %v2343_v57 = vpop.permute.xlu1 %2342  ;;  %v4045_v21 = vrot.slane %v7255_v23, %v6057_v2  ;;  %v4185_v30 = vrot.slane %v7271_v42, %v6059_v3 }
 0x23a   : > { %2353 = vst [vmem:[#allocation2 + $0xd0] sm:$0x33] %v2348_v53  ;;  %2201 = vst [vmem:[#allocation2 + $0xc8] sm:$0x33] %v2197_v32  ;;  %v2271_v38 = vrot.slane %v2268_v37, 4  ;;  %v2346_v52 = vrot.slane %v2343_v57, 4  ;;  %v4267_v15 = vrot.slane %v7279_v29, %v6057_v2  ;;  %v4415_v8 = vrot.slane %v7295_v31, %v6057_v2 }
 0x23b   : > { %3754 = vrot.lane.b32.xlu0 %v3741_v54, %s9056_s28  ;;  %v4481_v28 = vrot.slane %v7303_v63, %v6059_v3  ;;  %v4489_v18 = vrot.slane %v7303_v63, %v6057_v2  ;;  %v3679_v54 = vrot.slane %v7215_v26, %v9057_v61 }
 0x23c   : > { %v2274_v25 = vsel %vm355_vm11, %v2270_v47, %v2271_v38  ;;  %v2349_v17 = vsel %vm355_vm11, %v2345_v34, %v2346_v52  ;;  %v4333_v47 = vrot.slane %v7287_v11, %v6059_v3 }
 0x23d   : > { %v2275_v12 = vsel %vm392_vm0, %v2266_v24, %v2274_v25  ;;  %v2350_v13 = vsel %vm314_vm1, %v2341_v48, %v2349_v17  ;;  %v4259_v24 = vrot.slane %v7279_v29, %v6059_v3  ;;  %v4407_v48 = vrot.slane %v7295_v31, %v6059_v3  ;;  %v7319_v17 = vpop.permute.xlu1 %2674 }
 0x23e   : > { %2279 = vst [vmem:[#allocation2 + $0xc8] sm:$0xcc] %v2275_v12  ;;  %2354 = vst [vmem:[#allocation2 + $0xd8] sm:$0x33] %v2350_v13 }
 0x23f   : > { %3758 = vrot.lane.b32.xlu0 %v3749_v60, %s9056_s28 }
 0x241   : > { %v5739_v0 = vld [vmem:[#allocation2 + $0xc4] ss:$16 sps:$4 sm:$0x3f]   ;;  %v5741_v49 = vld [vmem:[#allocation2 + $0xc0] ss:$16 sps:$4 sm:$0x3f]  }
 0x242   : > { %5309 = vmatprep.subr.msk.bf16.mxu0 %vm2530_vm8, %v5739_v0  ;;  %v2532_v6 = vsel %vm2530_vm8, %v5741_v49, 0 }
 0x243   : > { %2556 = vmatpush1.bf16.msra.mxu0 %v2532_v6  ;;  %3828 = vrot.lane.b32.xlu0 %v3815_v4, %s9055_s20  ;;  %v3745_v4 = vrot.slane %v7223_v59, %v6063_v5 }
 0x245   : > { %v5742_v16 = vld [vmem:[#allocation2 + $0xcc] ss:$16 sps:$4 sm:$0x3f]   ;;  %v5744_v36 = vld [vmem:[#allocation2 + $0xc8] ss:$16 sps:$4 sm:$0x3f]  }
 0x246   : > { %5311 = vmatprep.subr.msk.bf16.mxu1 %vm2530_vm8, %v5742_v16  ;;  %5310 = vmatmul.mubr.msk.bf16.vlgmr.msra.gmra.mrb[0].mxu0 %vm2526_vm15, %v2383_v56  ;;  %v2538_v41 = vsel %vm2530_vm8, %v5744_v36, 0  ;;  %vm9155_vm8 = vcmask 64512  }
 0x247   : > { %2597 = vmatpush1.bf16.msra.mxu1 %v2538_v41  ;;  %3832 = vrot.lane.b32.xlu0 %v3823_v35, %s9055_s20  ;;  %v3553_v41 = vrot.slane %v7207_v40, %v6063_v5  ;;  %v7351_v40 = vld [vmem:[#allocation3 + $0x62] ss:$8 sm:$0xf] }
 0x248   : > { %v4555_v35 = vrot.slane %v7351_v40, %v6059_v3 }
 0x24a   : > { %5312 = vmatmul.mubr.msk.bf16.vlgmr.msra.gmra.mrb[0].mxu1 %vm2526_vm15, %v2383_v56  ;;  %v2388_v34 = vpop.permute.xlu0 %2387  ;;  %v7325_v56 = vpop.permute.xlu1 %2678  ;;  %vm9159_vm15 = vmmov %vm9155_vm8 }
 0x24b   : > { %3902 = vrot.lane.b32.xlu0 %v3889_v44, %s9071_s17  ;;  %v3753_v44 = vrot.slane %v7223_v59, %v9057_v61  ;;  %v3827_v59 = vrot.slane %v7231_v45, %v9057_v61 }
 0x24e   : > { %v7327_v16 = vpop.permute.xlu1 %2680 }
 0x24f   : > { %3906 = vrot.lane.b32.xlu0 %v3897_v7, %s9071_s17  ;;  %v7358_v7 = vpop.permute.xlu0 %2676 }
 0x252   : > { %v7329_v36 = vpop.permute.xlu1 %2750 }
 0x253   : > { %3976 = vrot.lane.b32.xlu0 %v3963_v22, %s9063_s26  ;;  %v4563_v22 = vrot.slane %v7351_v40, %v6057_v2 }
 0x256   : > { %v7333_v51 = vpop.permute.xlu1 %2754 }
 0x257   : > { %3980 = vrot.lane.b32.xlu0 %v3971_v62, %s9063_s26  ;;  %v3819_v62 = vrot.slane %v7231_v45, %v6063_v5  ;;  %v3975_v45 = vrot.slane %v7247_v50, %v9057_v61 }
 0x25a   : > { %v7341_v43 = vpop.permute.xlu1 %2824 }
 0x25b   : > { %4050 = vrot.lane.b32.xlu0 %v4037_v58, %s8943_s9  ;;  %v7368_v58 = vpop.permute.xlu0 %2748 }
 0x25e   : > { %v7346_v60 = vpop.permute.xlu1 %2828 }
 0x25f   : > { %4054 = vrot.lane.b32.xlu0 %v4045_v21, %s8943_s9  ;;  %s9072_s9 = smov 64  }
 0x262   : > { %v7361_v26 = vpop.permute.xlu1 %2898 }
 0x263   : > { %4124 = vrot.lane.b32.xlu0 %v4111_v55, %s8945_s13  ;;  %v3893_v55 = vrot.slane %v7239_v39, %v6063_v5 }
 0x266   : > { %v7371_v21 = vpop.permute.xlu1 %2902 }
 0x267   : > { %4128 = vrot.lane.b32.xlu0 %v4119_v46, %s8945_s13  ;;  %s9073_s13 = smov 65  }
 0x26a   : > { %v7379_v46 = vpop.permute.xlu1 %2972 }
 0x26b   : > { %4198 = vrot.lane.b32.xlu0 %v4185_v30, %s8947_s12  ;;  %v3901_v30 = vrot.slane %v7239_v39, %v9057_v61 }
 0x26f   : > { %4202 = vrot.lane.b32.xlu0 %v4193_v33, %s8947_s12  ;;  %v7384_v33 = vpop.permute.xlu1 %2976  ;;  %s9075_s12 = smov 56  }
 0x270   : > { %9074 = vst [vmem:[#allocation16_spill] sm:$0xff] %v7384_v33 }
 0x273   : > { %4272 = vrot.lane.b32.xlu0 %v4259_v24, %s9072_s9  ;;  %v3967_v24 = vrot.slane %v7247_v50, %v6063_v5 }
 0x277   : > { %4276 = vrot.lane.b32.xlu0 %v4267_v15, %s9072_s9  ;;  %v7392_v15 = vpop.permute.xlu1 %3046 }
 0x27b   : > { %4346 = vrot.lane.b32.xlu0 %v4333_v47, %s9073_s13  ;;  %v4041_v47 = vrot.slane %v7255_v23, %v6063_v5  ;;  %v7397_v39 = vpop.permute.xlu1 %3050 }
 0x27f   : > { %4350 = vrot.lane.b32.xlu0 %v4341_v10, %s9073_s13  ;;  %v4049_v10 = vrot.slane %v7255_v23, %v9057_v61  ;;  %v7405_v50 = vpop.permute.xlu1 %3120  ;;  %v4197_v23 = vrot.slane %v7271_v42, %v9057_v61 }
 0x283   : > { %4420 = vrot.lane.b32.xlu0 %v4407_v48, %s9064_s16  ;;  %v4115_v48 = vrot.slane %v7263_v14, %v6063_v5 }
 0x287   : > { %4424 = vrot.lane.b32.xlu0 %v4415_v8, %s9064_s16  ;;  %v4123_v8 = vrot.slane %v7263_v14, %v9057_v61 }
 0x28b   : > { %4494 = vrot.lane.b32.xlu0 %v4481_v28, %s9067_s18  ;;  %v7410_v28 = vpop.permute.xlu1 %3124 }
 0x28c   : > { %9077 = vst [vmem:[#allocation17_spill] sm:$0xff] %v7410_v28 }
 0x28f   : > { %4498 = vrot.lane.b32.xlu0 %v4489_v18, %s9067_s18  ;;  %v4189_v18 = vrot.slane %v7271_v42, %v6063_v5 }
 0x293   : > { %4568 = vrot.lane.b32.xlu0 %v4555_v35, %s9069_s15 }
 0x297   : > { %4572 = vrot.lane.b32.xlu0 %v4563_v22, %s9069_s15 }
 0x319   : > { %v2577_v20 = vpop.f32.mrb[0].mxu0 }
 0x31a   : > { %v7311_v19 = vadd.f32 %v2577_v20, %v2388_v34  ;;  %v2579_v9 = vpop.f32.mrb[1].mxu0  ;;  %v4263_v20 = vrot.slane %v7279_v29, %v6063_v5 }
 0x31b   : > { %v7313_v53 = vadd.f32 %v2579_v9, %v2388_v34  ;;  %v2581_v32 = vpop.f32.mrb[2].mxu0  ;;  %v4271_v9 = vrot.slane %v7279_v29, %v9057_v61  ;;  %v4419_v29 = vrot.slane %v7295_v31, %v9057_v61 }
 0x31c   : > { %v2582_v37 = vpop.f32.mrb[3].mxu0  ;;  %v4337_v32 = vrot.slane %v7287_v11, %v6063_v5 }
 0x31d   : > { %v2625_v57 = vadd.f32 %v7313_v53, %v7311_v19  ;;  %v2618_v38 = vpop.f32.mrb[0].mxu1  ;;  %v4345_v37 = vrot.slane %v7287_v11, %v9057_v61  ;;  %v4485_v11 = vrot.slane %v7303_v63, %v6063_v5 }
 0x31e   : > { %v7317_v52 = vadd.f32 %v2618_v38, %v2388_v34  ;;  %v2620_v25 = vpop.f32.mrb[1].mxu1  ;;  %v4411_v38 = vrot.slane %v7295_v31, %v6063_v5  ;;  %v4559_v31 = vrot.slane %v7351_v40, %v6063_v5 }
 0x31f   : > { %v7321_v12 = vadd.f32 %v2620_v25, %v2388_v34  ;;  %v2622_v13 = vpop.f32.mrb[2].mxu1  ;;  %v7418_v34 = vpop.permute.xlu1 %3194 }
 0x320   : > { %v2626_v0 = vadd.f32 %v2625_v57, %v7317_v52  ;;  %v2623_v49 = vpop.f32.mrb[3].mxu1  ;;  %v7446_v13 = vpop.permute.xlu0 %2752 }
 0x321   : > { %v4493_v49 = vrot.slane %v7303_v63, %v9057_v61 }
 0x322   : > { %v2627_v6 = vadd.f32 %v2626_v0, %v7321_v12 }
 0x323   : > { %v7423_v14 = vpop.permute.xlu1 %3198 }
 0x324   : > { %2628 = vadd.xlane.f32.xlu1 %v2627_v6  ;;  %v7456_v6 = vpop.permute.xlu0 %2822 }
 0x327   : > { %v7431_v42 = vpop.permute.xlu1 %3268 }
 0x32b   : > { %v7436_v57 = vpop.permute.xlu1 %3272 }
 0x32c   : > { %9079 = vst [vmem:[#allocation18_spill] sm:$0xff] %v7436_v57 }
 0x32f   : > { %v7444_v25 = vpop.permute.xlu1 %3342 }
 0x330   : > { %9080 = vst [vmem:[#allocation19_spill] sm:$0xff] %v7444_v25 }
 0x333   : > { %v7451_v0 = vpop.permute.xlu1 %3346 }
 0x334   : > { %9081 = vst [vmem:[#allocation20_spill] sm:$0xff] %v7451_v0 }
 0x335   : > { %3564 = vrot.lane.b32.xlu1 %v3553_v41, %s9059_s29 }
 0x337   : > { %v7461_v41 = vpop.permute.xlu1 %3416 }
 0x338   : > { %9082 = vst [vmem:[#allocation21_spill] sm:$0xff] %v7461_v41 }
 0x339   : > { %3568 = vrot.lane.b32.xlu1 %v3561_v27, %s9059_s29  ;;  %v7463_v27 = vpop.permute.xlu0 %2826 }
 0x33d   : > { %3682 = vrot.lane.b32.xlu1 %v3671_v1, %s9058_s11  ;;  %v4567_v1 = vrot.slane %v7351_v40, %v9057_v61  ;;  %v7471_v63 = vpop.permute.xlu0 %2896 }
 0x341   : > { %3686 = vrot.lane.b32.xlu1 %v3679_v54, %s9058_s11  ;;  %v7468_v54 = vpop.permute.xlu1 %3420  ;;  %v7475_v35 = vpop.permute.xlu0 %2900 }
 0x342   : > { %9083 = vst [vmem:[#allocation22_spill] sm:$0xff] %v7468_v54 }
 0x345   : > { %3756 = vrot.lane.b32.xlu1 %v3745_v4, %s9056_s28  ;;  %v7473_v4 = vpop.permute.xlu1 %3490  ;;  %v7479_v22 = vpop.permute.xlu0 %2970 }
 0x346   : > { %9084 = vst [vmem:[#allocation23_spill] sm:$0xff] %v7473_v4 }
 0x349   : > { %3760 = vrot.lane.b32.xlu1 %v3753_v44, %s9056_s28  ;;  %v7477_v44 = vpop.permute.xlu1 %3494 }
 0x34a   : > { %9085 = vst [vmem:[#allocation24_spill] sm:$0xff] %v7477_v44 }
 0x34d   : > { %3830 = vrot.lane.b32.xlu1 %v3819_v62, %s9055_s20 }
 0x351   : > { %3834 = vrot.lane.b32.xlu1 %v3827_v59, %s9055_s20  ;;  %v7483_v59 = vpop.permute.xlu0 %2974 }
 0x355   : > { %3904 = vrot.lane.b32.xlu1 %v3893_v55, %s9071_s17 }
 0x359   : > { %3908 = vrot.lane.b32.xlu1 %v3901_v30, %s9071_s17  ;;  %v7489_v30 = vpop.permute.xlu0 %3044 }
 0x35d   : > { %3978 = vrot.lane.b32.xlu1 %v3967_v24, %s9063_s26 }
 0x361   : > { %3982 = vrot.lane.b32.xlu1 %v3975_v45, %s9063_s26  ;;  %v7493_v45 = vpop.permute.xlu0 %3048 }
 0x365   : > { %4052 = vrot.lane.b32.xlu1 %v4041_v47, %s9075_s12 }
 0x369   : > { %4056 = vrot.lane.b32.xlu1 %v4049_v10, %s9075_s12 }
 0x36d   : > { %4126 = vrot.lane.b32.xlu1 %v4115_v48, %s9076_s0 }
 0x371   : > { %4130 = vrot.lane.b32.xlu1 %v4123_v8, %s9076_s0 }
 0x375   : > { %4200 = vrot.lane.b32.xlu1 %v4189_v18, %s9078_s1  ;;  %v7500_v18 = vpop.permute.xlu0 %3118 }
 0x379   : > { %4204 = vrot.lane.b32.xlu1 %v4197_v23, %s9078_s1 }
 0x37d   : > { %4274 = vrot.lane.b32.xlu1 %v4263_v20, %s9072_s9 }
 0x381   : > { %4278 = vrot.lane.b32.xlu1 %v4271_v9, %s9072_s9  ;;  %v7506_v9 = vpop.permute.xlu0 %3122 }
 0x385   : > { %4348 = vrot.lane.b32.xlu1 %v4337_v32, %s9073_s13 }
 0x389   : > { %4352 = vrot.lane.b32.xlu1 %v4345_v37, %s9073_s13 }
 0x38d   : > { %4422 = vrot.lane.b32.xlu1 %v4411_v38, %s9064_s16 }
 0x391   : > { %4426 = vrot.lane.b32.xlu1 %v4419_v29, %s9064_s16  ;;  %v7513_v29 = vpop.permute.xlu0 %3192 }
 0x395   : > { %4496 = vrot.lane.b32.xlu1 %v4485_v11, %s9067_s18 }
 0x399   : > { %4500 = vrot.lane.b32.xlu1 %v4493_v49, %s9067_s18 }
 0x39d   : > { %4570 = vrot.lane.b32.xlu1 %v4559_v31, %s9069_s15 }
 0x3a1   : > { %4574 = vrot.lane.b32.xlu1 %v4567_v1, %s9069_s15  ;;  %v7519_v1 = vpop.permute.xlu0 %3196 }
 0x3b1   : > { %v7481_v62 = vpop.xlane.xlu1 %2628 }
 0x3b5   : > { %v7485_v55 = vpop.permute.xlu1 %3564 }
 0x3b6   : > { %9086 = vst [vmem:[#allocation25_spill] sm:$0xff] %v7485_v55 }
 0x3b9   : > { %v7487_v40 = vpop.permute.xlu1 %3568 }
 0x3ba   : > { %9087 = vst [vmem:[#allocation26_spill] sm:$0xff] %v7487_v40 }
 0x3bd   : > { %v7491_v24 = vpop.permute.xlu1 %3682 }
 0x3c1   : > { %v7495_v47 = vpop.permute.xlu1 %3686 }
 0x3c2   : > { %v3700_v10 = vmul.f32 0.0, %v7495_v47 }
 0x3c4   : > { %v5584_v48 = vpack.c.bf16 %v3700_v10, %v3700_v10 }
 0x3c5   : > { %v7498_v8 = vpop.permute.xlu1 %3756 }
 0x3c6   : > { %3723 = vrot.lane.b32.xlu1 %v5584_v48, %s9059_s29 }
 0x3c9   : > { %v7503_v23 = vpop.permute.xlu1 %3760 }
 0x3ca   : > { %9088 = vst [vmem:[#allocation27_spill] sm:$0xff] %v7503_v23  ;;  %v3774_v20 = vmul.f32 0.0, %v7503_v23 }
 0x3cc   : > { %v5587_v32 = vpack.c.bf16 %v3774_v20, %v3774_v20 }
 0x3cd   : > { %v7508_v37 = vpop.permute.xlu1 %3830 }
 0x3ce   : > { %9089 = vst [vmem:[#allocation28_spill] sm:$0xff] %v7508_v37  ;;  %3797 = vrot.lane.b32.xlu0 %v5587_v32, %s9060_s10  ;;  %v7526_v32 = vpop.permute.xlu0 %3266 }
 0x3cf   : > { %9094 = vst [vmem:[#allocation33_spill] sm:$0xff] %v7526_v32 }
 0x3d1   : > { %v7511_v38 = vpop.permute.xlu1 %3834 }
 0x3d2   : > { %9090 = vst [vmem:[#allocation29_spill] sm:$0xff] %v7511_v38  ;;  %v3848_v11 = vmul.f32 0.0, %v7511_v38  ;;  %v7532_v0 = vpop.permute.xlu0 %3270 }
 0x3d4   : > { %v5590_v49 = vpack.c.bf16 %v3848_v11, %v3848_v11 }
 0x3d5   : > { %v7516_v31 = vpop.permute.xlu1 %3904 }
 0x3d6   : > { %9091 = vst [vmem:[#allocation30_spill] sm:$0xff] %v7516_v31  ;;  %3871 = vrot.lane.b32.xlu1 %v5590_v49, %s9061_s19 }
 0x3d9   : > { %v7521_v10 = vpop.permute.xlu1 %3908 }
 0x3da   : > { %9092 = vst [vmem:[#allocation31_spill] sm:$0xff] %v7521_v10  ;;  %v3922_v48 = vmul.f32 0.0, %v7521_v10 }
 0x3dc   : > { %v5593_v20 = vpack.c.bf16 %v3922_v48, %v3922_v48  ;;  %v7539_v48 = vpop.permute.xlu0 %3340 }
 0x3dd   : > { %v7524_v54 = vpop.permute.xlu1 %3978  ;;  %9098 = vst [vmem:[#allocation37_spill] sm:$0xff] %v7539_v48 }
 0x3de   : > { %9093 = vst [vmem:[#allocation32_spill] sm:$0xff] %v7524_v54  ;;  %3945 = vrot.lane.b32.xlu0 %v5593_v20, %s9062_s14 }
 0x3e0   : > { %v7545_v20 = vpop.permute.xlu0 %3344 }
 0x3e1   : > { %v7529_v41 = vpop.permute.xlu1 %3982  ;;  %9100 = vst [vmem:[#allocation39_spill] sm:$0xff] %v7545_v20 }
 0x3e2   : > { %9095 = vst [vmem:[#allocation34_spill] sm:$0xff] %v7529_v41  ;;  %v3996_v11 = vmul.f32 0.0, %v7529_v41 }
 0x3e4   : > { %v5596_v49 = vpack.c.bf16 %v3996_v11, %v3996_v11 }
 0x3e5   : > { %v7534_v25 = vpop.permute.xlu1 %4052 }
 0x3e6   : > { %9096 = vst [vmem:[#allocation35_spill] sm:$0xff] %v7534_v25  ;;  %4019 = vrot.lane.b32.xlu1 %v5596_v49, %s9069_s15  ;;  %v7552_v49 = vpop.permute.xlu0 %3414 }
 0x3e7   : > { %9103 = vst [vmem:[#allocation42_spill] sm:$0xff] %v7552_v49 }
 0x3e9   : > { %v7537_v61 = vpop.permute.xlu1 %4056 }
 0x3ea   : > { %9097 = vst [vmem:[#allocation36_spill] sm:$0xff] %v7537_v61  ;;  %v4070_v2 = vmul.f32 0.0, %v7537_v61 }
 0x3ec   : > { %v5599_v5 = vpack.c.bf16 %v4070_v2, %v4070_v2 }
 0x3ed   : > { %v7542_v3 = vpop.permute.xlu1 %4126 }
 0x3ee   : > { %9099 = vst [vmem:[#allocation38_spill] sm:$0xff] %v7542_v3  ;;  %4093 = vrot.lane.b32.xlu0 %v5599_v5, %s9067_s18  ;;  %v7558_v3 = vpop.permute.xlu0 %3418 }
 0x3ef   : > { %9105 = vst [vmem:[#allocation44_spill] sm:$0xff] %v7558_v3 }
 0x3f1   : > { %v7547_v41 = vpop.permute.xlu1 %4130 }
 0x3f2   : > { %9101 = vst [vmem:[#allocation40_spill] sm:$0xff] %v7547_v41  ;;  %v4144_v11 = vmul.f32 0.0, %v7547_v41 }
 0x3f4   : > { %v5602_v25 = vpack.c.bf16 %v4144_v11, %v4144_v11  ;;  %v7565_v11 = vpop.permute.xlu0 %3488 }
 0x3f5   : > { %v7550_v54 = vpop.permute.xlu1 %4200  ;;  %9108 = vst [vmem:[#allocation47_spill] sm:$0xff] %v7565_v11 }
 0x3f6   : > { %9102 = vst [vmem:[#allocation41_spill] sm:$0xff] %v7550_v54  ;;  %4167 = vrot.lane.b32.xlu1 %v5602_v25, %s9064_s16 }
 0x3f8   : > { %v7571_v25 = vpop.permute.xlu0 %3492 }
 0x3f9   : > { %v7555_v48 = vpop.permute.xlu1 %4204 }
 0x3fa   : > { %9104 = vst [vmem:[#allocation43_spill] sm:$0xff] %v7555_v48  ;;  %v4218_v2 = vmul.f32 0.0, %v7555_v48 }
 0x3fc   : > { %v5605_v5 = vpack.c.bf16 %v4218_v2, %v4218_v2  ;;  %v7576_v3 = vpop.permute.xlu0 %3562 }
 0x3fd   : > { %v7560_v61 = vpop.permute.xlu1 %4274  ;;  %9111 = vst [vmem:[#allocation50_spill] sm:$0xff] %v7576_v3 }
 0x3fe   : > { %9106 = vst [vmem:[#allocation45_spill] sm:$0xff] %v7560_v61  ;;  %4241 = vrot.lane.b32.xlu0 %v5605_v5, %s9073_s13 }
 0x401   : > { %v7563_v20 = vpop.permute.xlu1 %4278 }
 0x402   : > { %9107 = vst [vmem:[#allocation46_spill] sm:$0xff] %v7563_v20  ;;  %v4292_v54 = vmul.f32 0.0, %v7563_v20 }
 0x404   : > { %v5608_v49 = vpack.c.bf16 %v4292_v54, %v4292_v54  ;;  %v7583_v54 = vpop.permute.xlu0 %3566 }
 0x405   : > { %v7568_v41 = vpop.permute.xlu1 %4348 }
 0x406   : > { %9109 = vst [vmem:[#allocation48_spill] sm:$0xff] %v7568_v41  ;;  %4315 = vrot.lane.b32.xlu1 %v5608_v49, %s9072_s9 }
 0x408   : > { %v7589_v10 = vpop.permute.xlu0 %3680 }
 0x409   : > { %v7573_v48 = vpop.permute.xlu1 %4352 }
 0x40a   : > { %9110 = vst [vmem:[#allocation49_spill] sm:$0xff] %v7573_v48  ;;  %v4366_v2 = vmul.f32 0.0, %v7573_v48 }
 0x40c   : > { %v5611_v5 = vpack.c.bf16 %v4366_v2, %v4366_v2 }
 0x40d   : > { %v7578_v61 = vpop.permute.xlu1 %4422 }
 0x40e   : > { %9112 = vst [vmem:[#allocation51_spill] sm:$0xff] %v7578_v61  ;;  %4389 = vrot.lane.b32.xlu0 %v5611_v5, %s9078_s1  ;;  %v7594_v61 = vpop.permute.xlu0 %3684 }
 0x411   : > { %v7581_v11 = vpop.permute.xlu1 %4426 }
 0x412   : > { %9113 = vst [vmem:[#allocation52_spill] sm:$0xff] %v7581_v11  ;;  %v4440_v41 = vmul.f32 0.0, %v7581_v11  ;;  %v7597_v5 = vpop.permute.xlu0 %3754  ;;  %v2631_v11 = vmul.f32 0.001953125, %v7481_v62 }
 0x413   : > { %9116 = vst [vmem:[#allocation55_spill] sm:$0xff] %v7597_v5 }
 0x414   : > { %v5614_v49 = vpack.c.bf16 %v4440_v41, %v4440_v41  ;;  %v7618_v38 = vsub.f32 %v7321_v12, %v2631_v11 }
 0x415   : > { %v7586_v20 = vpop.permute.xlu1 %4496 }
 0x416   : > { %9114 = vst [vmem:[#allocation53_spill] sm:$0xff] %v7586_v20  ;;  %4463 = vrot.lane.b32.xlu1 %v5614_v49, %s9076_s0  ;;  %v7600_v41 = vpop.permute.xlu0 %3758  ;;  %v7603_v20 = vsub.f32 %v7311_v19, %v2631_v11  ;;  %v7606_v49 = vsub.f32 %v7313_v53, %v2631_v11  ;;  %9120 = vst [vmem:[#allocation59_spill] sm:$0xff] %v7618_v38 }
 0x418   : > { %9117 = vst [vmem:[#allocation56_spill] sm:$0xff] %v7603_v20  ;;  %9118 = vst [vmem:[#allocation57_spill] sm:$0xff] %v7606_v49 }
 0x419   : > { %v7591_v48 = vpop.permute.xlu1 %4500 }
 0x41a   : > { %9115 = vst [vmem:[#allocation54_spill] sm:$0xff] %v7591_v48  ;;  %v4514_v2 = vmul.f32 0.0, %v7591_v48  ;;  %v2636_v48 = vmul.f32 %v7603_v20, %v7603_v20  ;;  %v7612_v31 = vpop.permute.xlu0 %3828  ;;  %v2639_v20 = vmul.f32 %v7618_v38, %v7618_v38 }
 0x41b   : > { %9119 = vst [vmem:[#allocation58_spill] sm:$0xff] %v7612_v31 }
 0x41c   : > { %v5617_v3 = vpack.c.bf16 %v4514_v2, %v4514_v2  ;;  %v2637_v2 = vmul.f32 %v7606_v49, %v7606_v49 }
 0x41e   : > { %4537 = vrot.lane.b32.xlu0 %v5617_v3, %s9075_s12  ;;  %v7615_v3 = vsub.f32 %v7317_v52, %v2631_v11  ;;  %v2640_v62 = vadd.f32 %v2637_v2, %v2636_v48  ;;  %v7622_v53 = vpop.permute.xlu0 %3832 }
 0x420   : > { %v2638_v19 = vmul.f32 %v7615_v3, %v7615_v3 }
 0x422   : > { %v2641_v37 = vadd.f32 %v2640_v62, %v2638_v19  ;;  %v7626_v49 = vpop.permute.xlu0 %3902 }
 0x423   : > { %9121 = vst [vmem:[#allocation60_spill] sm:$0xff] %v7626_v49 }
 0x424   : > { %v2642_v23 = vadd.f32 %v2641_v37, %v2639_v20 }
 0x426   : > { %v7628_v31 = vpop.permute.xlu0 %3906 }
 0x427   : > { %9122 = vst [vmem:[#allocation61_spill] sm:$0xff] %v7628_v31 }
 0x42a   : > { %v7630_v52 = vpop.permute.xlu0 %3976 }
 0x42b   : > { %9123 = vst [vmem:[#allocation62_spill] sm:$0xff] %v7630_v52 }
 0x42e   : > { %v7632_v48 = vpop.permute.xlu0 %3980 }
 0x42f   : > { %9124 = vst [vmem:[#allocation63_spill] sm:$0xff] %v7632_v48 }
 0x432   : > { %v7634_v12 = vpop.permute.xlu0 %4050 }
 0x433   : > { %9125 = vst [vmem:[#allocation64_spill] sm:$0xff] %v7634_v12 }
 0x436   : > { %v7636_v11 = vpop.permute.xlu0 %4054 }
 0x437   : > { %9126 = vst [vmem:[#allocation65_spill] sm:$0xff] %v7636_v11 }
 0x43a   : > { %v7638_v2 = vpop.permute.xlu0 %4124 }
 0x43b   : > { %9127 = vst [vmem:[#allocation66_spill] sm:$0xff] %v7638_v2 }
 0x43d   : > { %2643 = vadd.xlane.f32.xlu0 %v2642_v23 }
 0x43e   : > { %v7640_v62 = vpop.permute.xlu0 %4128 }
 0x43f   : > { %9128 = vst [vmem:[#allocation67_spill] sm:$0xff] %v7640_v62 }
 0x442   : > { %v7642_v19 = vpop.permute.xlu0 %4198 }
 0x443   : > { %9129 = vst [vmem:[#allocation68_spill] sm:$0xff] %v7642_v19 }
 0x446   : > { %v7644_v37 = vpop.permute.xlu0 %4202 }
 0x447   : > { %9130 = vst [vmem:[#allocation69_spill] sm:$0xff] %v7644_v37 }
 0x44a   : > { %v7646_v20 = vpop.permute.xlu0 %4272 }
 0x44b   : > { %9131 = vst [vmem:[#allocation70_spill] sm:$0xff] %v7646_v20 }
 0x44e   : > { %v7648_v23 = vpop.permute.xlu0 %4276 }
 0x44f   : > { %9132 = vst [vmem:[#allocation71_spill] sm:$0xff] %v7648_v23 }
 0x452   : > { %v7650_v31 = vpop.permute.xlu0 %4346 }
 0x453   : > { %9133 = vst [vmem:[#allocation72_spill] sm:$0xff] %v7650_v31 }
 0x456   : > { %v7652_v52 = vpop.permute.xlu0 %4350 }
 0x457   : > { %9134 = vst [vmem:[#allocation73_spill] sm:$0xff] %v7652_v52 }
 0x45a   : > { %v7654_v48 = vpop.permute.xlu0 %4420 }
 0x45b   : > { %9135 = vst [vmem:[#allocation74_spill] sm:$0xff] %v7654_v48 }
 0x45e   : > { %v7656_v12 = vpop.permute.xlu0 %4424 }
 0x45f   : > { %9136 = vst [vmem:[#allocation75_spill] sm:$0xff] %v7656_v12 }
 0x462   : > { %v7658_v11 = vpop.permute.xlu0 %4494 }
 0x463   : > { %9137 = vst [vmem:[#allocation76_spill] sm:$0xff] %v7658_v11 }
 0x466   : > { %v7660_v2 = vpop.permute.xlu0 %4498 }
 0x46a   : > { %v7662_v62 = vpop.permute.xlu0 %4568 }
 0x46b   : > { %9138 = vst [vmem:[#allocation77_spill] sm:$0xff] %v7662_v62  ;;  %v7679_v62 = vmul.f32 0.0, %v7319_v17 }
 0x46e   : > { %v7664_v19 = vpop.permute.xlu0 %4572 }
 0x472   : > { %v7666_v37 = vpop.permute.xlu0 %3797 }
 0x473   : > { %9139 = vst [vmem:[#allocation78_spill] sm:$0xff] %v7666_v37  ;;  %v2682_v37 = vsel %vm314_vm1, %v7319_v17, %v7358_v7  ;;  %v2757_v17 = vsel %vm392_vm0, %v7329_v36, %v7446_v13 }
 0x476   : > { %v7668_v20 = vpop.permute.xlu0 %3945 }
 0x477   : > { %9140 = vst [vmem:[#allocation79_spill] sm:$0xff] %v7668_v20  ;;  %v7775_v20 = vsel %vm514_vm7, %v7405_v50, %v7506_v9 }
 0x47a   : > { %v7670_v23 = vpop.permute.xlu0 %4093 }
 0x47b   : > { %9141 = vst [vmem:[#allocation80_spill] sm:$0xff] %v7670_v23  ;;  %v2683_v23 = vsel %vm314_vm1, %v7358_v7, %v7325_v56  ;;  %v2758_v7 = vsel %vm392_vm0, %v7446_v13, %v7333_v51  ;;  %v7730_v13 = vsel %vm549_vm2, %v7361_v26, %v7475_v35 }
 0x47e   : > { %v7672_v31 = vpop.permute.xlu0 %4241 }
 0x47f   : > { %9142 = vst [vmem:[#allocation81_spill] sm:$0xff] %v7672_v31  ;;  %v7760_v31 = vsel %vm594_vm4, %v7392_v15, %v7493_v45 }
 0x482   : > { %v7674_v52 = vpop.permute.xlu0 %4389 }
 0x483   : > { %9143 = vst [vmem:[#allocation82_spill] sm:$0xff] %v7674_v52  ;;  %v2684_v52 = vsel %vm314_vm1, %v7325_v56, %v7327_v16  ;;  %v7710_v56 = vsel %vm472_vm3, %v7456_v6, %v7341_v43 }
 0x490   : > { %v7676_v48 = vpop.permute.xlu0 %4537 }
 0x491   : > { %9144 = vst [vmem:[#allocation83_spill] sm:$0xff] %v7676_v48  ;;  %v7691_v48 = vmul.f32 0.0, %v7368_v58 }
 0x4ca   : > { %v2644_v12 = vpop.xlane.xlu0 %2643 }
 0x4cb   : > { %v2645_v11 = vmul.f32 0.001953125, %v2644_v12  ;;  %v7702_v12 = vmul.f32 0.0, %v7456_v6  ;;  %v7740_v6 = vsel %vm629_vm5, %v7479_v22, %v7379_v46 }
 0x4cd   : > { %v2646_v38 = vadd.f32 1e-05, %v2645_v11  ;;  %v7725_v11 = vsel %vm549_vm2, %v7471_v63, %v7361_v26  ;;  %v7750_v26 = vsel %vm629_vm5, %v7483_v59, %v7384_v33  ;;  %v7790_v33 = vsel %vm437_vm6, %v7418_v34, %v7519_v1 }
 0x4cf   : > { %5747 = vrsqrt.f32 %v2646_v38  ;;  %v7696_v38 = vsel %vm392_vm0, %v7368_v58, %v7329_v36  ;;  %v7715_v58 = vsel %vm472_vm3, %v7341_v43, %v7463_v27  ;;  %v7720_v36 = vsel %vm472_vm3, %v7463_v27, %v7346_v60 }
 0x4d0   : > { %v7735_v43 = vsel %vm549_vm2, %v7475_v35, %v7371_v21  ;;  %v7745_v27 = vsel %vm629_vm5, %v7379_v46, %v7483_v59  ;;  %v7755_v35 = vsel %vm594_vm4, %v7489_v30, %v7392_v15  ;;  %v7765_v46 = vsel %vm594_vm4, %v7493_v45, %v7397_v39 }
 0x4d1   : > { %v7770_v59 = vsel %vm514_vm7, %v7500_v18, %v7405_v50  ;;  %v7780_v15 = vsel %vm514_vm7, %v7506_v9, %v7410_v28  ;;  %v7785_v45 = vsel %vm437_vm6, %v7513_v29, %v7418_v34  ;;  %v7795_v50 = vsel %vm437_vm6, %v7519_v1, %v7423_v14 }
 0x4d2   : > { %v7800_v9 = vsel %vm357_vm9, %v7526_v32, %v7431_v42  ;;  %v7805_v28 = vsel %vm357_vm9, %v7431_v42, %v7532_v0  ;;  %v7810_v34 = vsel %vm357_vm9, %v7532_v0, %v7436_v57  ;;  %v7815_v1 = vsel %vm1177_vm10, %v7473_v4, %v7571_v25  ;;  %v9151_v57 = vld [vmem:[#allocation27_spill] sm:$0xff] }
 0x4d3   : > { %9145 = vst [vmem:[#allocation84_spill] sm:$0xff] %v7800_v9  ;;  %9146 = vst [vmem:[#allocation85_spill] sm:$0xff] %v7810_v34  ;;  %v7820_v32 = vsel %vm1177_vm10, %v7571_v25, %v7477_v44  ;;  %v7825_v42 = vsel %vm1257_vm12, %v7485_v55, %v7583_v54  ;;  %v7830_v0 = vsel %vm1257_vm12, %v7583_v54, %v7487_v40  ;;  %v9153_v9 = vld [vmem:[#allocation28_spill] sm:$0xff]  ;;  %v9158_v34 = vld [vmem:[#allocation57_spill] sm:$0xff] }
 0x4d4   : > { %v7835_v4 = vsel %vm9017_vm14, %v7589_v10, %v7491_v24  ;;  %v7840_v25 = vsel %vm9017_vm14, %v7491_v24, %v7594_v61  ;;  %v7845_v55 = vsel %vm9017_vm14, %v7594_v61, %v7495_v47  ;;  %v7850_v54 = vsel %vm9018_vm13, %v7597_v5, %v7498_v8  ;;  %v9157_v47 = vld [vmem:[#allocation56_spill] sm:$0xff]  ;;  %vm9162_vm14 = vmmov %vm9155_vm8 }
 0x4d5   : > { %9147 = vst [vmem:[#allocation86_spill] sm:$0xff] %v7840_v25  ;;  %9148 = vst [vmem:[#allocation87_spill] sm:$0xff] %v7845_v55  ;;  %v7855_v40 = vsel %vm9018_vm13, %v7498_v8, %v7600_v41  ;;  %v7860_v24 = vsel %vm9018_vm13, %v7600_v41, %v9151_v57  ;;  %v9154_v25 = vld [vmem:[#allocation58_spill] sm:$0xff]  ;;  %v7873_v8 = vsel %vm9159_vm15, %v9153_v9, %v7622_v53 }
 0x4d6   : > { %9149 = vst [vmem:[#allocation88_spill] sm:$0xff] %v7850_v54  ;;  %9150 = vst [vmem:[#allocation89_spill] sm:$0xff] %v7855_v40  ;;  %v7865_v61 = vsel %vm9155_vm8, %v9154_v25, %v9153_v9  ;;  %v9161_v40 = vld [vmem:[#allocation29_spill] sm:$0xff]  ;;  %v9164_v41 = vld [vmem:[#allocation30_spill] sm:$0xff]  ;;  %vm9165_vm8 = vcmask 72704  }
 0x4d7   : > { %9152 = vst [vmem:[#allocation27_spill] sm:$0xff] %v7860_v24  ;;  %9156 = vst [vmem:[#allocation28_spill] sm:$0xff] %v7865_v61  ;;  %v7878_v57 = vsel %vm9162_vm14, %v7622_v53, %v9161_v40  ;;  %v7883_v24 = vsel %vm9165_vm8, %v7626_v49, %v9164_v41  ;;  %v9171_v40 = vld [vmem:[#allocation31_spill] sm:$0xff] }
 0x4d8   : > { %9160 = vst [vmem:[#allocation56_spill] sm:$0xff] %v7873_v8  ;;  %9163 = vst [vmem:[#allocation57_spill] sm:$0xff] %v7878_v57  ;;  %v9174_v57 = vld [vmem:[#allocation32_spill] sm:$0xff]  ;;  %v9189_v49 = vld [vmem:[#allocation67_spill] sm:$0xff] }
 0x4d9   : > { %v5748_v44 = vpop.eup %5747  ;;  %9166 = vst [vmem:[#allocation29_spill] sm:$0xff] %v7883_v24  ;;  %vm9169_vm13 = vmmov %vm9165_vm8  ;;  %v9175_v24 = vld [vmem:[#allocation62_spill] sm:$0xff] }
 0x4da   : > { %v2648_v55 = vmul.f32 %v5748_v44, %v9157_v47  ;;  %v2649_v5 = vmul.f32 %v5748_v44, %v9158_v34  ;;  %v2650_v54 = vmul.f32 %v5748_v44, %v7615_v3  ;;  %v9167_v47 = vld [vmem:[#allocation59_spill] sm:$0xff]  ;;  %v9168_v34 = vld [vmem:[#allocation61_spill] sm:$0xff]  ;;  %vm9172_vm14 = vmmov %vm9165_vm8 }
 0x4db   : > { %v2651_v61 = vmul.f32 %v5748_v44, %v9167_v47  ;;  %v7889_v3 = vsel %vm9169_vm13, %v9164_v41, %v9168_v34  ;;  %v7900_v53 = vsel %vm9172_vm14, %v9168_v34, %v9171_v40  ;;  %v7905_v44 = vsel %vm314_vm1, %v9175_v24, %v9174_v57  ;;  %v9177_v47 = vld [vmem:[#allocation63_spill] sm:$0xff]  ;;  %v9184_v24 = vld [vmem:[#allocation65_spill] sm:$0xff] }
 0x4dc   : > { %9170 = vst [vmem:[#allocation30_spill] sm:$0xff] %v7889_v3  ;;  %v7891_v25 = vmax.f32 %v2648_v55, 0.0  ;;  %v7893_v9 = vmax.f32 %v2649_v5, 0.0  ;;  %v7895_v8 = vmax.f32 %v2650_v54, 0.0  ;;  %9173 = vst [vmem:[#allocation59_spill] sm:$0xff] %v7900_v53  ;;  %v7910_v41 = vsel %vm314_vm1, %v9174_v57, %v9177_v47  ;;  %v9179_v55 = vld [vmem:[#allocation34_spill] sm:$0xff] }
 0x4dd   : > { %9176 = vst [vmem:[#allocation61_spill] sm:$0xff] %v7905_v44  ;;  %9178 = vst [vmem:[#allocation31_spill] sm:$0xff] %v7910_v41  ;;  %v7915_v5 = vsel %vm314_vm1, %v9177_v47, %v9179_v55  ;;  %v9181_v54 = vld [vmem:[#allocation35_spill] sm:$0xff]  ;;  %v9182_v3 = vld [vmem:[#allocation64_spill] sm:$0xff]  ;;  %v7935_v55 = vmax.f32 %v2651_v61, 0.0  ;;  %vm9304_vm13 = vcmask 973824  }
 0x4de   : > { %9180 = vst [vmem:[#allocation32_spill] sm:$0xff] %v7915_v5  ;;  %v7920_v34 = vsel %vm392_vm0, %v9182_v3, %v9181_v54  ;;  %v2692_v40 = vmul.f32 %v2683_v23, %v7893_v9  ;;  %v2693_v53 = vmul.f32 %v2684_v52, %v7895_v8  ;;  %v2691_v44 = vmul.f32 %v2682_v37, %v7891_v25  ;;  %v9186_v41 = vld [vmem:[#allocation36_spill] sm:$0xff]  ;;  %v9187_v3 = vld [vmem:[#allocation38_spill] sm:$0xff]  ;;  %vm9306_vm15 = vmmov %vm9304_vm13 }
 0x4df   : > { %9183 = vst [vmem:[#allocation63_spill] sm:$0xff] %v7920_v34  ;;  %v7928_v57 = vsel %vm392_vm0, %v9181_v54, %v9184_v24  ;;  %v7933_v47 = vsel %vm392_vm0, %v9184_v24, %v9186_v41  ;;  %v2766_v5 = vmul.f32 %v2757_v17, %v7893_v9  ;;  %v2767_v52 = vmul.f32 %v2758_v7, %v7895_v8  ;;  %v9188_v54 = vld [vmem:[#allocation66_spill] sm:$0xff]  ;;  %v9191_v61 = vld [vmem:[#allocation40_spill] sm:$0xff]  ;;  %vm9308_vm8 = vmmov %vm9304_vm13 }
 0x4e0   : > { %9185 = vst [vmem:[#allocation34_spill] sm:$0xff] %v7928_v57  ;;  %v5542_v34 = vpack.c.bf16 %v2693_v53, %v2692_v40  ;;  %v5541_v23 = vpack.c.bf16 %v2691_v44, %v7679_v62  ;;  %v2765_v37 = vmul.f32 %v7696_v38, %v7891_v25  ;;  %v7945_v57 = vsel %vm472_vm3, %v9188_v54, %v9187_v3  ;;  %v9193_v62 = vld [vmem:[#allocation41_spill] sm:$0xff]  ;;  %v9194_v7 = vld [vmem:[#allocation68_spill] sm:$0xff] }
 0x4e1   : > { %v7950_v24 = vsel %vm472_vm3, %v9187_v3, %v9189_v49  ;;  %v7955_v17 = vsel %vm472_vm3, %v9189_v49, %v9191_v61  ;;  %v7960_v53 = vsel %vm549_vm2, %v9194_v7, %v9193_v62  ;;  %v7963_v38 = vmul.f32 0.0, %v7471_v63  ;;  %v9196_v44 = vld [vmem:[#allocation69_spill] sm:$0xff]  ;;  %v9198_v3 = vld [vmem:[#allocation43_spill] sm:$0xff]  ;;  %v9201_v61 = vld [vmem:[#allocation70_spill] sm:$0xff] }
 0x4e2   : > { %9190 = vst [vmem:[#allocation35_spill] sm:$0xff] %v7950_v24  ;;  %9192 = vst [vmem:[#allocation65_spill] sm:$0xff] %v7955_v17  ;;  %v7968_v41 = vsel %vm549_vm2, %v9193_v62, %v9196_v44  ;;  %v7973_v40 = vsel %vm549_vm2, %v9196_v44, %v9198_v3  ;;  %v9200_v49 = vld [vmem:[#allocation45_spill] sm:$0xff]  ;;  %v4571_v24 = vpop.permute.xlu1 %4570  ;;  %2715 = vrot.lane.b32.xlu1 %v5542_v34, %s9069_s15  ;;  %2713 = vrot.lane.b32.xlu0 %v5541_v23, %s9069_s15  ;;  %v9203_v63 = vld [vmem:[#allocation71_spill] sm:$0xff]  ;;  %vm9312_vm14 = vcmask 982016  }
 0x4e3   : > { %9195 = vst [vmem:[#allocation36_spill] sm:$0xff] %v7960_v53  ;;  %9197 = vst [vmem:[#allocation38_spill] sm:$0xff] %v7968_v41  ;;  %v7978_v17 = vsel %vm629_vm5, %v9201_v61, %v9200_v49  ;;  %v7985_v62 = vsel %vm629_vm5, %v9200_v49, %v9203_v63  ;;  %v9205_v41 = vld [vmem:[#allocation46_spill] sm:$0xff]  ;;  %v9207_v3 = vld [vmem:[#allocation48_spill] sm:$0xff]  ;;  %v5545_v23 = vpack.c.bf16 %v2767_v52, %v2766_v5 }
 0x4e4   : > { %9199 = vst [vmem:[#allocation66_spill] sm:$0xff] %v7973_v40  ;;  %9202 = vst [vmem:[#allocation67_spill] sm:$0xff] %v7978_v17  ;;  %v7990_v44 = vsel %vm629_vm5, %v9203_v63, %v9205_v41  ;;  %v9208_v40 = vld [vmem:[#allocation72_spill] sm:$0xff]  ;;  %v9210_v17 = vld [vmem:[#allocation73_spill] sm:$0xff]  ;;  %v5544_v53 = vpack.c.bf16 %v2765_v37, %v7691_v48  ;;  %v2768_v49 = vmul.f32 %v7333_v51, %v7935_v55 }
 0x4e5   : > { %9204 = vst [vmem:[#allocation40_spill] sm:$0xff] %v7985_v62  ;;  %9206 = vst [vmem:[#allocation41_spill] sm:$0xff] %v7990_v44  ;;  %v7995_v61 = vsel %vm594_vm4, %v9208_v40, %v9207_v3  ;;  %v8000_v34 = vsel %vm594_vm4, %v9207_v3, %v9210_v17  ;;  %v2694_v41 = vmul.f32 %v7327_v16, %v7935_v55  ;;  %v9211_v63 = vld [vmem:[#allocation49_spill] sm:$0xff]  ;;  %v9212_v62 = vld [vmem:[#allocation51_spill] sm:$0xff]  ;;  %v8028_v16 = vmul.f32 0.0, %v7479_v22 }
 0x4e6   : > { %9209 = vst [vmem:[#allocation68_spill] sm:$0xff] %v7995_v61  ;;  %v8010_v44 = vsel %vm594_vm4, %v9210_v17, %v9211_v63  ;;  %v9213_v61 = vld [vmem:[#allocation74_spill] sm:$0xff]  ;;  %v9214_v3 = vld [vmem:[#allocation75_spill] sm:$0xff]  ;;  %v9216_v5 = vld [vmem:[#allocation52_spill] sm:$0xff]  ;;  %2789 = vrot.lane.b32.xlu1 %v5545_v23, %s9067_s18  ;;  %2787 = vrot.lane.b32.xlu0 %v5544_v53, %s9067_s18  ;;  %v2841_v63 = vmul.f32 %v7720_v36, %v7895_v8  ;;  %v8059_v36 = vpop.permute.xlu1 %4574 }
 0x4e7   : > { %v8015_v40 = vsel %vm514_vm7, %v9213_v61, %v9212_v62  ;;  %v8020_v48 = vsel %vm514_vm7, %v9212_v62, %v9214_v3  ;;  %v8025_v51 = vsel %vm514_vm7, %v9214_v3, %v9216_v5  ;;  %v9218_v52 = vld [vmem:[#allocation53_spill] sm:$0xff]  ;;  %v9219_v37 = vld [vmem:[#allocation76_spill] sm:$0xff]  ;;  %v2840_v62 = vmul.f32 %v7715_v58, %v7893_v9  ;;  %v9222_v5 = vld [vmem:[#allocation54_spill] sm:$0xff]  ;;  %9225 = vst [vmem:[#allocation48_spill] sm:$0xff] %v8059_v36 }
 0x4e8   : > { %9215 = vst [vmem:[#allocation69_spill] sm:$0xff] %v8020_v48  ;;  %9217 = vst [vmem:[#allocation43_spill] sm:$0xff] %v8025_v51  ;;  %v8033_v17 = vsel %vm437_vm6, %v9219_v37, %v9218_v52  ;;  %v8041_v3 = vld [vmem:[#allocation3 + $0x25] ss:$8 sm:$0xf]  ;;  %v8046_v22 = vsel %vm437_vm6, %v9218_v52, %v7660_v2  ;;  %v8051_v51 = vsel %vm437_vm6, %v7660_v2, %v9222_v5 }
 0x4e9   : > { %9220 = vst [vmem:[#allocation45_spill] sm:$0xff] %v8033_v17  ;;  %9221 = vst [vmem:[#allocation71_spill] sm:$0xff] %v8046_v22  ;;  %v9223_v23 = vld [vmem:[#allocation77_spill] sm:$0xff]  ;;  %v2839_v58 = vmul.f32 %v7710_v56, %v7891_v25  ;;  %v5546_v48 = vpack.c.bf16 %v2768_v49, %v2768_v49  ;;  %v5543_v17 = vpack.c.bf16 %v2694_v41, %v2694_v41  ;;  %v9228_v49 = vld [vmem:[#allocation15_spill] sm:$0xff] }
 0x4ea   : > { %v8055_v53 = vsel %vm357_vm9, %v9223_v23, %v4571_v24  ;;  %v2914_v52 = vmul.f32 %v7730_v13, %v7893_v9  ;;  %v2915_v22 = vmul.f32 %v7735_v43, %v7895_v8  ;;  %v8067_v2 = vsel %vm357_vm9, %v4571_v24, %v7664_v19  ;;  %v9227_v56 = vld [vmem:[#allocation13_spill] sm:$0xff]  ;;  %v9229_v24 = vld [vmem:[#allocation12_spill] sm:$0xff]  ;;  %v9230_v23 = vld [vmem:[#allocation14_spill] sm:$0xff] }
 0x4eb   : > { %9224 = vst [vmem:[#allocation46_spill] sm:$0xff] %v8055_v53  ;;  %9226 = vst [vmem:[#allocation73_spill] sm:$0xff] %v8067_v2  ;;  %v8072_v5 = vsel %vm357_vm9, %v7664_v19, %v8059_v36  ;;  %v8079_v13 = vmul.f32 0.0, %v7489_v30  ;;  %2791 = vrot.lane.b32.xlu1 %v5546_v48, %s9067_s18  ;;  %2717 = vrot.lane.b32.xlu0 %v5543_v17, %s9069_s15  ;;  %v5548_v43 = vpack.c.bf16 %v2841_v63, %v2840_v62 }
 0x4ec   : > { %v5547_v36 = vpack.c.bf16 %v2839_v58, %v7702_v12  ;;  %v2913_v53 = vmul.f32 %v7725_v11, %v7891_v25  ;;  %v2916_v30 = vmul.f32 %v7371_v21, %v7935_v55  ;;  %v2842_v48 = vmul.f32 %v7346_v60, %v7935_v55 }
 0x4ed   : > { %v5551_v41 = vpack.c.bf16 %v2915_v22, %v2914_v52  ;;  %v2988_v17 = vmul.f32 %v7745_v27, %v7893_v9  ;;  %v2989_v62 = vmul.f32 %v7750_v26, %v7895_v8  ;;  %v2987_v63 = vmul.f32 %v7740_v6, %v7891_v25 }
 0x4ee   : > { %v8102_v12 = vmul.f32 %v7760_v31, %v7893_v9  ;;  %v8106_v21 = vmul.f32 %v7765_v46, %v7895_v8  ;;  %v8110_v60 = vmul.f32 %v7755_v35, %v7891_v25  ;;  %v8114_v11 = vmul.f32 %v7397_v39, %v7935_v55  ;;  %v9231_v31 = vld [vmem:[#allocation16_spill] sm:$0xff] }
 0x4ef   : > { %v8117_v27 = vmul.f32 0.0, %v7500_v18  ;;  %2863 = vrot.lane.b32.xlu1 %v5548_v43, %s9064_s16  ;;  %2861 = vrot.lane.b32.xlu0 %v5547_v36, %s9064_s16  ;;  %v8123_v6 = vmul.f32 %v9231_v31, %v7935_v55  ;;  %v8127_v26 = vmul.f32 %v7775_v20, %v7893_v9  ;;  %v8131_v35 = vmul.f32 %v7780_v15, %v7895_v8  ;;  %v9240_v31 = vld [vmem:[#allocation89_spill] sm:$0xff] }
 0x4f0   : > { %v5550_v39 = vpack.c.bf16 %v2913_v53, %v7963_v38  ;;  %v5552_v18 = vpack.c.bf16 %v2916_v30, %v2916_v30  ;;  %v5549_v46 = vpack.c.bf16 %v2842_v48, %v2842_v48  ;;  %v8136_v22 = vmul.f32 %v7770_v59, %v7891_v25  ;;  %v9232_v30 = vld [vmem:[#allocation17_spill] sm:$0xff] }
 0x4f1   : > { %v5554_v58 = vpack.c.bf16 %v2989_v62, %v2988_v17  ;;  %v5553_v36 = vpack.c.bf16 %v2987_v63, %v8028_v16  ;;  %v8141_v52 = vmul.f32 %v7790_v33, %v7893_v9  ;;  %v8145_v20 = vmul.f32 %v7815_v1, %v7893_v9  ;;  %v9233_v63 = vld [vmem:[#allocation55_spill] sm:$0xff] }
 0x4f2   : > { %v5557_v15 = vpack.c.bf16 %v8106_v21, %v8102_v12  ;;  %v5556_v38 = vpack.c.bf16 %v8110_v60, %v8079_v13  ;;  %v8153_v59 = vmul.f32 %v7795_v50, %v7895_v8  ;;  %v8157_v16 = vmul.f32 %v7820_v32, %v7895_v8  ;;  %v9235_v21 = vld [vmem:[#allocation88_spill] sm:$0xff] }
 0x4f3   : > { %v8160_v33 = vmul.f32 0.0, %v7513_v29  ;;  %2937 = vrot.lane.b32.xlu1 %v5551_v41, %s9073_s13  ;;  %2935 = vrot.lane.b32.xlu0 %v5550_v39, %s9073_s13  ;;  %v8174_v29 = vmul.f32 %v7785_v45, %v7891_v25  ;;  %v8180_v13 = vmul.f32 %v7825_v42, %v7893_v9  ;;  %v8184_v43 = vmul.f32 %v7423_v14, %v7935_v55  ;;  %v9236_v39 = vld [vmem:[#allocation86_spill] sm:$0xff] }
 0x4f4   : > { %v8188_v48 = vmul.f32 %v9232_v30, %v7935_v55  ;;  %v8192_v17 = vmul.f32 %v7830_v0, %v7895_v8  ;;  %v8196_v45 = vmul.f32 %v7589_v10, %v7891_v25  ;;  %v8202_v62 = vmul.f32 %v7805_v28, %v7893_v9  ;;  %v9234_v10 = vld [vmem:[#allocation85_spill] sm:$0xff]  ;;  %v9239_v28 = vld [vmem:[#allocation28_spill] sm:$0xff] }
 0x4f5   : > { %v8206_v14 = vmul.f32 %v7835_v4, %v7893_v9  ;;  %v8210_v12 = vmul.f32 %v9233_v63, %v7891_v25  ;;  %v8216_v0 = vmul.f32 %v9234_v10, %v7895_v8  ;;  %v8222_v60 = vmul.f32 %v9235_v21, %v7893_v9  ;;  %v9238_v10 = vld [vmem:[#allocation58_spill] sm:$0xff]  ;;  %v9242_v63 = vld [vmem:[#allocation60_spill] sm:$0xff] }
 0x4f6   : > { %v8240_v21 = vmul.f32 %v9238_v10, %v7891_v25  ;;  %v8244_v41 = vmul.f32 %v9239_v28, %v7893_v9  ;;  %v8248_v19 = vmul.f32 %v9240_v31, %v7895_v8  ;;  %v8258_v4 = vmul.f32 %v9242_v63, %v7891_v25  ;;  %v9244_v10 = vld [vmem:[#allocation29_spill] sm:$0xff]  ;;  %v9246_v31 = vld [vmem:[#allocation56_spill] sm:$0xff]  ;;  %v9253_v63 = vld [vmem:[#allocation59_spill] sm:$0xff] }
 0x4f7   : > { %2939 = vrot.lane.b32.xlu1 %v5552_v18, %s9073_s13  ;;  %2865 = vrot.lane.b32.xlu0 %v5549_v46, %s9064_s16  ;;  %v8230_v18 = vmul.f32 %v9236_v39, %v7895_v8  ;;  %v9237_v46 = vld [vmem:[#allocation87_spill] sm:$0xff]  ;;  %v8262_v42 = vmul.f32 %v9244_v10, %v7893_v9  ;;  %v8270_v39 = vmul.f32 %v9246_v31, %v7895_v8  ;;  %v9251_v28 = vld [vmem:[#allocation61_spill] sm:$0xff]  ;;  %v9254_v10 = vld [vmem:[#allocation64_spill] sm:$0xff] }
 0x4f8   : > { %v8234_v30 = vmul.f32 %v9237_v46, %v7935_v55  ;;  %v9241_v46 = vld [vmem:[#allocation27_spill] sm:$0xff]  ;;  %9243 = vst [vmem:[#allocation49_spill] sm:$0xff] %v8258_v4  ;;  %v8286_v50 = vmul.f32 %v9251_v28, %v7893_v9  ;;  %v8296_v1 = vmul.f32 %v9253_v63, %v7935_v55  ;;  %v8300_v4 = vmul.f32 %v9254_v10, %v7891_v25 }
 0x4f9   : > { %v8254_v2 = vmul.f32 %v9241_v46, %v7935_v55  ;;  %9245 = vst [vmem:[#allocation51_spill] sm:$0xff] %v8262_v42  ;;  %9247 = vst [vmem:[#allocation74_spill] sm:$0xff] %v8270_v39  ;;  %v9248_v46 = vld [vmem:[#allocation57_spill] sm:$0xff]  ;;  %v9255_v28 = vld [vmem:[#allocation63_spill] sm:$0xff]  ;;  %v8322_v10 = vmul.f32 %v9188_v54, %v7891_v25  ;;  %v8338_v63 = vmul.f32 %v7933_v47, %v7935_v55 }
 0x4fa   : > { %v8274_v32 = vmul.f32 %v9248_v46, %v7935_v55  ;;  %v9252_v46 = vld [vmem:[#allocation30_spill] sm:$0xff]  ;;  %v8306_v42 = vmul.f32 %v9255_v28, %v7893_v9  ;;  %v9256_v31 = vld [vmem:[#allocation31_spill] sm:$0xff]  ;;  %v8326_v28 = vmul.f32 %v7945_v57, %v7893_v9  ;;  %v8344_v57 = vmul.f32 %v9194_v7, %v7891_v25  ;;  %v9269_v47 = vld [vmem:[#allocation65_spill] sm:$0xff] }
 0x4fb   : > { %3011 = vrot.lane.b32.xlu1 %v5554_v58, %s9072_s9  ;;  %3009 = vrot.lane.b32.xlu0 %v5553_v36, %s9072_s9  ;;  %v9250_v58 = vld [vmem:[#allocation62_spill] sm:$0xff]  ;;  %v8292_v53 = vmul.f32 %v9252_v46, %v7895_v8  ;;  %v8310_v39 = vmul.f32 %v9256_v31, %v7895_v8  ;;  %v9258_v46 = vld [vmem:[#allocation32_spill] sm:$0xff]  ;;  %9260 = vst [vmem:[#allocation76_spill] sm:$0xff] %v8322_v10  ;;  %v9271_v7 = vld [vmem:[#allocation67_spill] sm:$0xff] }
 0x4fc   : > { %9249 = vst [vmem:[#allocation75_spill] sm:$0xff] %v8274_v32  ;;  %v8282_v36 = vmul.f32 %v9250_v58, %v7891_v25  ;;  %v8314_v32 = vmul.f32 %v9258_v46, %v7935_v55  ;;  %9261 = vst [vmem:[#allocation54_spill] sm:$0xff] %v8326_v28  ;;  %v9265_v31 = vld [vmem:[#allocation36_spill] sm:$0xff]  ;;  %v9267_v46 = vld [vmem:[#allocation35_spill] sm:$0xff]  ;;  %v8366_v28 = vmul.f32 %v9271_v7, %v7893_v9 }
 0x4fd   : > { %9257 = vst [vmem:[#allocation52_spill] sm:$0xff] %v8310_v39  ;;  %9264 = vst [vmem:[#allocation15_spill] sm:$0xff] %v8344_v57  ;;  %v8348_v58 = vmul.f32 %v9265_v31, %v7893_v9  ;;  %v8352_v39 = vmul.f32 %v9267_v46, %v7895_v8  ;;  %v9270_v54 = vld [vmem:[#allocation70_spill] sm:$0xff]  ;;  %v9272_v31 = vpack.c.bf16 %v8114_v11, %v8114_v11  ;;  %v9279_v11 = vld [vmem:[#allocation41_spill] sm:$0xff] }
 0x4fe   : > { %9259 = vst [vmem:[#allocation53_spill] sm:$0xff] %v8314_v32  ;;  %v8358_v32 = vmul.f32 %v9269_v47, %v7935_v55  ;;  %v8362_v10 = vmul.f32 %v9270_v54, %v7891_v25  ;;  %v9273_v46 = vpack.c.bf16 %v8123_v6, %v8123_v6  ;;  %v9274_v54 = vld [vmem:[#allocation38_spill] sm:$0xff]  ;;  %v9276_v6 = vld [vmem:[#allocation72_spill] sm:$0xff] }
 0x4ff   : > { %3085 = vrot.lane.b32.xlu1 %v5557_v15, %s9078_s1  ;;  %3083 = vrot.lane.b32.xlu0 %v5556_v38, %s9078_s1  ;;  %v9262_v15 = vld [vmem:[#allocation34_spill] sm:$0xff]  ;;  %9266 = vst [vmem:[#allocation12_spill] sm:$0xff] %v8348_v58  ;;  %9268 = vst [vmem:[#allocation14_spill] sm:$0xff] %v8352_v39  ;;  %v9277_v47 = vld [vmem:[#allocation68_spill] sm:$0xff]  ;;  %v8406_v39 = vmul.f32 %v9279_v11, %v7935_v55  ;;  %v9283_v11 = vpack.c.bf16 %v8136_v22, %v8117_v27 }
 0x500   : > { %v8334_v38 = vmul.f32 %v9262_v15, %v7895_v8  ;;  %v8380_v15 = vmul.f32 %v9274_v54, %v7895_v8  ;;  %v9275_v7 = vld [vmem:[#allocation66_spill] sm:$0xff]  ;;  %v8396_v57 = vmul.f32 %v9277_v47, %v7893_v9  ;;  %v8416_v47 = vmul.f32 %v8015_v40, %v7893_v9  ;;  %v9286_v27 = vld [vmem:[#allocation69_spill] sm:$0xff] }
 0x501   : > { %v8420_v54 = vmul.f32 %v8000_v34, %v7895_v8  ;;  %v8438_v34 = vmul.f32 %v9219_v37, %v7891_v25  ;;  %v8450_v22 = vmul.f32 %v9286_v27, %v7895_v8  ;;  %v9292_v37 = vld [vmem:[#allocation73_spill] sm:$0xff] }
 0x502   : > { %9263 = vst [vmem:[#allocation13_spill] sm:$0xff] %v8334_v38  ;;  %v8384_v38 = vmul.f32 %v9275_v7, %v7935_v55  ;;  %v9278_v7 = vld [vmem:[#allocation40_spill] sm:$0xff] }
 0x503   : > { %3087 = vrot.lane.b32.xlu1 %v9272_v31, %s9078_s1  ;;  %3013 = vrot.lane.b32.xlu0 %v9273_v46, %s9072_s9  ;;  %v8392_v46 = vmul.f32 %v9276_v6, %v7891_v25  ;;  %v8402_v58 = vmul.f32 %v9278_v7, %v7895_v8  ;;  %v8410_v31 = vmul.f32 %v9213_v61, %v7891_v25 }
 0x504   : > { %9280 = vst [vmem:[#allocation16_spill] sm:$0xff] %v8420_v54  ;;  %v8424_v7 = vmul.f32 %v8010_v44, %v7935_v55  ;;  %v9282_v61 = vpack.c.bf16 %v8131_v35, %v8127_v26  ;;  %9284 = vst [vmem:[#allocation55_spill] sm:$0xff] %v8438_v34  ;;  %v9285_v44 = vld [vmem:[#allocation45_spill] sm:$0xff]  ;;  %v8464_v26 = vmul.f32 %v8051_v51, %v7935_v55 }
 0x505   : > { %v8442_v6 = vmul.f32 %v9285_v44, %v7893_v9  ;;  %9287 = vst [vmem:[#allocation85_spill] sm:$0xff] %v8450_v22  ;;  %v9289_v44 = vld [vmem:[#allocation71_spill] sm:$0xff]  ;;  %v9290_v35 = vld [vmem:[#allocation77_spill] sm:$0xff]  ;;  %v8478_v34 = vmul.f32 %v9292_v37, %v7895_v8  ;;  %v9294_v51 = vpack.c.bf16 %v8153_v59, %v8141_v52  ;;  %v9296_v37 = vrot.slane %v8041_v3, %v9227_v56 }
 0x506   : > { %9281 = vst [vmem:[#allocation17_spill] sm:$0xff] %v8424_v7  ;;  %v8460_v40 = vmul.f32 %v9289_v44, %v7895_v8  ;;  %v8468_v54 = vmul.f32 %v9290_v35, %v7891_v25  ;;  %v8482_v44 = vmul.f32 %v8072_v5, %v7935_v55  ;;  %v9295_v35 = vpack.c.bf16 %v8174_v29, %v8160_v33 }
 0x507   : > { %3159 = vrot.lane.b32.xlu1 %v9282_v61, %s9076_s0  ;;  %3157 = vrot.lane.b32.xlu0 %v9283_v11, %s9076_s0  ;;  %v9288_v61 = vld [vmem:[#allocation43_spill] sm:$0xff]  ;;  %9293 = vst [vmem:[#allocation88_spill] sm:$0xff] %v8478_v34  ;;  %v3640_v27 = vmul.f32 %v9296_v37, %v7891_v25  ;;  %v9297_v5 = vrot.slane %v8041_v3, %v9228_v49  ;;  %v9300_v37 = vld [vmem:[#allocation84_spill] sm:$0xff] }
 0x508   : > { %v8454_v11 = vmul.f32 %v9288_v61, %v7935_v55  ;;  %v9291_v61 = vld [vmem:[#allocation46_spill] sm:$0xff]  ;;  %v9298_v33 = vrot.slane %v8041_v3, %v9229_v24  ;;  %v9299_v56 = vrot.slane %v8041_v3, %v9230_v23  ;;  %v5564_v49 = vpack.c.bf16 %v8184_v43, %v8184_v43  ;;  %v9301_v24 = vld [vmem:[#allocation33_spill] sm:$0xff]  ;;  %v9303_v34 = vld [vmem:[#allocation19_spill] sm:$0xff] }
 0x509   : > { %v8474_v7 = vmul.f32 %v9291_v61, %v7893_v9  ;;  %v3641_v22 = vmul.f32 %v9297_v5, %v7893_v9  ;;  %v3283_v5 = vmul.f32 %v9300_v37, %v7891_v25  ;;  %v9302_v61 = vld [vmem:[#allocation39_spill] sm:$0xff]  ;;  %v9305_v23 = vld [vmem:[#allocation37_spill] sm:$0xff] }
 0x50a   : > { %v3642_v29 = vmul.f32 %v9298_v33, %v7895_v8  ;;  %v3282_v33 = vmul.f32 0.0, %v9301_v24  ;;  %v3349_v3 = vsel %vm9304_vm13, %v9303_v34, %v9302_v61  ;;  %v3348_v43 = vsel %vm9306_vm15, %v9305_v23, %v9303_v34  ;;  %v9309_v24 = vld [vmem:[#allocation18_spill] sm:$0xff]  ;;  %vm9314_vm13 = vmmov %vm9312_vm14 }
 0x50b   : > { %3233 = vrot.lane.b32.xlu1 %v9294_v51, %s9075_s12  ;;  %3231 = vrot.lane.b32.xlu0 %v9295_v35, %s9075_s12  ;;  %v3643_v51 = vmul.f32 %v9299_v56, %v7935_v55  ;;  %v5561_v35 = vpack.c.bf16 %v8188_v48, %v8188_v48  ;;  %v8520_v59 = vpack.c.bf16 %v3641_v22, %v3640_v27  ;;  %v9307_v48 = vld [vmem:[#allocation20_spill] sm:$0xff]  ;;  %vm9316_vm15 = vmmov %vm9314_vm13 }
 0x50c   : > { %v3350_v22 = vsel %vm9308_vm8, %v9302_v61, %v9307_v48  ;;  %v3358_v27 = vmul.f32 %v3349_v3, %v7893_v9  ;;  %v5565_v56 = vpack.c.bf16 %v3283_v5, %v3282_v33  ;;  %v3360_v37 = vmul.f32 %v9307_v48, %v7935_v55  ;;  %v9313_v33 = vld [vmem:[#allocation42_spill] sm:$0xff] }
 0x50d   : > { %v8522_v52 = vpack.c.bf16 %v3643_v51, %v3642_v29  ;;  %3660 = vst [vmem:[#allocation2 + $0xd0] sm:$0xff] %v8520_v59  ;;  %v5566_v29 = vpack.c.bf16 %v8216_v0, %v8202_v62  ;;  %v3359_v51 = vmul.f32 %v3350_v22, %v7895_v8  ;;  %v3286_v3 = vmul.f32 %v9309_v24, %v7935_v55  ;;  %v9310_v62 = vld [vmem:[#allocation44_spill] sm:$0xff]  ;;  %v9311_v0 = vld [vmem:[#allocation21_spill] sm:$0xff] }
 0x50e   : > { %v3423_v5 = vsel %vm9312_vm14, %v9311_v0, %v9310_v62  ;;  %vm4961_vm8 = vcmask 719872   ;;  %vm9369_vm14 = vcmask 72704  }
 0x50f   : > { %3235 = vrot.lane.b32.xlu1 %v5564_v49, %s9075_s12  ;;  %3161 = vrot.lane.b32.xlu0 %v5561_v35, %s9076_s0  ;;  %3661 = vst [vmem:[#allocation2 + $0xd8] sm:$0xff] %v8522_v52  ;;  %v3357_v49 = vmul.f32 %v3348_v43, %v7891_v25  ;;  %v3356_v35 = vmul.f32 0.0, %v9305_v23  ;;  %v5569_v34 = vpack.c.bf16 %v3359_v51, %v3358_v27  ;;  %v9315_v43 = vld [vmem:[#allocation22_spill] sm:$0xff] }
 0x510   : > { %v3422_v23 = vsel %vm9314_vm13, %v9313_v33, %v9311_v0  ;;  %v3424_v22 = vsel %vm9316_vm15, %v9310_v62, %v9315_v43  ;;  %v3432_v48 = vmul.f32 %v3423_v5, %v7893_v9  ;;  %v5570_v27 = vpack.c.bf16 %v3360_v37, %v3360_v37  ;;  %vm9370_vm13 = vmmov %vm9369_vm14 }
 0x511   : > { %v5568_v61 = vpack.c.bf16 %v3357_v49, %v3356_v35  ;;  %v3431_v51 = vmul.f32 %v3422_v23, %v7891_v25  ;;  %v3430_v49 = vmul.f32 0.0, %v9313_v33  ;;  %v9317_v35 = vld [vmem:[#allocation23_spill] sm:$0xff]  ;;  %v3434_v5 = vmul.f32 %v9315_v43, %v7935_v55  ;;  %v9321_v23 = vld [vmem:[#allocation25_spill] sm:$0xff] }
 0x512   : > { %v9320_v33 = vpack.c.bf16 %v8157_v16, %v8145_v20  ;;  %v9323_v20 = vld [vmem:[#allocation26_spill] sm:$0xff]  ;;  %vm9371_vm15 = vcmask 64512  }
 0x513   : > { %3307 = vrot.lane.b32.xlu1 %v5566_v29, %s9063_s26  ;;  %3305 = vrot.lane.b32.xlu0 %v5565_v56, %s9063_s26  ;;  %v5567_v29 = vpack.c.bf16 %v3286_v3, %v3286_v3  ;;  %v3433_v56 = vmul.f32 %v3424_v22, %v7895_v8  ;;  %v5571_v62 = vpack.c.bf16 %v3431_v51, %v3430_v49  ;;  %v9319_v3 = vld [vmem:[#allocation24_spill] sm:$0xff]  ;;  %v9322_v22 = vld [vmem:[#allocation50_spill] sm:$0xff] }
 0x514   : > { %v3508_v0 = vmul.f32 %v9319_v3, %v7935_v55  ;;  %v3578_v51 = vmul.f32 0.0, %v9322_v22  ;;  %v3582_v16 = vmul.f32 %v9323_v20, %v7935_v55  ;;  %v9324_v49 = vpack.c.bf16 %v8192_v17, %v8180_v13 }
 0x515   : > { %v5572_v24 = vpack.c.bf16 %v3433_v56, %v3432_v48  ;;  %v3570_v48 = vsel %vm1257_vm12, %v9322_v22, %v9321_v23  ;;  %v9327_v55 = vpack.c.bf16 %v8234_v30, %v8230_v18  ;;  %v9328_v13 = vpack.c.bf16 %v8244_v41, %v8240_v21  ;;  %v8626_v30 = vpop.permute.xlu1 %3723 }
 0x516   : > { %v3579_v56 = vmul.f32 %v3570_v48, %v7891_v25  ;;  %v9329_v17 = vpack.c.bf16 %v8254_v2, %v8248_v19  ;;  %v9336_v41 = vpack.c.bf16 %v8286_v50, %v8282_v36  ;;  %v9337_v2 = vpack.c.bf16 %v8296_v1, %v8292_v53  ;;  %v9342_v50 = vld [vmem:[#allocation54_spill] sm:$0xff]  ;;  %v9343_v36 = vld [vmem:[#allocation76_spill] sm:$0xff]  ;;  %v9345_v1 = vld [vmem:[#allocation13_spill] sm:$0xff] }
 0x517   : > { %3381 = vrot.lane.b32.xlu1 %v5569_v34, %s9071_s17  ;;  %3379 = vrot.lane.b32.xlu0 %v5568_v61, %s9071_s17  ;;  %v9318_v34 = vld [vmem:[#allocation47_spill] sm:$0xff]  ;;  %v9338_v21 = vpack.c.bf16 %v8306_v42, %v8300_v4  ;;  %v9346_v53 = vpack.c.bf16 %v8338_v63, %v9345_v1  ;;  %v9347_v42 = vld [vmem:[#allocation12_spill] sm:$0xff]  ;;  %v9352_v22 = vpack.c.bf16 %v8366_v28, %v8362_v10  ;;  %v4679_v1 = vld [vmem:[%s8904_s5] sm:$0xff] }
 0x518   : > { %v3496_v61 = vsel %vm1177_vm10, %v9318_v34, %v9317_v35  ;;  %v3504_v37 = vmul.f32 0.0, %v9318_v34  ;;  %v5577_v43 = vpack.c.bf16 %v3579_v56, %v3578_v51  ;;  %v5579_v35 = vpack.c.bf16 %v3582_v16, %v3582_v16  ;;  %v9348_v4 = vld [vmem:[#allocation15_spill] sm:$0xff]  ;;  %v9358_v51 = vld [vmem:[#allocation16_spill] sm:$0xff] }
 0x519   : > { %v3505_v9 = vmul.f32 %v3496_v61, %v7891_v25  ;;  %v9325_v25 = vpack.c.bf16 %v8206_v14, %v8196_v45  ;;  %v9326_v34 = vpack.c.bf16 %v8222_v60, %v8210_v12  ;;  %v9330_v45 = vld [vmem:[#allocation51_spill] sm:$0xff]  ;;  %v9331_v14 = vld [vmem:[#allocation49_spill] sm:$0xff]  ;;  %v9334_v61 = vld [vmem:[#allocation74_spill] sm:$0xff]  ;;  %v8636_v19 = vpop.permute.xlu1 %3871  ;;  %v9353_v63 = vpack.c.bf16 %v8384_v38, %v8380_v15 }
 0x51a   : > { %v9332_v12 = vpack.c.bf16 %v9330_v45, %v9331_v14  ;;  %v9333_v60 = vld [vmem:[#allocation75_spill] sm:$0xff]  ;;  %v9356_v38 = vpack.c.bf16 %v8416_v47, %v8410_v31  ;;  %v9357_v15 = vld [vmem:[#allocation17_spill] sm:$0xff] }
 0x51b   : > { %3383 = vrot.lane.b32.xlu1 %v5570_v27, %s9071_s17  ;;  %3309 = vrot.lane.b32.xlu0 %v5567_v29, %s9063_s26  ;;  %v5574_v8 = vpack.c.bf16 %v3505_v9, %v3504_v37  ;;  %v5576_v27 = vpack.c.bf16 %v3508_v0, %v3508_v0  ;;  %v5573_v29 = vpack.c.bf16 %v3434_v5, %v3434_v5  ;;  %v9350_v5 = vld [vmem:[#allocation14_spill] sm:$0xff]  ;;  %v9362_v31 = vld [vmem:[#allocation85_spill] sm:$0xff] }
 0x51c   : > { %v9335_v18 = vpack.c.bf16 %v9333_v60, %v9334_v61  ;;  %v9349_v0 = vpack.c.bf16 %v9347_v42, %v9348_v4  ;;  %v9363_v47 = vpack.c.bf16 %v8454_v11, %v9362_v31  ;;  %v9366_v11 = vpack.c.bf16 %v8474_v7, %v8468_v54  ;;  %v9367_v7 = vld [vmem:[#allocation88_spill] sm:$0xff] }
 0x51d   : > { %v8646_v37 = vpop.permute.xlu1 %4019 }
 0x51f   : > { %3455 = vrot.lane.b32.xlu1 %v5572_v24, %s9055_s20  ;;  %3453 = vrot.lane.b32.xlu0 %v5571_v62, %s9055_s20  ;;  %v9339_v24 = vld [vmem:[#allocation53_spill] sm:$0xff]  ;;  %v9340_v62 = vld [vmem:[#allocation52_spill] sm:$0xff] }
 0x520   : > { %v9341_v9 = vpack.c.bf16 %v9339_v24, %v9340_v62 }
 0x521   : > { %v8656_v3 = vpop.permute.xlu1 %4167 }
 0x523   : > { %3529 = vrot.lane.b32.xlu1 %v9320_v33, %s9056_s28  ;;  %3527 = vrot.lane.b32.xlu0 %v5574_v8, %s9056_s28  ;;  %v9344_v8 = vpack.c.bf16 %v9342_v50, %v9343_v36  ;;  %v9351_v33 = vpack.c.bf16 %v8358_v32, %v9350_v5  ;;  %v9355_v32 = vpack.c.bf16 %v8406_v39, %v8402_v58 }
 0x524   : > { %v9368_v36 = vpack.c.bf16 %v8482_v44, %v9367_v7  ;;  %v8732_v44 = vld [vmem:[%s8903_s4] sm:$0xff] }
 0x525   : > { %v8666_v23 = vpop.permute.xlu1 %4315 }
 0x527   : > { %3531 = vrot.lane.b32.xlu1 %v5576_v27, %s9056_s28  ;;  %3457 = vrot.lane.b32.xlu0 %v5573_v29, %s9055_s20  ;;  %v9354_v27 = vpack.c.bf16 %v8396_v57, %v8392_v46 }
 0x529   : > { %v8676_v48 = vpop.permute.xlu1 %4463 }
 0x52b   : > { %3603 = vrot.lane.b32.xlu1 %v9324_v49, %s9058_s11  ;;  %3601 = vrot.lane.b32.xlu0 %v5577_v43, %s9058_s11  ;;  %v9359_v43 = vpack.c.bf16 %v9357_v15, %v9358_v51  ;;  %v9360_v49 = vld [vmem:[#allocation55_spill] sm:$0xff] }
 0x52f   : > { %3719 = vrot.lane.b32.xlu1 %v9325_v25, %s9059_s29  ;;  %3605 = vrot.lane.b32.xlu0 %v5579_v35, %s9058_s11  ;;  %v9361_v35 = vpack.c.bf16 %v8442_v6, %v9360_v49  ;;  %v9365_v6 = vpack.c.bf16 %v8464_v26, %v8460_v40 }
 0x533   : > { %3793 = vrot.lane.b32.xlu1 %v9326_v34, %s9060_s10  ;;  %3721 = vrot.lane.b32.xlu0 %v9327_v55, %s9059_s29  ;;  %v9364_v34 = vld [vmem:[#allocation48_spill] sm:$0xff]  ;;  %s5901_s29 = smov [#allocation8]  }
 0x534   : > { %v4588_v55 = vmul.f32 0.0, %v9364_v34 }
 0x537   : > { %3867 = vrot.lane.b32.xlu1 %v9328_v13, %s9061_s19  ;;  %3795 = vrot.lane.b32.xlu0 %v9329_v17, %s9060_s10  ;;  %s5811_s10 = sshll.u32 %s5901_s29, 4  ;;  %s5812_s10 = int_to_ptr.vmem [resolvable:$false] %s5811_s10 }
 0x53b   : > { %3941 = vrot.lane.b32.xlu1 %v9332_v12, %s9062_s14  ;;  %3869 = vrot.lane.b32.xlu0 %v9335_v18, %s9061_s19 }
 0x53f   : > { %4015 = vrot.lane.b32.xlu1 %v9336_v41, %s9069_s15  ;;  %3943 = vrot.lane.b32.xlu0 %v9337_v2, %s9062_s14  ;;  %v5620_v2 = vpack.c.bf16 %v4588_v55, %v4588_v55  ;;  %s270_s14 = sand.u32 1, %s5869_s22  }
 0x543   : > { %4089 = vrot.lane.b32.xlu1 %v9338_v21, %s9067_s18  ;;  %4017 = vrot.lane.b32.xlu0 %v9341_v9, %s9069_s15  ;;  %s5621_s15 = sshll.u32 %s5958_s25, 9  ;;  %s5095_s25 = scalar_lea.sflag [#allocation5], %s270_s14 }
 0x544   : > { %s8857_s28 = scalar_lea.hbm %s8905_s6, %s5621_s15 }
 0x547   : > { %4163 = vrot.lane.b32.xlu1 %v9344_v8, %s9064_s16  ;;  %4091 = vrot.lane.b32.xlu0 %v9346_v53, %s9067_s18 }
 0x54b   : > { %4237 = vrot.lane.b32.xlu1 %v9349_v0, %s9073_s13  ;;  %4165 = vrot.lane.b32.xlu0 %v9351_v33, %s9064_s16  ;;  %v5394_v33 = vcombine.high %v8732_v44, %v8732_v44  ;;  %s5813_s16 = scalar_lea.vmem %s5812_s10, 1024 }
 0x54d   : > { %5452 = vmatprep.mubr.msk.bf16.mxu0 %vm4961_vm8, %v5394_v33  ;;  %5454 = vmatprep.mubr.msk.bf16.mxu1 %vm4961_vm8, %v5394_v33  ;;  %vm9372_vm8 = vcmask 56320  }
 0x54f   : > { %4311 = vrot.lane.b32.xlu1 %v9352_v22, %s9072_s9  ;;  %4239 = vrot.lane.b32.xlu0 %v9353_v63, %s9073_s13  ;;  %s5198_s13 = sshll.u32 %s270_s14, 5 }
 0x550   : > { %s272_s17 = scalar_lea.vmem [#allocation8], %s5198_s13 }
 0x551   : > { %s5109_s19 = sshll.u32 %s272_s17, 4  ;;  %s8859_s19 = int_to_ptr.vmem [resolvable:$true] %s5109_s19 }
 0x552   : > { %s5807_s11 = scalar_lea.vmem %s8859_s19, 512  ;;  %p5814_p4 = scmp.lt.s32.totalorder %s8859_s19, %s5812_s10 }
 0x553   : > { %4385 = vrot.lane.b32.xlu1 %v9354_v27, %s9078_s1  ;;  %4313 = vrot.lane.b32.xlu0 %v9355_v32, %s9072_s9  ;;  %p5808_p10 = scmp.ne.s32.totalorder %s8859_s19, %s5807_s11  ;;  %p5815_p7 = scmp.lt.s32.totalorder %s5813_s16, %s5807_s11 }
 0x554   : > { %v2714_v29 = vpop.permute.xlu0 %2713  ;;  %v2716_v10 = vpop.permute.xlu1 %2715 }
 0x555   : > { %v2719_v28 = vrot.slane %v2714_v29, 4  ;;  %v2720_v56 = vrot.slane %v2716_v10, 4  ;;  %p5809_p2 = pnand %p5808_p10, %p9387_p1  ;;  %p5816_p8 = por %p5815_p7, %p5814_p4 }
 0x557   : > { %4459 = vrot.lane.b32.xlu1 %v9356_v38, %s9076_s0  ;;  %4387 = vrot.lane.b32.xlu0 %v9359_v43, %s9078_s1  ;;  %v2722_v57 = vsel %vm355_vm11, %v2719_v28, %v2720_v56  ;;  %p5810_p3 = pneg %p5809_p2 }
 0x558   : > { %v2723_v46 = vsel %vm357_vm9, %v2714_v29, %v2722_v57  ;;  %v2788_v39 = vpop.permute.xlu0 %2787  ;;  %v2790_v58 = vpop.permute.xlu1 %2789 }
 0x559   : > { %2728 = vst [vmem:[#allocation2] sm:$0xff] %v2723_v46  ;;  %v2793_v20 = vrot.slane %v2788_v39, 4  ;;  %v2794_v16 = vrot.slane %v2790_v58, 4  ;;  %p5817_p11 = pnand %p5816_p8, %p5810_p3 }
 0x55b   : > { %4533 = vrot.lane.b32.xlu1 %v9361_v35, %s9075_s12  ;;  %4461 = vrot.lane.b32.xlu0 %v9363_v47, %s9076_s0  ;;  %v2796_v25 = vsel %vm355_vm11, %v2793_v20, %v2794_v16 }
 0x55c   : > { %v2797_v13 = vsel %vm437_vm6, %v2788_v39, %v2796_v25 }
 0x55d   : > { %v2718_v17 = vpop.permute.xlu0 %2717  ;;  %v2792_v45 = vpop.permute.xlu1 %2791  ;;  %2802 = vst [vmem:[#allocation2 + $0x10] sm:$0xff] %v2797_v13  ;;  %v5395_v60 = vcombine.low %v2723_v46, %v2797_v13  ;;  %v5396_v61 = vcombine.high %v2723_v46, %v2797_v13 }
 0x55e   : > { %v2721_v14 = vrot.slane %v2718_v17, 4  ;;  %v2795_v12 = vrot.slane %v2792_v45, 4 }
 0x55f   : > { %4535 = vrot.lane.b32.xlu0 %v9365_v6, %s9075_s12  ;;  %4607 = vrot.lane.b32.xlu1 %v9366_v11, %s9063_s26 }
 0x560   : > { %v2724_v18 = vsel %vm355_vm11, %v2720_v56, %v2721_v14  ;;  %v2798_v41 = vsel %vm355_vm11, %v2794_v16, %v2795_v12  ;;  %4978 = vmatprep.subr.bf16.mxu0 %v5396_v61 }
 0x561   : > { %v2725_v21 = vsel %vm357_vm9, %v2716_v10, %v2724_v18  ;;  %v2799_v24 = vsel %vm437_vm6, %v2790_v58, %v2798_v41  ;;  %v2862_v62 = vpop.permute.xlu0 %2861  ;;  %v2864_v9 = vpop.permute.xlu1 %2863  ;;  %4979 = vmatpush1.bf16.msra.mxu0 %v5395_v60 }
 0x562   : > { %2729 = vst [vmem:[#allocation2 + $0x8] sm:$0xff] %v2725_v21  ;;  %2803 = vst [vmem:[#allocation2 + $0x18] sm:$0xff] %v2799_v24  ;;  %v2867_v40 = vrot.slane %v2862_v62, 4  ;;  %v2868_v26 = vrot.slane %v2864_v9, 4  ;;  %v5397_v50 = vcombine.low %v2725_v21, %v2799_v24  ;;  %v5398_v54 = vcombine.high %v2725_v21, %v2799_v24 }
 0x563   : > { %4611 = vrot.lane.b32.xlu1 %v5620_v2, %s9063_s26  ;;  %4609 = vrot.lane.b32.xlu0 %v9368_v36, %s9063_s26 }
 0x564   : > { %v2870_v8 = vsel %vm355_vm11, %v2867_v40, %v2868_v26  ;;  %5019 = vmatprep.subr.bf16.mxu1 %v5398_v54 }
 0x565   : > { %v2871_v53 = vsel %vm514_vm7, %v2862_v62, %v2870_v8  ;;  %v2936_v42 = vpop.permute.xlu0 %2935  ;;  %v2938_v4 = vpop.permute.xlu1 %2937  ;;  %5020 = vmatpush1.bf16.msra.mxu1 %v5397_v50 }
 0x566   : > { %2876 = vst [vmem:[#allocation2 + $0x20] sm:$0xff] %v2871_v53  ;;  %v2941_v0 = vrot.slane %v2936_v42, 4  ;;  %v2942_v5 = vrot.slane %v2938_v4, 4 }
 0x567   : > { %4682 = vperm.xlu0 %5702, %v4679_v1  }
 0x568   : > { %v2944_v22 = vsel %vm355_vm11, %v2941_v0, %v2942_v5 }
 0x569   : > { %v2945_v63 = vsel %vm594_vm4, %v2936_v42, %v2944_v22  ;;  %v2866_v27 = vpop.permute.xlu0 %2865  ;;  %v2940_v32 = vpop.permute.xlu1 %2939 }
 0x56a   : > { %2950 = vst [vmem:[#allocation2 + $0x30] sm:$0xff] %v2945_v63  ;;  %v2869_v29 = vrot.slane %v2866_v27, 4  ;;  %v2943_v10 = vrot.slane %v2940_v32, 4  ;;  %v5399_v28 = vcombine.low %v2871_v53, %v2945_v63  ;;  %v5400_v56 = vcombine.high %v2871_v53, %v2945_v63 }
 0x56c   : > { %v2872_v38 = vsel %vm355_vm11, %v2868_v26, %v2869_v29  ;;  %v2946_v15 = vsel %vm355_vm11, %v2942_v5, %v2943_v10  ;;  %4980 = vmatprep.subr.bf16.mxu0 %v5400_v56 }
 0x56d   : > { %v2873_v51 = vsel %vm514_vm7, %v2864_v9, %v2872_v38  ;;  %v2947_v43 = vsel %vm594_vm4, %v2938_v4, %v2946_v15  ;;  %v3010_v57 = vpop.permute.xlu0 %3009  ;;  %v3012_v46 = vpop.permute.xlu1 %3011  ;;  %4981 = vmatpush1.bf16.msra.mxu0 %v5399_v28 }
 0x56e   : > { %2877 = vst [vmem:[#allocation2 + $0x28] sm:$0xff] %v2873_v51  ;;  %2951 = vst [vmem:[#allocation2 + $0x38] sm:$0xff] %v2947_v43  ;;  %v3015_v39 = vrot.slane %v3010_v57, 4  ;;  %v3016_v58 = vrot.slane %v3012_v46, 4  ;;  %v5401_v20 = vcombine.low %v2873_v51, %v2947_v43  ;;  %v5402_v16 = vcombine.high %v2873_v51, %v2947_v43 }
 0x570   : > { %v3018_v49 = vsel %vm355_vm11, %v3015_v39, %v3016_v58  ;;  %5021 = vmatprep.subr.bf16.mxu1 %v5402_v16 }
 0x571   : > { %v3019_v35 = vsel %vm629_vm5, %v3010_v57, %v3018_v49  ;;  %v3084_v31 = vpop.permute.xlu0 %3083  ;;  %v3086_v47 = vpop.permute.xlu1 %3085  ;;  %5022 = vmatpush1.bf16.msra.mxu1 %v5401_v20 }
 0x572   : > { %3024 = vst [vmem:[#allocation2 + $0x40] sm:$0xff] %v3019_v35  ;;  %v3089_v25 = vrot.slane %v3084_v31, 4  ;;  %v3090_v34 = vrot.slane %v3086_v47, 4 }
 0x574   : > { %v3092_v55 = vsel %vm355_vm11, %v3089_v25, %v3090_v34 }
 0x575   : > { %v3093_v13 = vsel %vm549_vm2, %v3084_v31, %v3092_v55  ;;  %v3014_v17 = vpop.permute.xlu0 %3013  ;;  %v3088_v45 = vpop.permute.xlu1 %3087 }
 0x576   : > { %3098 = vst [vmem:[#allocation2 + $0x50] sm:$0xff] %v3093_v13  ;;  %v3017_v14 = vrot.slane %v3014_v17, 4  ;;  %v3091_v12 = vrot.slane %v3088_v45, 4  ;;  %v5403_v60 = vcombine.low %v3019_v35, %v3093_v13  ;;  %v5404_v61 = vcombine.high %v3019_v35, %v3093_v13 }
 0x578   : > { %v3020_v6 = vsel %vm355_vm11, %v3016_v58, %v3017_v14  ;;  %v3094_v11 = vsel %vm355_vm11, %v3090_v34, %v3091_v12  ;;  %4982 = vmatprep.subr.bf16.mxu0 %v5404_v61 }
 0x579   : > { %v3021_v18 = vsel %vm629_vm5, %v3012_v46, %v3020_v6  ;;  %v3095_v41 = vsel %vm549_vm2, %v3086_v47, %v3094_v11  ;;  %v3158_v2 = vpop.permute.xlu0 %3157  ;;  %v3160_v21 = vpop.permute.xlu1 %3159  ;;  %4983 = vmatpush1.bf16.msra.mxu0 %v5403_v60 }
 0x57a   : > { %3025 = vst [vmem:[#allocation2 + $0x48] sm:$0xff] %v3021_v18  ;;  %3099 = vst [vmem:[#allocation2 + $0x58] sm:$0xff] %v3095_v41  ;;  %v3163_v24 = vrot.slane %v3158_v2, 4  ;;  %v3164_v62 = vrot.slane %v3160_v21, 4  ;;  %v5405_v9 = vcombine.low %v3021_v18, %v3095_v41  ;;  %v5406_v40 = vcombine.high %v3021_v18, %v3095_v41 }
 0x57c   : > { %v3166_v26 = vsel %vm355_vm11, %v3163_v24, %v3164_v62  ;;  %5023 = vmatprep.subr.bf16.mxu1 %v5406_v40 }
 0x57d   : > { %v3167_v50 = vsel %vm472_vm3, %v3158_v2, %v3166_v26  ;;  %v3232_v54 = vpop.permute.xlu0 %3231  ;;  %v3234_v7 = vpop.permute.xlu1 %3233  ;;  %5024 = vmatpush1.bf16.msra.mxu1 %v5405_v9 }
 0x57e   : > { %3172 = vst [vmem:[#allocation2 + $0x60] sm:$0xff] %v3167_v50  ;;  %v3237_v36 = vrot.slane %v3232_v54, 4  ;;  %v3238_v8 = vrot.slane %v3234_v7, 4 }
 0x580   : > { %v3240_v1 = vsel %vm355_vm11, %v3237_v36, %v3238_v8 }
 0x581   : > { %v3241_v53 = vsel %vm392_vm0, %v3232_v54, %v3240_v1  ;;  %v3162_v42 = vpop.permute.xlu0 %3161  ;;  %v3236_v4 = vpop.permute.xlu1 %3235 }
 0x582   : > { %3246 = vst [vmem:[#allocation2 + $0x70] sm:$0xff] %v3241_v53  ;;  %v3165_v0 = vrot.slane %v3162_v42, 4  ;;  %v3239_v5 = vrot.slane %v3236_v4, 4  ;;  %v5407_v33 = vcombine.low %v3167_v50, %v3241_v53  ;;  %v5408_v22 = vcombine.high %v3167_v50, %v3241_v53 }
 0x584   : > { %v3168_v63 = vsel %vm355_vm11, %v3164_v62, %v3165_v0  ;;  %v3242_v27 = vsel %vm355_vm11, %v3238_v8, %v3239_v5  ;;  %4984 = vmatprep.subr.bf16.mxu0 %v5408_v22 }
 0x585   : > { %v3169_v32 = vsel %vm472_vm3, %v3160_v21, %v3168_v63  ;;  %v3243_v29 = vsel %vm392_vm0, %v3234_v7, %v3242_v27  ;;  %v3306_v10 = vpop.permute.xlu0 %3305  ;;  %v3308_v28 = vpop.permute.xlu1 %3307  ;;  %4985 = vmatpush1.bf16.msra.mxu0 %v5407_v33 }
 0x586   : > { %3173 = vst [vmem:[#allocation2 + $0x68] sm:$0xff] %v3169_v32  ;;  %3247 = vst [vmem:[#allocation2 + $0x78] sm:$0xff] %v3243_v29  ;;  %v3311_v56 = vrot.slane %v3306_v10, 4  ;;  %v3312_v38 = vrot.slane %v3308_v28, 4  ;;  %v5409_v15 = vcombine.low %v3169_v32, %v3243_v29  ;;  %v5410_v51 = vcombine.high %v3169_v32, %v3243_v29 }
 0x588   : > { %v3314_v43 = vsel %vm355_vm11, %v3311_v56, %v3312_v38  ;;  %5025 = vmatprep.subr.bf16.mxu1 %v5410_v51 }
 0x589   : > { %v3315_v57 = vsel %vm314_vm1, %v3306_v10, %v3314_v43  ;;  %v3380_v46 = vpop.permute.xlu0 %3379  ;;  %v3382_v39 = vpop.permute.xlu1 %3381  ;;  %5026 = vmatpush1.bf16.msra.mxu1 %v5409_v15 }
 0x58a   : > { %3320 = vst [vmem:[#allocation2 + $0x80] sm:$0xff] %v3315_v57  ;;  %v3385_v58 = vrot.slane %v3380_v46, 4  ;;  %v3386_v20 = vrot.slane %v3382_v39, 4 }
 0x58c   : > { %v3388_v16 = vsel %vm355_vm11, %v3385_v58, %v3386_v20 }
 0x58d   : > { %v3389_v49 = vsel %vm9369_vm14, %v3380_v46, %v3388_v16  ;;  %v3310_v35 = vpop.permute.xlu0 %3309  ;;  %v3384_v31 = vpop.permute.xlu1 %3383  ;;  %vm9373_vm14 = vmmov %vm9371_vm15 }
 0x58e   : > { %3394 = vst [vmem:[#allocation2 + $0x90] sm:$0xff] %v3389_v49  ;;  %v3313_v47 = vrot.slane %v3310_v35, 4  ;;  %v3387_v25 = vrot.slane %v3384_v31, 4  ;;  %v5411_v34 = vcombine.low %v3315_v57, %v3389_v49  ;;  %v5412_v55 = vcombine.high %v3315_v57, %v3389_v49 }
 0x58f   : > { %v3727_v57 = vrot.slane %v8626_v30, 4 }
 0x590   : > { %v3316_v13 = vsel %vm355_vm11, %v3312_v38, %v3313_v47  ;;  %v3390_v17 = vsel %vm355_vm11, %v3386_v20, %v3387_v25  ;;  %4986 = vmatprep.subr.bf16.mxu0 %v5412_v55  ;;  %v9377_v55 = vld [vmem:[#allocation78_spill] sm:$0xff] }
 0x591   : > { %v3317_v45 = vsel %vm314_vm1, %v3308_v28, %v3316_v13  ;;  %v3391_v14 = vsel %vm9370_vm13, %v3382_v39, %v3390_v17  ;;  %v3454_v12 = vpop.permute.xlu0 %3453  ;;  %v3456_v60 = vpop.permute.xlu1 %3455  ;;  %4987 = vmatpush1.bf16.msra.mxu0 %v5411_v34  ;;  %vm9374_vm13 = vmmov %vm9372_vm8  ;;  %v3801_v13 = vrot.slane %v9377_v55, 4 }
 0x592   : > { %3321 = vst [vmem:[#allocation2 + $0x88] sm:$0xff] %v3317_v45  ;;  %3395 = vst [vmem:[#allocation2 + $0x98] sm:$0xff] %v3391_v14  ;;  %v3459_v61 = vrot.slane %v3454_v12, 4  ;;  %v3460_v6 = vrot.slane %v3456_v60, 4  ;;  %v5413_v11 = vcombine.low %v3317_v45, %v3391_v14  ;;  %v5414_v18 = vcombine.high %v3317_v45, %v3391_v14 }
 0x594   : > { %v3462_v41 = vsel %vm355_vm11, %v3459_v61, %v3460_v6  ;;  %5027 = vmatprep.subr.bf16.mxu1 %v5414_v18 }
 0x595   : > { %v3463_v2 = vsel %vm9371_vm15, %v3454_v12, %v3462_v41  ;;  %v3528_v21 = vpop.permute.xlu0 %3527  ;;  %v3530_v24 = vpop.permute.xlu1 %3529  ;;  %5028 = vmatpush1.bf16.msra.mxu1 %v5413_v11  ;;  %vm9375_vm15 = vcmask 7168   ;;  %v3875_v12 = vrot.slane %v8636_v19, 4 }
 0x596   : > { %3468 = vst [vmem:[#allocation2 + $0xa0] sm:$0xff] %v3463_v2  ;;  %v3533_v62 = vrot.slane %v3528_v21, 4  ;;  %v3534_v9 = vrot.slane %v3530_v24, 4 }
 0x598   : > { %v3536_v40 = vsel %vm355_vm11, %v3533_v62, %v3534_v9 }
 0x599   : > { %v3537_v26 = vsel %vm9372_vm8, %v3528_v21, %v3536_v40  ;;  %v3458_v50 = vpop.permute.xlu0 %3457  ;;  %v3532_v54 = vpop.permute.xlu1 %3531  ;;  %vm9376_vm8 = vmmov %vm9375_vm15 }
 0x59a   : > { %3542 = vst [vmem:[#allocation2 + $0xb0] sm:$0xff] %v3537_v26  ;;  %v3461_v7 = vrot.slane %v3458_v50, 4  ;;  %v3535_v36 = vrot.slane %v3532_v54, 4  ;;  %v5415_v8 = vcombine.low %v3463_v2, %v3537_v26  ;;  %v5416_v1 = vcombine.high %v3463_v2, %v3537_v26 }
 0x59c   : > { %v3464_v53 = vsel %vm355_vm11, %v3460_v6, %v3461_v7  ;;  %v3538_v42 = vsel %vm355_vm11, %v3534_v9, %v3535_v36  ;;  %4988 = vmatprep.subr.bf16.mxu0 %v5416_v1  ;;  %v9380_v7 = vld [vmem:[#allocation79_spill] sm:$0xff] }
 0x59d   : > { %v3465_v4 = vsel %vm9373_vm14, %v3456_v60, %v3464_v53  ;;  %v3539_v0 = vsel %vm9374_vm13, %v3530_v24, %v3538_v42  ;;  %v3602_v5 = vpop.permute.xlu0 %3601  ;;  %v3604_v33 = vpop.permute.xlu1 %3603  ;;  %4989 = vmatpush1.bf16.msra.mxu0 %v5415_v8  ;;  %v3949_v36 = vrot.slane %v9380_v7, 4 }
 0x59e   : > { %3469 = vst [vmem:[#allocation2 + $0xa8] sm:$0xff] %v3465_v4  ;;  %3543 = vst [vmem:[#allocation2 + $0xb8] sm:$0xff] %v3539_v0  ;;  %v3607_v22 = vrot.slane %v3602_v5, 4  ;;  %v3608_v63 = vrot.slane %v3604_v33, 4  ;;  %v5417_v27 = vcombine.low %v3465_v4, %v3539_v0  ;;  %v5418_v32 = vcombine.high %v3465_v4, %v3539_v0 }
 0x59f   : > { %v4023_v4 = vrot.slane %v8646_v37, 4 }
 0x5a0   : > { %v3610_v29 = vsel %vm355_vm11, %v3607_v22, %v3608_v63  ;;  %5029 = vmatprep.subr.bf16.mxu1 %v5418_v32 }
 0x5a1   : > { %v3611_v10 = vsel %vm9375_vm15, %v3602_v5, %v3610_v29  ;;  %v3606_v28 = vpop.permute.xlu0 %3605  ;;  %v3720_v56 = vpop.permute.xlu1 %3719  ;;  %5030 = vmatpush1.bf16.msra.mxu1 %v5417_v27 }
 0x5a2   : > { %3616 = vst [vmem:[#allocation2 + $0xc0] sm:$0xff] %v3611_v10  ;;  %v3609_v38 = vrot.slane %v3606_v28, 4  ;;  %v5419_v15 = vcombine.low %v3611_v10, %v8520_v59  ;;  %v5420_v51 = vcombine.high %v3611_v10, %v8520_v59  ;;  %v3725_v20 = vrot.slane %v3720_v56, 4 }
 0x5a4   : > { %v3612_v43 = vsel %vm355_vm11, %v3608_v63, %v3609_v38  ;;  %4990 = vmatprep.subr.bf16.mxu0 %v5420_v51 }
 0x5a5   : > { %v3613_v46 = vsel %vm9376_vm8, %v3604_v33, %v3612_v43  ;;  %v3722_v39 = vpop.permute.xlu0 %3721  ;;  %v3794_v58 = vpop.permute.xlu1 %3793  ;;  %4991 = vmatpush1.bf16.msra.mxu0 %v5419_v15 }
 0x5a6   : > { %3617 = vst [vmem:[#allocation2 + $0xc8] sm:$0xff] %v3613_v46  ;;  %v3726_v16 = vrot.slane %v3722_v39, 4  ;;  %v5421_v49 = vcombine.low %v3613_v46, %v8522_v52  ;;  %v5422_v35 = vcombine.high %v3613_v46, %v8522_v52  ;;  %v3799_v17 = vrot.slane %v3794_v58, 4 }
 0x5a8   : > { %v3728_v31 = vsel %vm355_vm11, %v3725_v20, %v3726_v16  ;;  %v3730_v59 = vsel %vm355_vm11, %v3726_v16, %v3727_v57  ;;  %5031 = vmatprep.subr.bf16.mxu1 %v5422_v35  ;;  %v9383_v57 = vld [vmem:[#allocation80_spill] sm:$0xff] }
 0x5a9   : > { %v3729_v47 = vsel %vm1257_vm12, %v3720_v56, %v3728_v31  ;;  %v3731_v30 = vsel %vm1257_vm12, %v3722_v39, %v3730_v59  ;;  %v3796_v25 = vpop.permute.xlu0 %3795  ;;  %v3868_v34 = vpop.permute.xlu1 %3867  ;;  %5032 = vmatpush1.bf16.msra.mxu1 %v5421_v49  ;;  %vm9378_vm12 = vcmask 982016   ;;  %v4097_v46 = vrot.slane %v9383_v57, 4 }
 0x5aa   : > { %v3800_v45 = vrot.slane %v3796_v25, 4  ;;  %v3873_v18 = vrot.slane %v3868_v34, 4  ;;  %vm9379_vm14 = vmmov %vm9378_vm12  ;;  %v4171_v49 = vrot.slane %v8656_v3, 4 }
 0x5ac   : > { %v3802_v14 = vsel %vm355_vm11, %v3799_v17, %v3800_v45  ;;  %v3804_v52 = vsel %vm355_vm11, %v3800_v45, %v3801_v13 }
 0x5ad   : > { %v3803_v60 = vsel %vm1177_vm10, %v3794_v58, %v3802_v14  ;;  %v3805_v61 = vsel %vm1177_vm10, %v3796_v25, %v3804_v52  ;;  %v3870_v6 = vpop.permute.xlu0 %3869  ;;  %v3942_v11 = vpop.permute.xlu1 %3941  ;;  %vm9381_vm10 = vcmask 973824  }
 0x5ae   : > { %v3874_v41 = vrot.slane %v3870_v6, 4  ;;  %v5423_v2 = vcombine.low %v3729_v47, %v3803_v60  ;;  %v5424_v21 = vcombine.high %v3729_v47, %v3803_v60  ;;  %v5425_v24 = vcombine.low %v3731_v30, %v3805_v61  ;;  %vm9382_vm13 = vmmov %vm9381_vm10 }
 0x5af   : > { %v5426_v62 = vcombine.high %v3731_v30, %v3805_v61  ;;  %v3947_v8 = vrot.slane %v3942_v11, 4  ;;  %v9384_v61 = vld [vmem:[#allocation81_spill] sm:$0xff] }
 0x5b0   : > { %v3876_v9 = vsel %vm355_vm11, %v3873_v18, %v3874_v41  ;;  %v3878_v40 = vsel %vm355_vm11, %v3874_v41, %v3875_v12  ;;  %4992 = vmatprep.subr.bf16.mxu0 %v5424_v21  ;;  %v4319_v21 = vrot.slane %v8666_v23, 4 }
 0x5b1   : > { %v3877_v26 = vsel %vm9378_vm12, %v3868_v34, %v3876_v9  ;;  %v3879_v19 = vsel %vm9379_vm14, %v3870_v6, %v3878_v40  ;;  %v3944_v50 = vpop.permute.xlu0 %3943  ;;  %v4016_v54 = vpop.permute.xlu1 %4015  ;;  %5033 = vmatprep.subr.bf16.mxu1 %v5426_v62  ;;  %4993 = vmatpush1.bf16.msra.mxu0 %v5423_v2  ;;  %v4245_v6 = vrot.slane %v9384_v61, 4 }
 0x5b2   : > { %v3948_v1 = vrot.slane %v3944_v50, 4  ;;  %5034 = vmatpush1.bf16.msra.mxu1 %v5425_v24  ;;  %v4021_v63 = vrot.slane %v4016_v54, 4 }
 0x5b4   : > { %v3950_v53 = vsel %vm355_vm11, %v3947_v8, %v3948_v1  ;;  %v3952_v42 = vsel %vm355_vm11, %v3948_v1, %v3949_v36 }
 0x5b5   : > { %v3951_v0 = vsel %vm9381_vm10, %v3942_v11, %v3950_v53  ;;  %v3953_v5 = vsel %vm9382_vm13, %v3944_v50, %v3952_v42  ;;  %v4018_v33 = vpop.permute.xlu0 %4017  ;;  %v4090_v22 = vpop.permute.xlu1 %4089 }
 0x5b6   : > { %v4022_v27 = vrot.slane %v4018_v33, 4  ;;  %v5427_v32 = vcombine.low %v3877_v26, %v3951_v0  ;;  %v5428_v29 = vcombine.high %v3877_v26, %v3951_v0  ;;  %v5429_v10 = vcombine.low %v3879_v19, %v3953_v5  ;;  %v9385_v0 = vld [vmem:[#allocation82_spill] sm:$0xff] }
 0x5b7   : > { %v5430_v28 = vcombine.high %v3879_v19, %v3953_v5  ;;  %v4095_v39 = vrot.slane %v4090_v22, 4  ;;  %v4393_v5 = vrot.slane %v9385_v0, 4 }
 0x5b8   : > { %v4024_v56 = vsel %vm355_vm11, %v4021_v63, %v4022_v27  ;;  %v4026_v38 = vsel %vm355_vm11, %v4022_v27, %v4023_v4  ;;  %4994 = vmatprep.subr.bf16.mxu0 %v5428_v29 }
 0x5b9   : > { %v4025_v15 = vsel %vm357_vm9, %v4016_v54, %v4024_v56  ;;  %v4027_v37 = vsel %vm357_vm9, %v4018_v33, %v4026_v38  ;;  %v4092_v51 = vpop.permute.xlu0 %4091  ;;  %v4164_v43 = vpop.permute.xlu1 %4163  ;;  %5035 = vmatprep.subr.bf16.mxu1 %v5430_v28  ;;  %4995 = vmatpush1.bf16.msra.mxu0 %v5427_v32  ;;  %v4467_v32 = vrot.slane %v8676_v48, 4 }
 0x5ba   : > { %v4096_v58 = vrot.slane %v4092_v51, 4  ;;  %5036 = vmatpush1.bf16.msra.mxu1 %v5429_v10  ;;  %v4169_v30 = vrot.slane %v4164_v43, 4 }
 0x5bc   : > { %v4098_v20 = vsel %vm355_vm11, %v4095_v39, %v4096_v58  ;;  %v4100_v16 = vsel %vm355_vm11, %v4096_v58, %v4097_v46 }
 0x5bd   : > { %v4099_v35 = vsel %vm437_vm6, %v4090_v22, %v4098_v20  ;;  %v4101_v31 = vsel %vm437_vm6, %v4092_v51, %v4100_v16  ;;  %v4166_v59 = vpop.permute.xlu0 %4165  ;;  %v4238_v47 = vpop.permute.xlu1 %4237 }
 0x5be   : > { %v4170_v25 = vrot.slane %v4166_v59, 4  ;;  %v5431_v34 = vcombine.low %v4025_v15, %v4099_v35  ;;  %v5432_v55 = vcombine.high %v4025_v15, %v4099_v35  ;;  %v5433_v13 = vcombine.low %v4027_v37, %v4101_v31 }
 0x5bf   : > { %v5434_v17 = vcombine.high %v4027_v37, %v4101_v31  ;;  %v4243_v11 = vrot.slane %v4238_v47, 4 }
 0x5c0   : > { %v4172_v45 = vsel %vm355_vm11, %v4169_v30, %v4170_v25  ;;  %v4174_v14 = vsel %vm355_vm11, %v4170_v25, %v4171_v49  ;;  %4996 = vmatprep.subr.bf16.mxu0 %v5432_v55  ;;  %v9386_v49 = vld [vmem:[#allocation83_spill] sm:$0xff] }
 0x5c1   : > { %v4173_v52 = vsel %vm514_vm7, %v4164_v43, %v4172_v45  ;;  %v4175_v3 = vsel %vm514_vm7, %v4166_v59, %v4174_v14  ;;  %v4240_v12 = vpop.permute.xlu0 %4239  ;;  %v4312_v60 = vpop.permute.xlu1 %4311  ;;  %5037 = vmatprep.subr.bf16.mxu1 %v5434_v17  ;;  %4997 = vmatpush1.bf16.msra.mxu0 %v5431_v34  ;;  %v4541_v35 = vrot.slane %v9386_v49, 4 }
 0x5c2   : > { %v4244_v18 = vrot.slane %v4240_v12, 4  ;;  %5038 = vmatpush1.bf16.msra.mxu1 %v5433_v13  ;;  %v4317_v26 = vrot.slane %v4312_v60, 4 }
 0x5c4   : > { %v4246_v41 = vsel %vm355_vm11, %v4243_v11, %v4244_v18  ;;  %v4248_v2 = vsel %vm355_vm11, %v4244_v18, %v4245_v6 }
 0x5c5   : > { %v4247_v24 = vsel %vm594_vm4, %v4238_v47, %v4246_v41  ;;  %v4249_v62 = vsel %vm594_vm4, %v4240_v12, %v4248_v2  ;;  %v4314_v9 = vpop.permute.xlu0 %4313  ;;  %v4386_v40 = vpop.permute.xlu1 %4385 }
 0x5c6   : > { %v4318_v19 = vrot.slane %v4314_v9, 4  ;;  %v5435_v50 = vcombine.low %v4173_v52, %v4247_v24  ;;  %v5436_v54 = vcombine.high %v4173_v52, %v4247_v24  ;;  %v5437_v7 = vcombine.low %v4175_v3, %v4249_v62 }
 0x5c7   : > { %v5438_v36 = vcombine.high %v4175_v3, %v4249_v62  ;;  %v4391_v33 = vrot.slane %v4386_v40, 4 }
 0x5c8   : > { %v4320_v8 = vsel %vm355_vm11, %v4317_v26, %v4318_v19  ;;  %v4322_v1 = vsel %vm355_vm11, %v4318_v19, %v4319_v21  ;;  %4998 = vmatprep.subr.bf16.mxu0 %v5436_v54 }
 0x5c9   : > { %v4321_v53 = vsel %vm629_vm5, %v4312_v60, %v4320_v8  ;;  %v4323_v23 = vsel %vm629_vm5, %v4314_v9, %v4322_v1  ;;  %v4388_v42 = vpop.permute.xlu0 %4387  ;;  %v4460_v4 = vpop.permute.xlu1 %4459  ;;  %5039 = vmatprep.subr.bf16.mxu1 %v5438_v36  ;;  %4999 = vmatpush1.bf16.msra.mxu0 %v5435_v50 }
 0x5ca   : > { %v4392_v22 = vrot.slane %v4388_v42, 4  ;;  %5040 = vmatpush1.bf16.msra.mxu1 %v5437_v7  ;;  %v4465_v38 = vrot.slane %v4460_v4, 4 }
 0x5cc   : > { %v4394_v63 = vsel %vm355_vm11, %v4391_v33, %v4392_v22  ;;  %v4396_v27 = vsel %vm355_vm11, %v4392_v22, %v4393_v5 }
 0x5cd   : > { %v4395_v29 = vsel %vm549_vm2, %v4386_v40, %v4394_v63  ;;  %v4397_v10 = vsel %vm549_vm2, %v4388_v42, %v4396_v27  ;;  %v4462_v28 = vpop.permute.xlu0 %4461  ;;  %v4534_v56 = vpop.permute.xlu1 %4533  ;;  %v5393_v40 = vcombine.low %v8732_v44, %v8732_v44 }
 0x5ce   : > { %v4466_v15 = vrot.slane %v4462_v28, 4  ;;  %v5439_v37 = vcombine.low %v4321_v53, %v4395_v29  ;;  %v5440_v51 = vcombine.high %v4321_v53, %v4395_v29  ;;  %v5441_v43 = vcombine.low %v4323_v23, %v4397_v10 }
 0x5cf   : > { %v5442_v57 = vcombine.high %v4323_v23, %v4397_v10  ;;  %v4539_v31 = vrot.slane %v4534_v56, 4 }
 0x5d0   : > { %v4468_v46 = vsel %vm355_vm11, %v4465_v38, %v4466_v15  ;;  %v4470_v39 = vsel %vm355_vm11, %v4466_v15, %v4467_v32  ;;  %5000 = vmatprep.subr.bf16.mxu0 %v5440_v51 }
 0x5d1   : > { %v4469_v58 = vsel %vm472_vm3, %v4460_v4, %v4468_v46  ;;  %v4471_v48 = vsel %vm472_vm3, %v4462_v28, %v4470_v39  ;;  %v4536_v20 = vpop.permute.xlu0 %4535  ;;  %v4608_v16 = vpop.permute.xlu1 %4607  ;;  %5041 = vmatprep.subr.bf16.mxu1 %v5442_v57  ;;  %5001 = vmatpush1.bf16.msra.mxu0 %v5439_v37 }
 0x5d2   : > { %v4540_v59 = vrot.slane %v4536_v20, 4  ;;  %5042 = vmatpush1.bf16.msra.mxu1 %v5441_v43  ;;  %v4613_v55 = vrot.slane %v4608_v16, 4 }
 0x5d4   : > { %v4542_v47 = vsel %vm355_vm11, %v4539_v31, %v4540_v59  ;;  %v4544_v30 = vsel %vm355_vm11, %v4540_v59, %v4541_v35 }
 0x5d5   : > { %v4543_v25 = vsel %vm392_vm0, %v4534_v56, %v4542_v47  ;;  %v4545_v34 = vsel %vm392_vm0, %v4536_v20, %v4544_v30  ;;  %v4610_v13 = vpop.permute.xlu0 %4609  ;;  %v4612_v17 = vpop.permute.xlu1 %4611 }
 0x5d6   : > { %v4614_v45 = vrot.slane %v4610_v13, 4  ;;  %v4615_v14 = vrot.slane %v4612_v17, 4  ;;  %v5443_v52 = vcombine.low %v4469_v58, %v4543_v25  ;;  %v5444_v3 = vcombine.high %v4469_v58, %v4543_v25 }
 0x5d7   : > { %v5445_v12 = vcombine.low %v4471_v48, %v4545_v34  ;;  %v5446_v60 = vcombine.high %v4471_v48, %v4545_v34 }
 0x5d8   : > { %v4616_v61 = vsel %vm355_vm11, %v4613_v55, %v4614_v45  ;;  %v4618_v6 = vsel %vm355_vm11, %v4614_v45, %v4615_v14  ;;  %5002 = vmatprep.subr.bf16.mxu0 %v5444_v3 }
 0x5d9   : > { %v4617_v11 = vsel %vm314_vm1, %v4608_v16, %v4616_v61  ;;  %v4619_v18 = vsel %vm314_vm1, %v4610_v13, %v4618_v6  ;;  %5043 = vmatprep.subr.bf16.mxu1 %v5446_v60  ;;  %5003 = vmatpush1.bf16.msra.mxu0 %v5443_v52 }
 0x5da   : > { %5044 = vmatpush1.bf16.msra.mxu1 %v5445_v12  ;;  %v5448_v41 = vcombine.high %v4617_v11, %v4617_v11  ;;  %v5450_v2 = vcombine.high %v4619_v18, %v4619_v18  ;;  %v5447_v21 = vcombine.low %v4617_v11, %v4617_v11  ;;  %v5449_v24 = vcombine.low %v4619_v18, %v4619_v18 }
 0x5dc   : > { %5451 = vmatprep.subr.msk.bf16.mxu0 %vm355_vm11, %v5448_v41  ;;  %5453 = vmatprep.subr.msk.bf16.mxu1 %vm355_vm11, %v5450_v2  ;;  %v4967_v62 = vsel %vm355_vm11, %v5447_v21, 0  ;;  %v4973_v9 = vsel %vm355_vm11, %v5449_v24, 0 }
 0x5dd   : > { %5005 = vmatpush1.bf16.msra.mxu0 %v4967_v62 }
 0x5de   : > { %5046 = vmatpush1.bf16.msra.mxu1 %v4973_v9 }
 0x5e0   : > { %5011 = vmatmul.mubr.bf16.vlgmr.msra.gmra.mrb[4].mxu0 %v5393_v40 }
 0x5e1   : > { %5052 = vmatmul.mubr.bf16.vlgmr.msra.gmra.mrb[4].mxu1 %v5393_v40 }
 0x5e6   : > { %v4683_v26 = vpop.permute.xlu0 %4682 }
 0x6b3   : > { %v5012_v19 = vpop.f32.mrb[4].mxu0 }
 0x6b4   : > { %v5013_v50 = vadd.f32 %v5012_v19, %v4683_v26  ;;  %v5053_v54 = vpop.f32.mrb[4].mxu1  ;;  %v5014_v7 = vpop.f32.mrb[5].mxu0 }
 0x6b5   : > { %v5015_v36 = vadd.f32 %v5014_v7, %v4683_v26  ;;  %v5055_v8 = vpop.f32.mrb[5].mxu1  ;;  %v5016_v1 = vpop.f32.mrb[6].mxu0  ;;  %v5054_v42 = vadd.f32 %v5053_v54, %v4683_v26 }
 0x6b6   : > { %v5057_v53 = vpop.f32.mrb[6].mxu1  ;;  %v5017_v23 = vpop.f32.mrb[7].mxu0  ;;  %v5056_v5 = vadd.f32 %v5055_v8, %v4683_v26 }
 0x6b7   : > { %v5060_v4 = vadd.f32 %v5015_v36, %v5013_v50  ;;  %v5058_v0 = vpop.f32.mrb[7].mxu1 }
 0x6b9   : > { %v5061_v33 = vadd.f32 %v5060_v4, %v5054_v42 }
 0x6bb   : > { %v5062_v44 = vadd.f32 %v5061_v33, %v5056_v5 }
 0x6bd   : > { %5063 = vadd.xlane.f32.xlu1 %v5062_v44 }
 0x74a   : > { %v5064_v22 = vpop.xlane.xlu1 %5063 }
 0x74b   : > { %v5065_v63 = vmul.f32 0.001953125, %v5064_v22 }
 0x74d   : > { %v5066_v27 = vsub.f32 %v5013_v50, %v5065_v63  ;;  %v5067_v32 = vsub.f32 %v5015_v36, %v5065_v63  ;;  %v5068_v29 = vsub.f32 %v5054_v42, %v5065_v63  ;;  %v5069_v10 = vsub.f32 %v5056_v5, %v5065_v63 }
 0x74f   : > { %v5070_v28 = vmul.f32 %v5066_v27, %v5066_v27  ;;  %v5071_v56 = vmul.f32 %v5067_v32, %v5067_v32  ;;  %v5072_v38 = vmul.f32 %v5068_v29, %v5068_v29  ;;  %v5073_v37 = vmul.f32 %v5069_v10, %v5069_v10 }
 0x751   : > { %v5074_v15 = vadd.f32 %v5071_v56, %v5070_v28 }
 0x753   : > { %v5075_v51 = vadd.f32 %v5074_v15, %v5072_v38 }
 0x755   : > { %v5076_v43 = vadd.f32 %v5075_v51, %v5073_v37 }
 0x757   : > { %5077 = vadd.xlane.f32.xlu0 %v5076_v43 }
 0x7e4   : > { %v5078_v57 = vpop.xlane.xlu0 %5077 }
 0x7e5   : > { %v5079_v46 = vmul.f32 0.001953125, %v5078_v57 }
 0x7e7   : > { %v5080_v39 = vadd.f32 1e-05, %v5079_v46 }
 0x7e9   : > { %5749 = vrsqrt.f32 %v5080_v39 }
 0x7f3   : > { %v5750_v58 = vpop.eup %5749 }
 0x7f4   : > { %v5082_v48 = vmul.f32 %v5750_v58, %v5066_v27  ;;  %v5083_v20 = vmul.f32 %v5750_v58, %v5067_v32  ;;  %v5084_v16 = vmul.f32 %v5750_v58, %v5068_v29  ;;  %v5085_v49 = vmul.f32 %v5750_v58, %v5069_v10 }
 0x7f6   : > { %v5086_v35 = vmax.f32 %v5082_v48, 0.0  ;;  %v5087_v31 = vmax.f32 %v5083_v20, 0.0  ;;  %v5088_v59 = vmax.f32 %v5084_v16, 0.0  ;;  %v5089_v47 = vmax.f32 %v5085_v49, 0.0 }
 0x7f8   : > { %5090 = vst [vmem:[%s272_s17] sm:$0xff] %v5086_v35  ;;  %5091 = vst [vmem:[%s272_s17 + $0x8] sm:$0xff] %v5087_v31 }
 0x7f9   : > { %5092 = vst [vmem:[%s272_s17 + $0x10] sm:$0xff] %v5088_v59  ;;  %5093 = vst [vmem:[%s272_s17 + $0x18] sm:$0xff] %v5089_v47 }
 0x7fa   : > { %5820 = shalt.err (!%p5817_p11)
}
 0x7fb   : > { %s5821_s18 = scalar_lea.hbm %s8857_s28, 512  ;;  %s5825_s9 = scalar_lea.hbm %s8905_s6, 1024 }
 0x7fc   : > { %p5822_p13 = scmp.ne.s32.totalorder %s8857_s28, %s5821_s18  ;;  %p5826_p6 = scmp.lt.u32.totalorder %s8857_s28, %s8905_s6 }
 0x7fd   : > { %p5827_p9 = scmp.lt.u32.totalorder %s5825_s9, %s5821_s18  ;;  %p5829_p10 = scmp.lt.u32.totalorder %s5821_s18, %s8857_s28 }
 0x7fe   : > { %p5823_p5 = pnand %p5822_p13, %p9387_p1 }
 0x7ff   : > { %p5828_p12 = por %p5827_p9, %p5826_p6 }
 0x800   : > { %p5824_p0 = pneg %p5823_p5 }
 0x801   : > { %p5830_p2 = por %p5829_p10, %p5828_p12 }
 0x803   : > { %p5831_p3 = pnand %p5830_p2, %p5824_p0 }
 0x805   : > { %5834 = shalt.err (!%p5831_p3)
}
 0x806   : > { %5630 = dma.vmem_to_hbm [thread:$0]  (%p9387_p1), %s8859_s19, 512, %s8857_s28, %s5095_s25  }
 0x807 PF: > { %p5647_p4 = scmp.ge.s32.totalorder %s5877_s24, 2  ;;  %s5121_s13 = sand.u32 1, %s5865_s21  }
 0x808   : > { %p9388_p7 = scmp.ne.s32.totalorder %s9041_s8, 0  ;;  %s5122_s15 = scalar_lea.sflag [#allocation5], %s5121_s13 }
 0x80a   : > { %p5640_p8 = pnand %p5647_p4, %p9388_p7 }
 0x80c   : > { %5860 = dma.done.wait (!%p5640_p8), %s5122_s15, 512  }
 0x80d   : > { %5862 = vsyncadd (!%p5640_p8), %s5122_s15, 4294966784  ;;  %p18_p11 = scmp.ge.s32.totalorder %s5962_s27, 4   ;;  %s9389_s21 = smov %s5869_s22 }
 0x80e   : > { %s9390_s22 = smov %s5873_s23  ;;  %s9391_s23 = smov %s5973_s30 }
 0x80f   : > { %s9392_s24 = smov %s5962_s27  ;;  %20 = sbr.rel (!%p18_p11) target bundleno = 8 (0x8), region = 114 }
 0x816   :  { %5127 = vsyncpa [#allocation4], 1 }
 0x817   :  { %5129 = vsyncpa [#allocation4 + $0x1], 1 }
 0x818   :  { %5130 = vsyncpa [#allocation7], 1 }
 0x819   :  { %5131 = vsyncpa [#allocation5], 1 }
 0x81a   :  { %5133 = vsyncpa [#allocation5 + $0x1], 1 }

</bundles_post_ra>
